<compile_context>
chip_gen: v7x
topology: tpu7x:2x2x1
jax: 0.10.0
libtpu: 0.0.40
codegen_flags: <defaults>
</compile_context>

<pallas_src>
import functools

import jax
import jax.numpy as jnp
from jax.experimental import pallas as pl
from jax.experimental.pallas import tpu as pltpu

# Problem sizes implied by the module: Conv2d(1, 6, 3) + Linear(6*26*26, 10)
# => input must be (B, 1, 28, 28).
IN_C, OUT_C, K = 1, 6, 3
H_IN = W_IN = 28
H_OUT = W_OUT = H_IN - K + 1            # 26
FEAT = OUT_C * H_OUT * W_OUT            # 4056 (torch flatten order)
N_CLASSES = 10

# Kernel-internal layout constants.
SB = 8                                   # sub-tile rows (one f32 sublane tile)
X_COLS = 896                             # 28*28 = 784, zero-padded to 7*128
CONV_COLS = H_OUT * W_IN                 # 26*28 = 728 (stride-28 flattened conv)
FEAT_PAD = OUT_C * CONV_COLS             # 4368 padded feature length


def _round_up(n, m):
    return (n + m - 1) // m * m


def _make_fused_kernel(tb):
    n_sub = tb // SB

    def kernel(wc_ref, bc_ref, x_ref, wl_ref, bl_ref, o_ref):
        # wc_ref: SMEM (54,)      flattened conv weight, index oc*9 + dy*3 + dx
        # bc_ref: SMEM (6,)       conv bias
        # x_ref : VMEM (TB, 896)  flattened, zero-padded images
        # wl_ref: VMEM (4368, 10) padded/permuted linear weight (grid-resident)
        # bl_ref: VMEM (1, 10)    linear bias
        # o_ref : VMEM (TB, 10)
        bias_lin = bl_ref[...]                                   # (1, 10)
        for s in range(n_sub):
            xf = x_ref[s * SB:(s + 1) * SB, :]                   # (SB, 896)

            # Conv accumulators, one per output channel, in flattened
            # stride-28 layout. Columns w'=26,27 of each row are wrap garbage
            # and are zeroed out by the padded linear weight.
            accs = [jnp.zeros((SB, CONV_COLS), jnp.float32) + bc_ref[oc]
                    for oc in range(OUT_C)]

            # The 9 shifted windows: sliced once, reused by all 6 channels.
            for dy in range(K):
                for dx in range(K):
                    off = dy * W_IN + dx
                    win = xf[:, off:off + CONV_COLS]             # (SB, 728)
                    for oc in range(OUT_C):
                        accs[oc] = accs[oc] + wc_ref[oc * K * K + dy * K + dx] * win

            # sigmoid + fused linear:  y = b_lin + sum_oc sigmoid(acc_oc) @ W_oc
            y = jnp.zeros((SB, N_CLASSES), jnp.float32) + bias_lin
            for oc in range(OUT_C):
                act = jax.nn.sigmoid(accs[oc])                   # (SB, 728)
                y = y + jnp.dot(
                    act,
                    wl_ref[oc * CONV_COLS:(oc + 1) * CONV_COLS, :],
                    preferred_element_type=jnp.float32)

            o_ref[s * SB:(s + 1) * SB, :] = jax.nn.sigmoid(y)

    return kernel


@functools.partial(jax.jit, static_argnames=("block_b",))
def cnn_forward(x, params, block_b=32):
    """Forward pass of the PyTorch CNN module as one fused Pallas kernel."""
    w_conv, b_conv, w_lin, b_lin = params
    B = x.shape[0]

    # ---- operand preparation (cheap, fused by XLA under jit) ---------------
    # Images: flatten to (B, 784), zero-pad the lane dim to 896.
    x_flat = x.reshape(B, IN_C * H_IN * W_IN).astype(jnp.float32)
    x_flat = jnp.pad(x_flat, ((0, 0), (0, X_COLS - H_IN * W_IN)))

    # Batch tiling: TB rows per grid step, batch zero-padded to a multiple.
    tb = min(_round_up(block_b, SB), _round_up(B, SB))
    b_pad = _round_up(B, tb)
    if b_pad != B:
        x_flat = jnp.pad(x_flat, ((0, b_pad - B), (0, 0)))

    # Conv params -> SMEM scalars.
    wc_flat = w_conv.reshape(-1).astype(jnp.float32)             # (54,)
    bc = b_conv.astype(jnp.float32)                              # (6,)

    # Linear weight: (10, 4056) -> (10, 6, 26, 26), pad W 26->28 with zeros
    # (kills the wrap columns of the flattened conv), flatten, transpose.
    # Row order oc*728 + h*28 + w' matches the kernel's activation layout and
    # (for w' < 26) the exact torch.reshape feature order oc*676 + h*26 + w.
    w4 = w_lin.reshape(N_CLASSES, OUT_C, H_OUT, W_OUT).astype(jnp.float32)
    w4 = jnp.pad(w4, ((0, 0), (0, 0), (0, 0), (0, W_IN - W_OUT)))
    wl_mat = w4.reshape(N_CLASSES, FEAT_PAD).T                   # (4368, 10)
    bl = b_lin.reshape(1, N_CLASSES).astype(jnp.float32)

    out = pl.pallas_call(
        _make_fused_kernel(tb),
        out_shape=jax.ShapeDtypeStruct((b_pad, N_CLASSES), jnp.float32),
        grid=(b_pad // tb,),
        in_specs=[
            pl.BlockSpec(memory_space=pltpu.SMEM),                   # conv W
            pl.BlockSpec(memory_space=pltpu.SMEM),                   # conv b
            pl.BlockSpec((tb, X_COLS), lambda b: (b, 0)),            # images
            pl.BlockSpec((FEAT_PAD, N_CLASSES), lambda b: (0, 0)),   # resident W
            pl.BlockSpec((1, N_CLASSES), lambda b: (0, 0)),          # resident b
        ],
        out_specs=pl.BlockSpec((tb, N_CLASSES), lambda b: (b, 0)),
        compiler_params=pltpu.CompilerParams(
            dimension_semantics=("parallel",)),
    )(wc_flat, bc, x_flat, wl_mat, bl)
    return out[:B]


# ---------------------------------------------------------------------------
# Parameter init (PyTorch-style uniform fan-in bounds) and pure-JAX reference.
# ---------------------------------------------------------------------------
def init_params(key):
    k1, k2, k3, k4 = jax.random.split(key, 4)
    bound_conv = 1.0 / (IN_C * K * K) ** 0.5
    w_conv = jax.random.uniform(k1, (OUT_C, IN_C, K, K), jnp.float32,
                                -bound_conv, bound_conv)
    b_conv = jax.random.uniform(k2, (OUT_C,), jnp.float32,
                                -bound_conv, bound_conv)
    bound_lin = 1.0 / FEAT ** 0.5
    w_lin = jax.random.uniform(k3, (N_CLASSES, FEAT), jnp.float32,
                               -bound_lin, bound_lin)
    b_lin = jax.random.uniform(k4, (N_CLASSES,), jnp.float32,
                               -bound_lin, bound_lin)
    return w_conv, b_conv, w_lin, b_lin


def reference_forward(x, params):
    """Pure-JAX reference matching the PyTorch module semantics."""
    w_conv, b_conv, w_lin, b_lin = params
    conv = jax.lax.conv_general_dilated(
        x, w_conv, window_strides=(1, 1), padding="VALID",
        dimension_numbers=("NCHW", "OIHW", "NCHW"),
        precision=jax.lax.Precision.HIGHEST)
    t = jax.nn.sigmoid(conv + b_conv[None, :, None, None])
    t = t.reshape(-1, FEAT)
    t = jax.nn.sigmoid(
        jnp.dot(t, w_lin.T, precision=jax.lax.Precision.HIGHEST) + b_lin)
    return t


if __name__ == "__main__":
    key = jax.random.PRNGKey(0)
    k_params, k_x = jax.random.split(key)
    params = init_params(k_params)

    B = 2
    x = jax.random.normal(k_x, (B, IN_C, H_IN, W_IN), jnp.float32)

    out = jax.block_until_ready(cnn_forward(x, params))
    ref = reference_forward(x, params)

    assert out.shape == (B, N_CLASSES)
    max_err = float(jnp.max(jnp.abs(out - ref)))
    assert jnp.allclose(out, ref, atol=2e-5, rtol=2e-5), max_err

    print("KERNEL_OK")
</pallas_src>

<mosaic_0001>
module attributes {stable_mosaic.version = 11 : i64} {
  func.func @kernel(%arg0: i32, %arg1: memref<54xf32, #tpu.memory_space<smem>>, %arg2: memref<6xf32, #tpu.memory_space<smem>>, %arg3: memref<8x896xf32, #tpu.memory_space<vmem>>, %arg4: memref<4368x10xf32, #tpu.memory_space<vmem>>, %arg5: memref<1x10xf32, #tpu.memory_space<vmem>>, %arg6: memref<8x10xf32, #tpu.memory_space<vmem>>) attributes {dimension_semantics = [#tpu.dimension_semantics<parallel>], iteration_bounds = array<i64: 1>, scalar_prefetch = 0 : i64, scratch_operands = 0 : i64, tpu.core_type = #tpu.core_type<tc>, window_params = [{transform_indices = @transform_0, window_bounds = array<i64: 54>}, {transform_indices = @transform_1, window_bounds = array<i64: 6>}, {transform_indices = @transform_2, window_bounds = array<i64: 8, 896>}, {pipeline_mode = #tpu.pipeline_mode<synchronous>, transform_indices = @transform_3, window_bounds = array<i64: 4368, 10>}, {pipeline_mode = #tpu.pipeline_mode<synchronous>, transform_indices = @transform_4, window_bounds = array<i64: 1, 10>}, {transform_indices = @transform_5, window_bounds = array<i64: 8, 10>}]} {
    %c0 = arith.constant 0 : index
    %c0_0 = arith.constant 0 : index
    %0 = vector.load %arg5[%c0, %c0_0] : memref<1x10xf32, #tpu.memory_space<vmem>>, vector<1x10xf32>
    %c0_1 = arith.constant 0 : index
    %c0_2 = arith.constant 0 : index
    %1 = vector.load %arg3[%c0_1, %c0_2] : memref<8x896xf32, #tpu.memory_space<vmem>>, vector<8x896xf32>
    %cst = arith.constant 0.000000e+00 : f32
    %2 = vector.broadcast %cst : f32 to vector<8x728xf32>
    %c0_3 = arith.constant 0 : index
    %3 = memref.load %arg2[%c0_3] : memref<6xf32, #tpu.memory_space<smem>>
    %4 = vector.broadcast %3 : f32 to vector<8x728xf32>
    %5 = arith.addf %2, %4 : vector<8x728xf32>
    %cst_4 = arith.constant 0.000000e+00 : f32
    %6 = vector.broadcast %cst_4 : f32 to vector<8x728xf32>
    %c1 = arith.constant 1 : index
    %7 = memref.load %arg2[%c1] : memref<6xf32, #tpu.memory_space<smem>>
    %8 = vector.broadcast %7 : f32 to vector<8x728xf32>
    %9 = arith.addf %6, %8 : vector<8x728xf32>
    %cst_5 = arith.constant 0.000000e+00 : f32
    %10 = vector.broadcast %cst_5 : f32 to vector<8x728xf32>
    %c2 = arith.constant 2 : index
    %11 = memref.load %arg2[%c2] : memref<6xf32, #tpu.memory_space<smem>>
    %12 = vector.broadcast %11 : f32 to vector<8x728xf32>
    %13 = arith.addf %10, %12 : vector<8x728xf32>
    %cst_6 = arith.constant 0.000000e+00 : f32
    %14 = vector.broadcast %cst_6 : f32 to vector<8x728xf32>
    %c3 = arith.constant 3 : index
    %15 = memref.load %arg2[%c3] : memref<6xf32, #tpu.memory_space<smem>>
    %16 = vector.broadcast %15 : f32 to vector<8x728xf32>
    %17 = arith.addf %14, %16 : vector<8x728xf32>
    %cst_7 = arith.constant 0.000000e+00 : f32
    %18 = vector.broadcast %cst_7 : f32 to vector<8x728xf32>
    %c4 = arith.constant 4 : index
    %19 = memref.load %arg2[%c4] : memref<6xf32, #tpu.memory_space<smem>>
    %20 = vector.broadcast %19 : f32 to vector<8x728xf32>
    %21 = arith.addf %18, %20 : vector<8x728xf32>
    %cst_8 = arith.constant 0.000000e+00 : f32
    %22 = vector.broadcast %cst_8 : f32 to vector<8x728xf32>
    %c5 = arith.constant 5 : index
    %23 = memref.load %arg2[%c5] : memref<6xf32, #tpu.memory_space<smem>>
    %24 = vector.broadcast %23 : f32 to vector<8x728xf32>
    %25 = arith.addf %22, %24 : vector<8x728xf32>
    %26 = vector.extract_strided_slice %1 {offsets = [0, 0], sizes = [8, 728], strides = [1, 1]} : vector<8x896xf32> to vector<8x728xf32>
    %c0_9 = arith.constant 0 : index
    %27 = memref.load %arg1[%c0_9] : memref<54xf32, #tpu.memory_space<smem>>
    %28 = vector.broadcast %27 : f32 to vector<8x728xf32>
    %29 = arith.mulf %28, %26 : vector<8x728xf32>
    %30 = arith.addf %5, %29 : vector<8x728xf32>
    %c9 = arith.constant 9 : index
    %31 = memref.load %arg1[%c9] : memref<54xf32, #tpu.memory_space<smem>>
    %32 = vector.broadcast %31 : f32 to vector<8x728xf32>
    %33 = arith.mulf %32, %26 : vector<8x728xf32>
    %34 = arith.addf %9, %33 : vector<8x728xf32>
    %c18 = arith.constant 18 : index
    %35 = memref.load %arg1[%c18] : memref<54xf32, #tpu.memory_space<smem>>
    %36 = vector.broadcast %35 : f32 to vector<8x728xf32>
    %37 = arith.mulf %36, %26 : vector<8x728xf32>
    %38 = arith.addf %13, %37 : vector<8x728xf32>
    %c27 = arith.constant 27 : index
    %39 = memref.load %arg1[%c27] : memref<54xf32, #tpu.memory_space<smem>>
    %40 = vector.broadcast %39 : f32 to vector<8x728xf32>
    %41 = arith.mulf %40, %26 : vector<8x728xf32>
    %42 = arith.addf %17, %41 : vector<8x728xf32>
    %c36 = arith.constant 36 : index
    %43 = memref.load %arg1[%c36] : memref<54xf32, #tpu.memory_space<smem>>
    %44 = vector.broadcast %43 : f32 to vector<8x728xf32>
    %45 = arith.mulf %44, %26 : vector<8x728xf32>
    %46 = arith.addf %21, %45 : vector<8x728xf32>
    %c45 = arith.constant 45 : index
    %47 = memref.load %arg1[%c45] : memref<54xf32, #tpu.memory_space<smem>>
    %48 = vector.broadcast %47 : f32 to vector<8x728xf32>
    %49 = arith.mulf %48, %26 : vector<8x728xf32>
    %50 = arith.addf %25, %49 : vector<8x728xf32>
    %51 = vector.extract_strided_slice %1 {offsets = [0, 1], sizes = [8, 728], strides = [1, 1]} : vector<8x896xf32> to vector<8x728xf32>
    %c1_10 = arith.constant 1 : index
    %52 = memref.load %arg1[%c1_10] : memref<54xf32, #tpu.memory_space<smem>>
    %53 = vector.broadcast %52 : f32 to vector<8x728xf32>
    %54 = arith.mulf %53, %51 : vector<8x728xf32>
    %55 = arith.addf %30, %54 : vector<8x728xf32>
    %c10 = arith.constant 10 : index
    %56 = memref.load %arg1[%c10] : memref<54xf32, #tpu.memory_space<smem>>
    %57 = vector.broadcast %56 : f32 to vector<8x728xf32>
    %58 = arith.mulf %57, %51 : vector<8x728xf32>
    %59 = arith.addf %34, %58 : vector<8x728xf32>
    %c19 = arith.constant 19 : index
    %60 = memref.load %arg1[%c19] : memref<54xf32, #tpu.memory_space<smem>>
    %61 = vector.broadcast %60 : f32 to vector<8x728xf32>
    %62 = arith.mulf %61, %51 : vector<8x728xf32>
    %63 = arith.addf %38, %62 : vector<8x728xf32>
    %c28 = arith.constant 28 : index
    %64 = memref.load %arg1[%c28] : memref<54xf32, #tpu.memory_space<smem>>
    %65 = vector.broadcast %64 : f32 to vector<8x728xf32>
    %66 = arith.mulf %65, %51 : vector<8x728xf32>
    %67 = arith.addf %42, %66 : vector<8x728xf32>
    %c37 = arith.constant 37 : index
    %68 = memref.load %arg1[%c37] : memref<54xf32, #tpu.memory_space<smem>>
    %69 = vector.broadcast %68 : f32 to vector<8x728xf32>
    %70 = arith.mulf %69, %51 : vector<8x728xf32>
    %71 = arith.addf %46, %70 : vector<8x728xf32>
    %c46 = arith.constant 46 : index
    %72 = memref.load %arg1[%c46] : memref<54xf32, #tpu.memory_space<smem>>
    %73 = vector.broadcast %72 : f32 to vector<8x728xf32>
    %74 = arith.mulf %73, %51 : vector<8x728xf32>
    %75 = arith.addf %50, %74 : vector<8x728xf32>
    %76 = vector.extract_strided_slice %1 {offsets = [0, 2], sizes = [8, 728], strides = [1, 1]} : vector<8x896xf32> to vector<8x728xf32>
    %c2_11 = arith.constant 2 : index
    %77 = memref.load %arg1[%c2_11] : memref<54xf32, #tpu.memory_space<smem>>
    %78 = vector.broadcast %77 : f32 to vector<8x728xf32>
    %79 = arith.mulf %78, %76 : vector<8x728xf32>
    %80 = arith.addf %55, %79 : vector<8x728xf32>
    %c11 = arith.constant 11 : index
    %81 = memref.load %arg1[%c11] : memref<54xf32, #tpu.memory_space<smem>>
    %82 = vector.broadcast %81 : f32 to vector<8x728xf32>
    %83 = arith.mulf %82, %76 : vector<8x728xf32>
    %84 = arith.addf %59, %83 : vector<8x728xf32>
    %c20 = arith.constant 20 : index
    %85 = memref.load %arg1[%c20] : memref<54xf32, #tpu.memory_space<smem>>
    %86 = vector.broadcast %85 : f32 to vector<8x728xf32>
    %87 = arith.mulf %86, %76 : vector<8x728xf32>
    %88 = arith.addf %63, %87 : vector<8x728xf32>
    %c29 = arith.constant 29 : index
    %89 = memref.load %arg1[%c29] : memref<54xf32, #tpu.memory_space<smem>>
    %90 = vector.broadcast %89 : f32 to vector<8x728xf32>
    %91 = arith.mulf %90, %76 : vector<8x728xf32>
    %92 = arith.addf %67, %91 : vector<8x728xf32>
    %c38 = arith.constant 38 : index
    %93 = memref.load %arg1[%c38] : memref<54xf32, #tpu.memory_space<smem>>
    %94 = vector.broadcast %93 : f32 to vector<8x728xf32>
    %95 = arith.mulf %94, %76 : vector<8x728xf32>
    %96 = arith.addf %71, %95 : vector<8x728xf32>
    %c47 = arith.constant 47 : index
    %97 = memref.load %arg1[%c47] : memref<54xf32, #tpu.memory_space<smem>>
    %98 = vector.broadcast %97 : f32 to vector<8x728xf32>
    %99 = arith.mulf %98, %76 : vector<8x728xf32>
    %100 = arith.addf %75, %99 : vector<8x728xf32>
    %101 = vector.extract_strided_slice %1 {offsets = [0, 28], sizes = [8, 728], strides = [1, 1]} : vector<8x896xf32> to vector<8x728xf32>
    %c3_12 = arith.constant 3 : index
    %102 = memref.load %arg1[%c3_12] : memref<54xf32, #tpu.memory_space<smem>>
    %103 = vector.broadcast %102 : f32 to vector<8x728xf32>
    %104 = arith.mulf %103, %101 : vector<8x728xf32>
    %105 = arith.addf %80, %104 : vector<8x728xf32>
    %c12 = arith.constant 12 : index
    %106 = memref.load %arg1[%c12] : memref<54xf32, #tpu.memory_space<smem>>
    %107 = vector.broadcast %106 : f32 to vector<8x728xf32>
    %108 = arith.mulf %107, %101 : vector<8x728xf32>
    %109 = arith.addf %84, %108 : vector<8x728xf32>
    %c21 = arith.constant 21 : index
    %110 = memref.load %arg1[%c21] : memref<54xf32, #tpu.memory_space<smem>>
    %111 = vector.broadcast %110 : f32 to vector<8x728xf32>
    %112 = arith.mulf %111, %101 : vector<8x728xf32>
    %113 = arith.addf %88, %112 : vector<8x728xf32>
    %c30 = arith.constant 30 : index
    %114 = memref.load %arg1[%c30] : memref<54xf32, #tpu.memory_space<smem>>
    %115 = vector.broadcast %114 : f32 to vector<8x728xf32>
    %116 = arith.mulf %115, %101 : vector<8x728xf32>
    %117 = arith.addf %92, %116 : vector<8x728xf32>
    %c39 = arith.constant 39 : index
    %118 = memref.load %arg1[%c39] : memref<54xf32, #tpu.memory_space<smem>>
    %119 = vector.broadcast %118 : f32 to vector<8x728xf32>
    %120 = arith.mulf %119, %101 : vector<8x728xf32>
    %121 = arith.addf %96, %120 : vector<8x728xf32>
    %c48 = arith.constant 48 : index
    %122 = memref.load %arg1[%c48] : memref<54xf32, #tpu.memory_space<smem>>
    %123 = vector.broadcast %122 : f32 to vector<8x728xf32>
    %124 = arith.mulf %123, %101 : vector<8x728xf32>
    %125 = arith.addf %100, %124 : vector<8x728xf32>
    %126 = vector.extract_strided_slice %1 {offsets = [0, 29], sizes = [8, 728], strides = [1, 1]} : vector<8x896xf32> to vector<8x728xf32>
    %c4_13 = arith.constant 4 : index
    %127 = memref.load %arg1[%c4_13] : memref<54xf32, #tpu.memory_space<smem>>
    %128 = vector.broadcast %127 : f32 to vector<8x728xf32>
    %129 = arith.mulf %128, %126 : vector<8x728xf32>
    %130 = arith.addf %105, %129 : vector<8x728xf32>
    %c13 = arith.constant 13 : index
    %131 = memref.load %arg1[%c13] : memref<54xf32, #tpu.memory_space<smem>>
    %132 = vector.broadcast %131 : f32 to vector<8x728xf32>
    %133 = arith.mulf %132, %126 : vector<8x728xf32>
    %134 = arith.addf %109, %133 : vector<8x728xf32>
    %c22 = arith.constant 22 : index
    %135 = memref.load %arg1[%c22] : memref<54xf32, #tpu.memory_space<smem>>
    %136 = vector.broadcast %135 : f32 to vector<8x728xf32>
    %137 = arith.mulf %136, %126 : vector<8x728xf32>
    %138 = arith.addf %113, %137 : vector<8x728xf32>
    %c31 = arith.constant 31 : index
    %139 = memref.load %arg1[%c31] : memref<54xf32, #tpu.memory_space<smem>>
    %140 = vector.broadcast %139 : f32 to vector<8x728xf32>
    %141 = arith.mulf %140, %126 : vector<8x728xf32>
    %142 = arith.addf %117, %141 : vector<8x728xf32>
    %c40 = arith.constant 40 : index
    %143 = memref.load %arg1[%c40] : memref<54xf32, #tpu.memory_space<smem>>
    %144 = vector.broadcast %143 : f32 to vector<8x728xf32>
    %145 = arith.mulf %144, %126 : vector<8x728xf32>
    %146 = arith.addf %121, %145 : vector<8x728xf32>
    %c49 = arith.constant 49 : index
    %147 = memref.load %arg1[%c49] : memref<54xf32, #tpu.memory_space<smem>>
    %148 = vector.broadcast %147 : f32 to vector<8x728xf32>
    %149 = arith.mulf %148, %126 : vector<8x728xf32>
    %150 = arith.addf %125, %149 : vector<8x728xf32>
    %151 = vector.extract_strided_slice %1 {offsets = [0, 30], sizes = [8, 728], strides = [1, 1]} : vector<8x896xf32> to vector<8x728xf32>
    %c5_14 = arith.constant 5 : index
    %152 = memref.load %arg1[%c5_14] : memref<54xf32, #tpu.memory_space<smem>>
    %153 = vector.broadcast %152 : f32 to vector<8x728xf32>
    %154 = arith.mulf %153, %151 : vector<8x728xf32>
    %155 = arith.addf %130, %154 : vector<8x728xf32>
    %c14 = arith.constant 14 : index
    %156 = memref.load %arg1[%c14] : memref<54xf32, #tpu.memory_space<smem>>
    %157 = vector.broadcast %156 : f32 to vector<8x728xf32>
    %158 = arith.mulf %157, %151 : vector<8x728xf32>
    %159 = arith.addf %134, %158 : vector<8x728xf32>
    %c23 = arith.constant 23 : index
    %160 = memref.load %arg1[%c23] : memref<54xf32, #tpu.memory_space<smem>>
    %161 = vector.broadcast %160 : f32 to vector<8x728xf32>
    %162 = arith.mulf %161, %151 : vector<8x728xf32>
    %163 = arith.addf %138, %162 : vector<8x728xf32>
    %c32 = arith.constant 32 : index
    %164 = memref.load %arg1[%c32] : memref<54xf32, #tpu.memory_space<smem>>
    %165 = vector.broadcast %164 : f32 to vector<8x728xf32>
    %166 = arith.mulf %165, %151 : vector<8x728xf32>
    %167 = arith.addf %142, %166 : vector<8x728xf32>
    %c41 = arith.constant 41 : index
    %168 = memref.load %arg1[%c41] : memref<54xf32, #tpu.memory_space<smem>>
    %169 = vector.broadcast %168 : f32 to vector<8x728xf32>
    %170 = arith.mulf %169, %151 : vector<8x728xf32>
    %171 = arith.addf %146, %170 : vector<8x728xf32>
    %c50 = arith.constant 50 : index
    %172 = memref.load %arg1[%c50] : memref<54xf32, #tpu.memory_space<smem>>
    %173 = vector.broadcast %172 : f32 to vector<8x728xf32>
    %174 = arith.mulf %173, %151 : vector<8x728xf32>
    %175 = arith.addf %150, %174 : vector<8x728xf32>
    %176 = vector.extract_strided_slice %1 {offsets = [0, 56], sizes = [8, 728], strides = [1, 1]} : vector<8x896xf32> to vector<8x728xf32>
    %c6 = arith.constant 6 : index
    %177 = memref.load %arg1[%c6] : memref<54xf32, #tpu.memory_space<smem>>
    %178 = vector.broadcast %177 : f32 to vector<8x728xf32>
    %179 = arith.mulf %178, %176 : vector<8x728xf32>
    %180 = arith.addf %155, %179 : vector<8x728xf32>
    %c15 = arith.constant 15 : index
    %181 = memref.load %arg1[%c15] : memref<54xf32, #tpu.memory_space<smem>>
    %182 = vector.broadcast %181 : f32 to vector<8x728xf32>
    %183 = arith.mulf %182, %176 : vector<8x728xf32>
    %184 = arith.addf %159, %183 : vector<8x728xf32>
    %c24 = arith.constant 24 : index
    %185 = memref.load %arg1[%c24] : memref<54xf32, #tpu.memory_space<smem>>
    %186 = vector.broadcast %185 : f32 to vector<8x728xf32>
    %187 = arith.mulf %186, %176 : vector<8x728xf32>
    %188 = arith.addf %163, %187 : vector<8x728xf32>
    %c33 = arith.constant 33 : index
    %189 = memref.load %arg1[%c33] : memref<54xf32, #tpu.memory_space<smem>>
    %190 = vector.broadcast %189 : f32 to vector<8x728xf32>
    %191 = arith.mulf %190, %176 : vector<8x728xf32>
    %192 = arith.addf %167, %191 : vector<8x728xf32>
    %c42 = arith.constant 42 : index
    %193 = memref.load %arg1[%c42] : memref<54xf32, #tpu.memory_space<smem>>
    %194 = vector.broadcast %193 : f32 to vector<8x728xf32>
    %195 = arith.mulf %194, %176 : vector<8x728xf32>
    %196 = arith.addf %171, %195 : vector<8x728xf32>
    %c51 = arith.constant 51 : index
    %197 = memref.load %arg1[%c51] : memref<54xf32, #tpu.memory_space<smem>>
    %198 = vector.broadcast %197 : f32 to vector<8x728xf32>
    %199 = arith.mulf %198, %176 : vector<8x728xf32>
    %200 = arith.addf %175, %199 : vector<8x728xf32>
    %201 = vector.extract_strided_slice %1 {offsets = [0, 57], sizes = [8, 728], strides = [1, 1]} : vector<8x896xf32> to vector<8x728xf32>
    %c7 = arith.constant 7 : index
    %202 = memref.load %arg1[%c7] : memref<54xf32, #tpu.memory_space<smem>>
    %203 = vector.broadcast %202 : f32 to vector<8x728xf32>
    %204 = arith.mulf %203, %201 : vector<8x728xf32>
    %205 = arith.addf %180, %204 : vector<8x728xf32>
    %c16 = arith.constant 16 : index
    %206 = memref.load %arg1[%c16] : memref<54xf32, #tpu.memory_space<smem>>
    %207 = vector.broadcast %206 : f32 to vector<8x728xf32>
    %208 = arith.mulf %207, %201 : vector<8x728xf32>
    %209 = arith.addf %184, %208 : vector<8x728xf32>
    %c25 = arith.constant 25 : index
    %210 = memref.load %arg1[%c25] : memref<54xf32, #tpu.memory_space<smem>>
    %211 = vector.broadcast %210 : f32 to vector<8x728xf32>
    %212 = arith.mulf %211, %201 : vector<8x728xf32>
    %213 = arith.addf %188, %212 : vector<8x728xf32>
    %c34 = arith.constant 34 : index
    %214 = memref.load %arg1[%c34] : memref<54xf32, #tpu.memory_space<smem>>
    %215 = vector.broadcast %214 : f32 to vector<8x728xf32>
    %216 = arith.mulf %215, %201 : vector<8x728xf32>
    %217 = arith.addf %192, %216 : vector<8x728xf32>
    %c43 = arith.constant 43 : index
    %218 = memref.load %arg1[%c43] : memref<54xf32, #tpu.memory_space<smem>>
    %219 = vector.broadcast %218 : f32 to vector<8x728xf32>
    %220 = arith.mulf %219, %201 : vector<8x728xf32>
    %221 = arith.addf %196, %220 : vector<8x728xf32>
    %c52 = arith.constant 52 : index
    %222 = memref.load %arg1[%c52] : memref<54xf32, #tpu.memory_space<smem>>
    %223 = vector.broadcast %222 : f32 to vector<8x728xf32>
    %224 = arith.mulf %223, %201 : vector<8x728xf32>
    %225 = arith.addf %200, %224 : vector<8x728xf32>
    %226 = vector.extract_strided_slice %1 {offsets = [0, 58], sizes = [8, 728], strides = [1, 1]} : vector<8x896xf32> to vector<8x728xf32>
    %c8 = arith.constant 8 : index
    %227 = memref.load %arg1[%c8] : memref<54xf32, #tpu.memory_space<smem>>
    %228 = vector.broadcast %227 : f32 to vector<8x728xf32>
    %229 = arith.mulf %228, %226 : vector<8x728xf32>
    %230 = arith.addf %205, %229 : vector<8x728xf32>
    %c17 = arith.constant 17 : index
    %231 = memref.load %arg1[%c17] : memref<54xf32, #tpu.memory_space<smem>>
    %232 = vector.broadcast %231 : f32 to vector<8x728xf32>
    %233 = arith.mulf %232, %226 : vector<8x728xf32>
    %234 = arith.addf %209, %233 : vector<8x728xf32>
    %c26 = arith.constant 26 : index
    %235 = memref.load %arg1[%c26] : memref<54xf32, #tpu.memory_space<smem>>
    %236 = vector.broadcast %235 : f32 to vector<8x728xf32>
    %237 = arith.mulf %236, %226 : vector<8x728xf32>
    %238 = arith.addf %213, %237 : vector<8x728xf32>
    %c35 = arith.constant 35 : index
    %239 = memref.load %arg1[%c35] : memref<54xf32, #tpu.memory_space<smem>>
    %240 = vector.broadcast %239 : f32 to vector<8x728xf32>
    %241 = arith.mulf %240, %226 : vector<8x728xf32>
    %242 = arith.addf %217, %241 : vector<8x728xf32>
    %c44 = arith.constant 44 : index
    %243 = memref.load %arg1[%c44] : memref<54xf32, #tpu.memory_space<smem>>
    %244 = vector.broadcast %243 : f32 to vector<8x728xf32>
    %245 = arith.mulf %244, %226 : vector<8x728xf32>
    %246 = arith.addf %221, %245 : vector<8x728xf32>
    %c53 = arith.constant 53 : index
    %247 = memref.load %arg1[%c53] : memref<54xf32, #tpu.memory_space<smem>>
    %248 = vector.broadcast %247 : f32 to vector<8x728xf32>
    %249 = arith.mulf %248, %226 : vector<8x728xf32>
    %250 = arith.addf %225, %249 : vector<8x728xf32>
    %cst_15 = arith.constant 0.000000e+00 : f32
    %251 = vector.broadcast %cst_15 : f32 to vector<8x10xf32>
    %252 = vector.broadcast %0 : vector<1x10xf32> to vector<8x10xf32>
    %253 = arith.addf %251, %252 : vector<8x10xf32>
    %254 = arith.negf %230 : vector<8x728xf32>
    %255 = math.exp %254 : vector<8x728xf32>
    %cst_16 = arith.constant 1.000000e+00 : f32
    %256 = vector.broadcast %cst_16 : f32 to vector<8x728xf32>
    %257 = arith.addf %256, %255 : vector<8x728xf32>
    %258 = arith.divf %256, %257 : vector<8x728xf32>
    %c0_17 = arith.constant 0 : index
    %c0_18 = arith.constant 0 : index
    %259 = vector.load %arg4[%c0_17, %c0_18] : memref<4368x10xf32, #tpu.memory_space<vmem>>, vector<728x10xf32>
    %cst_19 = arith.constant dense<0.000000e+00> : vector<8x10xf32>
    %260 = tpu.matmul %258, %259, %cst_19 {dimension_numbers = #tpu.dot_dimension_numbers<[1], [0], [0], [1], [0, 0, 1, 1], [], []>} : vector<8x728xf32>, vector<728x10xf32>, vector<8x10xf32> -> vector<8x10xf32>
    %261 = arith.addf %253, %260 : vector<8x10xf32>
    %262 = arith.negf %234 : vector<8x728xf32>
    %263 = math.exp %262 : vector<8x728xf32>
    %cst_20 = arith.constant 1.000000e+00 : f32
    %264 = vector.broadcast %cst_20 : f32 to vector<8x728xf32>
    %265 = arith.addf %264, %263 : vector<8x728xf32>
    %266 = arith.divf %264, %265 : vector<8x728xf32>
    %c728 = arith.constant 728 : index
    %c0_21 = arith.constant 0 : index
    %267 = vector.load %arg4[%c728, %c0_21] : memref<4368x10xf32, #tpu.memory_space<vmem>>, vector<728x10xf32>
    %cst_22 = arith.constant dense<0.000000e+00> : vector<8x10xf32>
    %268 = tpu.matmul %266, %267, %cst_22 {dimension_numbers = #tpu.dot_dimension_numbers<[1], [0], [0], [1], [0, 0, 1, 1], [], []>} : vector<8x728xf32>, vector<728x10xf32>, vector<8x10xf32> -> vector<8x10xf32>
    %269 = arith.addf %261, %268 : vector<8x10xf32>
    %270 = arith.negf %238 : vector<8x728xf32>
    %271 = math.exp %270 : vector<8x728xf32>
    %cst_23 = arith.constant 1.000000e+00 : f32
    %272 = vector.broadcast %cst_23 : f32 to vector<8x728xf32>
    %273 = arith.addf %272, %271 : vector<8x728xf32>
    %274 = arith.divf %272, %273 : vector<8x728xf32>
    %c1456 = arith.constant 1456 : index
    %c0_24 = arith.constant 0 : index
    %275 = vector.load %arg4[%c1456, %c0_24] : memref<4368x10xf32, #tpu.memory_space<vmem>>, vector<728x10xf32>
    %cst_25 = arith.constant dense<0.000000e+00> : vector<8x10xf32>
    %276 = tpu.matmul %274, %275, %cst_25 {dimension_numbers = #tpu.dot_dimension_numbers<[1], [0], [0], [1], [0, 0, 1, 1], [], []>} : vector<8x728xf32>, vector<728x10xf32>, vector<8x10xf32> -> vector<8x10xf32>
    %277 = arith.addf %269, %276 : vector<8x10xf32>
    %278 = arith.negf %242 : vector<8x728xf32>
    %279 = math.exp %278 : vector<8x728xf32>
    %cst_26 = arith.constant 1.000000e+00 : f32
    %280 = vector.broadcast %cst_26 : f32 to vector<8x728xf32>
    %281 = arith.addf %280, %279 : vector<8x728xf32>
    %282 = arith.divf %280, %281 : vector<8x728xf32>
    %c2184 = arith.constant 2184 : index
    %c0_27 = arith.constant 0 : index
    %283 = vector.load %arg4[%c2184, %c0_27] : memref<4368x10xf32, #tpu.memory_space<vmem>>, vector<728x10xf32>
    %cst_28 = arith.constant dense<0.000000e+00> : vector<8x10xf32>
    %284 = tpu.matmul %282, %283, %cst_28 {dimension_numbers = #tpu.dot_dimension_numbers<[1], [0], [0], [1], [0, 0, 1, 1], [], []>} : vector<8x728xf32>, vector<728x10xf32>, vector<8x10xf32> -> vector<8x10xf32>
    %285 = arith.addf %277, %284 : vector<8x10xf32>
    %286 = arith.negf %246 : vector<8x728xf32>
    %287 = math.exp %286 : vector<8x728xf32>
    %cst_29 = arith.constant 1.000000e+00 : f32
    %288 = vector.broadcast %cst_29 : f32 to vector<8x728xf32>
    %289 = arith.addf %288, %287 : vector<8x728xf32>
    %290 = arith.divf %288, %289 : vector<8x728xf32>
    %c2912 = arith.constant 2912 : index
    %c0_30 = arith.constant 0 : index
    %291 = vector.load %arg4[%c2912, %c0_30] : memref<4368x10xf32, #tpu.memory_space<vmem>>, vector<728x10xf32>
    %cst_31 = arith.constant dense<0.000000e+00> : vector<8x10xf32>
    %292 = tpu.matmul %290, %291, %cst_31 {dimension_numbers = #tpu.dot_dimension_numbers<[1], [0], [0], [1], [0, 0, 1, 1], [], []>} : vector<8x728xf32>, vector<728x10xf32>, vector<8x10xf32> -> vector<8x10xf32>
    %293 = arith.addf %285, %292 : vector<8x10xf32>
    %294 = arith.negf %250 : vector<8x728xf32>
    %295 = math.exp %294 : vector<8x728xf32>
    %cst_32 = arith.constant 1.000000e+00 : f32
    %296 = vector.broadcast %cst_32 : f32 to vector<8x728xf32>
    %297 = arith.addf %296, %295 : vector<8x728xf32>
    %298 = arith.divf %296, %297 : vector<8x728xf32>
    %c3640 = arith.constant 3640 : index
    %c0_33 = arith.constant 0 : index
    %299 = vector.load %arg4[%c3640, %c0_33] : memref<4368x10xf32, #tpu.memory_space<vmem>>, vector<728x10xf32>
    %cst_34 = arith.constant dense<0.000000e+00> : vector<8x10xf32>
    %300 = tpu.matmul %298, %299, %cst_34 {dimension_numbers = #tpu.dot_dimension_numbers<[1], [0], [0], [1], [0, 0, 1, 1], [], []>} : vector<8x728xf32>, vector<728x10xf32>, vector<8x10xf32> -> vector<8x10xf32>
    %301 = arith.addf %293, %300 : vector<8x10xf32>
    %302 = arith.negf %301 : vector<8x10xf32>
    %303 = math.exp %302 : vector<8x10xf32>
    %cst_35 = arith.constant 1.000000e+00 : f32
    %304 = vector.broadcast %cst_35 : f32 to vector<8x10xf32>
    %305 = arith.addf %304, %303 : vector<8x10xf32>
    %306 = arith.divf %304, %305 : vector<8x10xf32>
    %c0_36 = arith.constant 0 : index
    %c0_37 = arith.constant 0 : index
    %307 = vector.load %arg6[%c0_36, %c0_37] : memref<8x10xf32, #tpu.memory_space<vmem>>, vector<8x10xf32>
    tpu.vector_store %arg6[%c0_36, %c0_37], %306 {strides = array<i32>} : memref<8x10xf32, #tpu.memory_space<vmem>>, vector<8x10xf32>,
    return
  }
  func.func @transform_0(%arg0: i32) -> i32 {
    %c0_i32 = arith.constant 0 : i32
    %c0_i32_0 = arith.constant 0 : i32
    return %c0_i32 : i32
  }
  func.func @transform_1(%arg0: i32) -> i32 {
    %c0_i32 = arith.constant 0 : i32
    %c0_i32_0 = arith.constant 0 : i32
    return %c0_i32 : i32
  }
  func.func @transform_2(%arg0: i32) -> (i32, i32) {
    %c0_i32 = arith.constant 0 : i32
    %c0_i32_0 = arith.constant 0 : i32
    return %arg0, %c0_i32 : i32, i32
  }
  func.func @transform_3(%arg0: i32) -> (i32, i32) {
    %c0_i32 = arith.constant 0 : i32
    %c0_i32_0 = arith.constant 0 : i32
    %c0_i32_1 = arith.constant 0 : i32
    return %c0_i32, %c0_i32_0 : i32, i32
  }
  func.func @transform_4(%arg0: i32) -> (i32, i32) {
    %c0_i32 = arith.constant 0 : i32
    %c0_i32_0 = arith.constant 0 : i32
    %c0_i32_1 = arith.constant 0 : i32
    return %c0_i32, %c0_i32_0 : i32, i32
  }
  func.func @transform_5(%arg0: i32) -> (i32, i32) {
    %c0_i32 = arith.constant 0 : i32
    %c0_i32_0 = arith.constant 0 : i32
    return %arg0, %c0_i32 : i32, i32
  }
}

</mosaic_0001>

<bundles_post_ra>
// kernel: cnn_forward.1
= control target key start
LH: loop header
LB: loop body
LE: loop exit
PB: predicated region body
PF: predicated region fallthrough
CT: control target
= control target key end

     0   :  { %10 = vsyncpa [#allocation3], 0  ;;  %s10004_s0 = inlined_call_operand.vmem [shape: f32[54], index: 0, kind: input, shape index: {}]   ;;  %s10005_s1 = inlined_call_operand.vmem [shape: f32[6], index: 1, kind: input, shape index: {}]   ;;  %s10006_s2 = inlined_call_operand.vmem [shape: f32[8,896], index: 2, kind: input, shape index: {}]   ;;  %s10007_s3 = inlined_call_operand.vmem [shape: f32[4368,10], index: 3, kind: input, shape index: {}]   ;;  %s10008_s4 = inlined_call_operand.vmem [shape: f32[1,10], index: 4, kind: input, shape index: {}]   ;;  %s10009_s5 = inlined_call_operand.vmem [shape: f32[8,10], index: 5, kind: output, shape index: {}]  }
   0x1   :  { %s18_s20 = sshll.u32 %s10004_s0, 4  ;;  %s19_s20 = int_to_ptr.vmem [resolvable:$true] %s18_s20 }
   0x2   :  { %11 = vsyncpa [#allocation5], 0  ;;  %s28_s23 = sshll.u32 %s10005_s1, 4  ;;  %s5732_s24 = scalar_lea.vmem %s19_s20, 16  ;;  %s29_s23 = int_to_ptr.vmem [resolvable:$true] %s28_s23 }
   0x3   :  { %p5733_p0 = scmp.ne.s32.totalorder %s19_s20, %s5732_s24  ;;  %p5737_p1 = scmp.lt.s32.totalorder %s19_s20, %s19_s20 }
   0x4   :  { %p5738_p2 = scmp.lt.s32.totalorder %s5732_s24, %s5732_s24 }
   0x6   :  { %p5739_p3 = por %p5738_p2, %p5737_p1 }
   0x8   :  { %p5740_p4 = pnand %p5739_p3, %p5733_p0 }
   0xa   :  { %5743 = shalt.err (!%p5740_p4)
}
   0xb   :  { %s5760_s25 = smov [#allocation2]   ;;  %s5744_s26 = scalar_lea.vmem %s29_s23, 16 }
   0xc   :  { %21 = dma.vmem_to_smem %s19_s20, 16, %s5760_s25, [#allocation3]  }
   0xd   :  { %p5745_p5 = scmp.ne.s32.totalorder %s29_s23, %s5744_s26  ;;  %p5749_p6 = scmp.lt.s32.totalorder %s29_s23, %s29_s23 }
   0xe   :  { %p5750_p7 = scmp.lt.s32.totalorder %s5744_s26, %s5744_s26 }
  0x10   :  { %p5751_p8 = por %p5750_p7, %p5749_p6 }
  0x12   :  { %p5752_p9 = pnand %p5751_p8, %p5745_p5 }
  0x14   :  { %5755 = shalt.err (!%p5752_p9)
}
  0x15   :  { %s5761_s0 = smov [#allocation4]  }
  0x16   :  { %31 = dma.vmem_to_smem %s29_s23, 16, %s5761_s0, [#allocation5]  }
  0x17   :  { %5756 = dma.done.wait [#allocation3], 16  }
  0x18   :  { %5757 = vsyncadd [#allocation3], 4294967280 }
  0x19   :  { %5758 = dma.done.wait [#allocation5], 16  }
  0x1a   :  { %5759 = vsyncadd [#allocation5], 4294967280 }
  0x1b   :  { %44 = sfence }
  0x1c   :  { %s4395_s1 = sld [smem:[#allocation2 + $0x1]]  ;;  %s4401_s27 = sld [smem:[#allocation2 + $0x2]]  ;;  %v5811_v0 = vld [vmem:[%s10006_s2 + $0x8] sm:$0xff]  ;;  %v5816_v1 = vld [vmem:[%s10006_s2] sm:$0xff]  ;;  %v5823_v3 = vld [vmem:[%s10006_s2 + $0x10] sm:$0xff]  ;;  %vm181_vm0 = vcmask 1039360  }
  0x1d   :  { %s4407_s9 = sld [smem:[#allocation2 + $0x3]]  ;;  %s5762_s10 = smov 127   ;;  %v2376_v25 = vld [vmem:[%s10007_s3 + $0x80] sm:$0xff]  ;;  %v2377_v26 = vld [vmem:[%s10007_s3 + $0x88] sm:$0xff]  ;;  %v2378_v34 = vld [vmem:[%s10007_s3 + $0x90] sm:$0xff]  ;;  %vm440_vm1 = vcmask 1031168  }
  0x1e   :  { %s4413_s11 = sld [smem:[#allocation2 + $0x4]]  ;;  %s5763_s12 = smov 126   ;;  %v4907_v27 = vpack.c.bf16 %v2377_v26, %v2376_v25  ;;  %v2360_v28 = vld [vmem:[%s10007_s3] sm:$0xff]  ;;  %v2361_v29 = vld [vmem:[%s10007_s3 + $0x8] sm:$0xff]  ;;  %v2379_v35 = vld [vmem:[%s10007_s3 + $0x98] sm:$0xff]  ;;  %vm699_vm2 = vcmask 818176  }
  0x1f   :  { %s4419_s13 = sld [smem:[#allocation2 + $0x5]]  ;;  %s5764_s14 = smov 100   ;;  %v4909_v32 = vpack.c.bf16 %v2361_v29, %v2360_v28  ;;  %v4911_v36 = vpack.c.bf16 %v2379_v35, %v2378_v34  ;;  %v2362_v37 = vld [vmem:[%s10007_s3 + $0x10] sm:$0xff]  ;;  %v2363_v38 = vld [vmem:[%s10007_s3 + $0x18] sm:$0xff]  ;;  %v2380_v43 = vld [vmem:[%s10007_s3 + $0xa0] sm:$0xff]  ;;  %v10012_v34 = vmov 0.0|0.0  }
  0x20   :  { %s4425_s15 = sld [smem:[#allocation2 + $0x6]]  ;;  %s5765_s16 = smov 99   ;;  %4908 = vmatprep.subr.bf16.mxu1 %v4907_v27  ;;  %v4913_v41 = vpack.c.bf16 %v2363_v38, %v2362_v37  ;;  %v2381_v44 = vld [vmem:[%s10007_s3 + $0xa8] sm:$0xff]  ;;  %v2364_v46 = vld [vmem:[%s10007_s3 + $0x20] sm:$0xff]  ;;  %v2382_v51 = vld [vmem:[%s10007_s3 + $0xb0] sm:$0xff]  ;;  %4971 = vmatprep.subr.bf16.mxu0 %v10012_v34  ;;  %vm958_vm3 = vcmask 809984  }
  0x21   :  { %s4431_s17 = sld [smem:[#allocation2 + $0x7]]  ;;  %s5766_s18 = smov 98   ;;  %4910 = vmatpush3.bf16.msra.mxu1 %v4909_v32  ;;  %v4915_v45 = vpack.c.bf16 %v2381_v44, %v2380_v43  ;;  %v2365_v47 = vld [vmem:[%s10007_s3 + $0x28] sm:$0xff]  ;;  %v2383_v52 = vld [vmem:[%s10007_s3 + $0xb8] sm:$0xff]  ;;  %v2366_v54 = vld [vmem:[%s10007_s3 + $0x30] sm:$0xff]  ;;  %vm1217_vm4 = vcmask 801792  }
  0x22   :  { %v5818_v2 = vstv %s4395_s1  ;;  %v5829_v6 = vstv %s4401_s27  ;;  %s4437_s19 = sld [smem:[#allocation2 + $0x8]]  ;;  %s5767_s1 = smov 72   ;;  %4912 = vmatprep.subr.bf16.mxu1 %v4911_v36  ;;  %v4917_v50 = vpack.c.bf16 %v2365_v47, %v2364_v46  ;;  %v4919_v53 = vpack.c.bf16 %v2383_v52, %v2382_v51  ;;  %v2367_v55 = vld [vmem:[%s10007_s3 + $0x38] sm:$0xff]  ;;  %v5960_v59 = vld [vmem:[%s10006_s2 + $0x20] sm:$0xff] }
  0x23   :  { %v158_v4 = vmul.f32 %v5818_v2, %v5811_v0  ;;  %v157_v5 = vmul.f32 %v5818_v2, %v5816_v1  ;;  %v159_v7 = vmul.f32 %v5818_v2, %v5823_v3  ;;  %v417_v8 = vmul.f32 %v5829_v6, %v5811_v0  ;;  %s5769_s6 = smov 70   ;;  %v5965_v60 = vld [vmem:[%s10006_s2 + $0x28] sm:$0xff]  ;;  %v2384_v61 = vld [vmem:[%s10007_s3 + $0xc0] sm:$0xff]  ;;  %v6030_v32 = vld [vmem:[%s10006_s2 + $0x18] sm:$0xff]  ;;  %s4396_s7 = sld [smem:[#allocation2 + $0xa]] }
  0x24   :  { %v418_v9 = vmul.f32 %v5829_v6, %v5823_v3  ;;  %v416_v10 = vmul.f32 %v5829_v6, %v5816_v1  ;;  %v5843_v11 = vstv %s4407_s9  ;;  %v5851_v14 = vstv %s4413_s11  ;;  %v2385_v62 = vld [vmem:[%s10007_s3 + $0xc8] sm:$0xff]  ;;  %v2372_v25 = vld [vmem:[%s10007_s3 + $0x60] sm:$0xff]  ;;  %s4402_s22 = sld [smem:[#allocation2 + $0xb]]  ;;  %s4408_s0 = sld [smem:[#allocation2 + $0xc]] }
  0x25   :  { %171 = vrot.lane.b32.xlu0 %v158_v4, %s5762_s10  ;;  %169 = vrot.lane.b32.xlu1 %v157_v5, %s5762_s10  ;;  %v676_v12 = vmul.f32 %v5843_v11, %v5811_v0  ;;  %v677_v13 = vmul.f32 %v5843_v11, %v5823_v3  ;;  %v675_v15 = vmul.f32 %v5843_v11, %v5816_v1  ;;  %v5865_v19 = vstv %s4419_s13  ;;  %v2368_v4 = vld [vmem:[%s10007_s3 + $0x40] sm:$0xff]  ;;  %s4414_s13 = sld [smem:[#allocation2 + $0xd]]  ;;  %s4420_s20 = sld [smem:[#allocation2 + $0xe]] }
  0x26   :  { %v935_v16 = vmul.f32 %v5851_v14, %v5811_v0  ;;  %v936_v17 = vmul.f32 %v5851_v14, %v5823_v3  ;;  %v934_v18 = vmul.f32 %v5851_v14, %v5816_v1  ;;  %v1194_v20 = vmul.f32 %v5865_v19, %v5811_v0  ;;  %4914 = vmatpush3.bf16.msra.mxu1 %v4913_v41  ;;  %v2369_v5 = vld [vmem:[%s10007_s3 + $0x48] sm:$0xff]  ;;  %v2390_v36 = vld [vmem:[%s10007_s3 + $0xf0] sm:$0xff]  ;;  %v2391_v37 = vld [vmem:[%s10007_s3 + $0xf8] sm:$0xff]  ;;  %s4426_s21 = sld [smem:[#allocation2 + $0xf]]  ;;  %s71_s23 = sld [smem:[#allocation2]] }
  0x27   :  { %v1195_v21 = vmul.f32 %v5865_v19, %v5823_v3  ;;  %v5873_v22 = vstv %s4425_s15  ;;  %v1193_v23 = vmul.f32 %v5865_v19, %v5816_v1  ;;  %v5899_v33 = vstv %s4431_s17  ;;  %4916 = vmatprep.subr.bf16.mxu1 %v4915_v45  ;;  %v2373_v26 = vld [vmem:[%s10007_s3 + $0x68] sm:$0xff]  ;;  %v2426_v45 = vld [vmem:[%s10007_s3 + $0x210] sm:$0xff]  ;;  %s4438_s24 = sld [smem:[#allocation2 + $0x11]]  ;;  %s53_s25 = sld [smem:[#allocation4]] }
  0x28   :  { %v1453_v24 = vmul.f32 %v5873_v22, %v5811_v0  ;;  %v1454_v30 = vmul.f32 %v5873_v22, %v5823_v3  ;;  %v1452_v31 = vmul.f32 %v5873_v22, %v5816_v1  ;;  %v1742_v39 = vmul.f32 %v5899_v33, %v5811_v0  ;;  %v2427_v46 = vld [vmem:[%s10007_s3 + $0x218] sm:$0xff]  ;;  %s6433_s26 = sld [smem:[#allocation2 + $0x13]]  ;;  %s6686_s29 = sld [smem:[#allocation2 + $0x16]] }
  0x29   :  { %173 = vrot.lane.b32.xlu0 %v159_v7, %s5762_s10  ;;  %430 = vrot.lane.b32.xlu1 %v417_v8, %s5763_s12  ;;  %v1743_v40 = vmul.f32 %v5899_v33, %v5823_v3  ;;  %v5919_v42 = vstv %s4437_s19  ;;  %s5768_s19 = smov 71   ;;  %v1741_v48 = vmul.f32 %v5899_v33, %v5816_v1  ;;  %v4921_v58 = vpack.c.bf16 %v2367_v55, %v2366_v54  ;;  %v2430_v54 = vld [vmem:[%s10007_s3 + $0x230] sm:$0xff]  ;;  %s4390_s28 = sld [smem:[#allocation2 + $0x9]] }
  0x2a   :  { %v2031_v49 = vmul.f32 %v5919_v42, %v5811_v0  ;;  %4918 = vmatpush3.bf16.msra.mxu1 %v4917_v50  ;;  %v2032_v56 = vmul.f32 %v5919_v42, %v5823_v3  ;;  %v2030_v57 = vmul.f32 %v5919_v42, %v5816_v1  ;;  %v4923_v63 = vpack.c.bf16 %v2385_v62, %v2384_v61  ;;  %v2429_v50 = vld [vmem:[%s10007_s3 + $0x228] sm:$0xff]  ;;  %v2431_v55 = vld [vmem:[%s10007_s3 + $0x238] sm:$0xff]  ;;  %v2432_v61 = vld [vmem:[%s10007_s3 + $0x240] sm:$0xff]  ;;  %s4385_s30 = sld [smem:[#allocation4 + $0x1]]  ;;  %s7211_s8 = sld [smem:[#allocation2 + $0x1c]] }
  0x2b   :  { %4920 = vmatprep.subr.bf16.mxu1 %v4919_v53  ;;  %v161_v7 = vmul.f32 %v5818_v2, %v5960_v59  ;;  %v162_v8 = vmul.f32 %v5818_v2, %v5965_v60  ;;  %v679_v27 = vmul.f32 %v5843_v11, %v5960_v59  ;;  %v680_v28 = vmul.f32 %v5843_v11, %v5965_v60  ;;  %v6080_v53 = vld [vmem:[%s10006_s2 + $0x30] sm:$0xff]  ;;  %v2433_v62 = vld [vmem:[%s10007_s3 + $0x248] sm:$0xff]  ;;  %s6839_s27 = sld [smem:[#allocation2 + $0x19]]  ;;  %s7833_s15 = sld [smem:[#allocation2 + $0x25]] }
  0x2c   :  { %v4933_v29 = vpack.c.bf16 %v2373_v26, %v2372_v25  ;;  %v4935_v38 = vpack.c.bf16 %v2391_v37, %v2390_v36  ;;  %v160_v41 = vmul.f32 %v5818_v2, %v6030_v32  ;;  %v938_v43 = vmul.f32 %v5851_v14, %v5960_v59  ;;  %v2443_v36 = vld [vmem:[%s10007_s3 + $0x298] sm:$0xff]  ;;  %s4428_s11 = sld [smem:[#allocation2 + $0x21]]  ;;  %s8783_s17 = sld [smem:[#allocation2 + $0x33]] }
  0x2d   :  { %432 = vrot.lane.b32.xlu0 %v418_v9, %s5763_s12  ;;  %428 = vrot.lane.b32.xlu1 %v416_v10, %s5763_s12  ;;  %v4925_v9 = vpack.c.bf16 %v2369_v5, %v2368_v4  ;;  %v2386_v10 = vld [vmem:[%s10007_s3 + $0xd0] sm:$0xff]  ;;  %v4975_v47 = vpack.c.bf16 %v2427_v46, %v2426_v45  ;;  %v939_v2 = vmul.f32 %v5851_v14, %v5965_v60  ;;  %v2447_v45 = vld [vmem:[%s10007_s3 + $0x2b8] sm:$0xff]  ;;  %vm1480_vm5 = vcmask 588800   ;;  %s8860_s9 = sld [smem:[#allocation2 + $0x35]] }
  0x2e   :  { %4922 = vmatpush3.bf16.msra.mxu1 %v4921_v58  ;;  %v1197_v52 = vmul.f32 %v5865_v19, %v5960_v59  ;;  %v1458_v58 = vmul.f32 %v5873_v22, %v6080_v53  ;;  %v678_v4 = vmul.f32 %v5843_v11, %v6030_v32  ;;  %v1456_v5 = vmul.f32 %v5873_v22, %v5960_v59 }
  0x2f   :  { %4924 = vmatprep.subr.bf16.mxu1 %v4923_v63  ;;  %v4984_v63 = vpack.c.bf16 %v2433_v62, %v2432_v61  ;;  %v1746_v11 = vmul.f32 %v5899_v33, %v5965_v60  ;;  %v2036_v25 = vmul.f32 %v5919_v42, %v6080_v53  ;;  %v6241_v62 = vstv %s4414_s13  ;;  %s8078_s13 = sld [smem:[#allocation2 + $0x2b]] }
  0x30   :  { %vm1769_vm6 = vcmask 580608   ;;  %vm2058_vm7 = vcmask 572416   ;;  %vm2451_vm8 = vcmask 719872   ;;  %vm4377_vm9 = vcmask 80896  }
  0x31   :  { %689 = vrot.lane.b32.xlu0 %v676_v12, %s5764_s14  ;;  %691 = vrot.lane.b32.xlu1 %v677_v13, %s5764_s14  ;;  %v2387_v12 = vld [vmem:[%s10007_s3 + $0xd8] sm:$0xff] }
  0x32   :  { %4926 = vmatpush3.bf16.msra.mxu1 %v4925_v9  ;;  %v4927_v13 = vpack.c.bf16 %v2387_v12, %v2386_v10  ;;  %v1747_v10 = vmul.f32 %v5899_v33, %v6080_v53  ;;  %v2436_v12 = vld [vmem:[%s10007_s3 + $0x260] sm:$0xff] }
  0x34   :  { %4928 = vmatprep.subr.bf16.mxu1 %v4927_v13  ;;  %v2437_v13 = vld [vmem:[%s10007_s3 + $0x268] sm:$0xff] }
  0x35   :  { %687 = vrot.lane.b32.xlu0 %v675_v15, %s5764_s14  ;;  %948 = vrot.lane.b32.xlu1 %v935_v16, %s5765_s16  ;;  %v2370_v15 = vld [vmem:[%s10007_s3 + $0x50] sm:$0xff]  ;;  %v2371_v16 = vld [vmem:[%s10007_s3 + $0x58] sm:$0xff] }
  0x39   :  { %950 = vrot.lane.b32.xlu0 %v936_v17, %s5765_s16  ;;  %946 = vrot.lane.b32.xlu1 %v934_v18, %s5765_s16  ;;  %v420_v17 = vmul.f32 %v5829_v6, %v5960_v59  ;;  %v421_v18 = vmul.f32 %v5829_v6, %v5965_v60 }
  0x3d   :  { %1207 = vrot.lane.b32.xlu0 %v1194_v20, %s5766_s18  ;;  %1209 = vrot.lane.b32.xlu1 %v1195_v21, %s5766_s18  ;;  %v4929_v20 = vpack.c.bf16 %v2371_v16, %v2370_v15  ;;  %v2388_v21 = vld [vmem:[%s10007_s3 + $0xe0] sm:$0xff]  ;;  %v4990_v15 = vpack.c.bf16 %v2437_v13, %v2436_v12  ;;  %v937_v16 = vmul.f32 %v5851_v14, %v6030_v32  ;;  %v2409_v14 = vld [vmem:[%s10007_s3 + $0x188] sm:$0xff] }
  0x3f   :  { %4930 = vmatpush3.bf16.msra.mxu1 %v4929_v20  ;;  %v2439_v20 = vld [vmem:[%s10007_s3 + $0x278] sm:$0xff] }
  0x41   :  { %1205 = vrot.lane.b32.xlu0 %v1193_v23, %s5766_s18  ;;  %1468 = vrot.lane.b32.xlu1 %v1453_v24, %s5767_s1  ;;  %v2389_v23 = vld [vmem:[%s10007_s3 + $0xe8] sm:$0xff] }
  0x42   :  { %v4931_v24 = vpack.c.bf16 %v2389_v23, %v2388_v21  ;;  %v2408_v23 = vld [vmem:[%s10007_s3 + $0x180] sm:$0xff] }
  0x43   :  { %v4939_v26 = vpack.c.bf16 %v2409_v14, %v2408_v23 }
  0x44   :  { %4932 = vmatprep.subr.bf16.mxu1 %v4931_v24  ;;  %v2035_v24 = vmul.f32 %v5919_v42, %v5965_v60 }
  0x45   :  { %1470 = vrot.lane.b32.xlu0 %v1454_v30, %s5767_s1  ;;  %1466 = vrot.lane.b32.xlu1 %v1452_v31, %s5767_s1  ;;  %v2424_v30 = vld [vmem:[%s10007_s3 + $0x200] sm:$0xff]  ;;  %v2425_v31 = vld [vmem:[%s10007_s3 + $0x208] sm:$0xff] }
  0x46   :  { %v4972_v35 = vpack.c.bf16 %v2425_v31, %v2424_v30  ;;  %4934 = vmatpush3.bf16.msra.mxu1 %v4933_v29  ;;  %v1196_v30 = vmul.f32 %v5865_v19, %v6030_v32  ;;  %v2034_v31 = vmul.f32 %v5919_v42, %v5960_v59 }
  0x47   :  { %4936 = vmatprep.subr.bf16.mxu1 %v4935_v38  ;;  %v1744_v38 = vmul.f32 %v5899_v33, %v6030_v32 }
  0x48   :  { %4973 = vmatpush1.bf16.msra.mxu0 %v4972_v35  ;;  %v2442_v35 = vld [vmem:[%s10007_s3 + $0x290] sm:$0xff] }
  0x49   :  { %1757 = vrot.lane.b32.xlu0 %v1742_v39, %s5768_s19  ;;  %1759 = vrot.lane.b32.xlu1 %v1743_v40, %s5768_s19  ;;  %v2374_v39 = vld [vmem:[%s10007_s3 + $0x70] sm:$0xff]  ;;  %v2375_v40 = vld [vmem:[%s10007_s3 + $0x78] sm:$0xff]  ;;  %v4999_v37 = vpack.c.bf16 %v2443_v36, %v2442_v35 }
  0x4a   :  { %v4937_v44 = vpack.c.bf16 %v2375_v40, %v2374_v39  ;;  %4974 = vmatprep.subr.bf16.mxu0 %v10012_v34  ;;  %v6179_v39 = vstv %s4396_s7  ;;  %v2444_v40 = vld [vmem:[%s10007_s3 + $0x2a0] sm:$0xff]  ;;  %s6924_s7 = sld [smem:[#allocation2 + $0x1a]] }
  0x4c   :  { %4938 = vmatpush3.bf16.msra.mxu1 %v4937_v44  ;;  %4976 = vmatpush1.bf16.msra.mxu0 %v4975_v47  ;;  %v2446_v44 = vld [vmem:[%s10007_s3 + $0x2b0] sm:$0xff]  ;;  %v201_v47 = vmul.f32 %v6179_v39, %v5816_v1 }
  0x4d   :  { %1755 = vrot.lane.b32.xlu0 %v1741_v48, %s5768_s19  ;;  %2046 = vrot.lane.b32.xlu1 %v2031_v49, %s5769_s6  ;;  %v419_v48 = vmul.f32 %v5829_v6, %v6030_v32  ;;  %v2428_v49 = vld [vmem:[%s10007_s3 + $0x220] sm:$0xff]  ;;  %v1198_v6 = vmul.f32 %v5865_v19, %v5965_v60  ;;  %v1455_v19 = vmul.f32 %v5873_v22, %v6030_v32 }
  0x4e   :  { %4977 = vmatprep.subr.bf16.mxu0 %v10012_v34  ;;  %v4978_v51 = vpack.c.bf16 %v2429_v50, %v2428_v49  ;;  %4940 = vmatprep.subr.bf16.mxu1 %v4939_v26  ;;  %v5005_v46 = vpack.c.bf16 %v2447_v45, %v2446_v44  ;;  %v2449_v49 = vld [vmem:[%s10007_s3 + $0x2c8] sm:$0xff] }
  0x50   :  { %4979 = vmatpush1.bf16.msra.mxu0 %v4978_v51 }
  0x51   :  { %2048 = vrot.lane.b32.xlu0 %v2032_v56, %s5769_s6  ;;  %2044 = vrot.lane.b32.xlu1 %v2030_v57, %s5769_s6  ;;  %v4981_v56 = vpack.c.bf16 %v2431_v55, %v2430_v54  ;;  %v1457_v57 = vmul.f32 %v5873_v22, %v5965_v60  ;;  %v2033_v22 = vmul.f32 %v5919_v42, %v6030_v32 }
  0x52   :  { %4980 = vmatprep.subr.bf16.mxu0 %v10012_v34  ;;  %v203_v42 = vmul.f32 %v6179_v39, %v5823_v3 }
  0x54   :  { %4982 = vmatpush1.bf16.msra.mxu0 %v4981_v56  ;;  %v2450_v56 = vld [vmem:[%s10007_s3 + $0x2d0] sm:$0xff] }
  0x55   :  { %177 = vrot.lane.b32.xlu0 %v161_v7, %s5762_s10  ;;  %179 = vrot.lane.b32.xlu1 %v162_v8, %s5762_s10  ;;  %v2434_v7 = vld [vmem:[%s10007_s3 + $0x250] sm:$0xff]  ;;  %v2435_v8 = vld [vmem:[%s10007_s3 + $0x258] sm:$0xff] }
  0x56   :  { %4983 = vmatprep.subr.bf16.mxu0 %v10012_v34  ;;  %v4987_v9 = vpack.c.bf16 %v2435_v8, %v2434_v7  ;;  %v980_v7 = vmul.f32 %v6241_v62, %v5823_v3  ;;  %v6251_v8 = vstv %s4420_s20  ;;  %s7299_s20 = sld [smem:[#allocation2 + $0x1e]] }
  0x57   :  { %v1238_v12 = vmul.f32 %v6251_v8, %v5811_v0 }
  0x58   :  { %4985 = vmatpush1.bf16.msra.mxu0 %v4984_v63 }
  0x59   :  { %436 = vrot.lane.b32.xlu0 %v420_v17, %s5763_s12  ;;  %438 = vrot.lane.b32.xlu1 %v421_v18, %s5763_s12  ;;  %v1745_v17 = vmul.f32 %v5899_v33, %v5960_v59  ;;  %v2438_v18 = vld [vmem:[%s10007_s3 + $0x270] sm:$0xff]  ;;  %v202_v33 = vmul.f32 %v6179_v39, %v5811_v0 }
  0x5a   :  { %4986 = vmatprep.subr.bf16.mxu0 %v10012_v34  ;;  %v4993_v21 = vpack.c.bf16 %v2439_v20, %v2438_v18  ;;  %v6269_v18 = vstv %s4426_s21  ;;  %s8134_s21 = sld [smem:[#allocation2 + $0x2c]] }
  0x5b   :  { %v1502_v23 = vmul.f32 %v6269_v18, %v5811_v0  ;;  %v1503_v14 = vmul.f32 %v6269_v18, %v5823_v3 }
  0x5c   :  { %4988 = vmatpush1.bf16.msra.mxu0 %v4987_v9 }
  0x5d   :  { %695 = vrot.lane.b32.xlu0 %v679_v27, %s5764_s14  ;;  %697 = vrot.lane.b32.xlu1 %v680_v28, %s5764_s14  ;;  %v2440_v27 = vld [vmem:[%s10007_s3 + $0x280] sm:$0xff]  ;;  %v2441_v28 = vld [vmem:[%s10007_s3 + $0x288] sm:$0xff] }
  0x5e   :  { %4989 = vmatprep.subr.bf16.mxu0 %v10012_v34  ;;  %v4996_v29 = vpack.c.bf16 %v2441_v28, %v2440_v27  ;;  %v1501_v27 = vmul.f32 %v6269_v18, %v5816_v1 }
  0x60   :  { %4991 = vmatpush1.bf16.msra.mxu0 %v4990_v15 }
  0x61   :  { %175 = vrot.lane.b32.xlu0 %v160_v41, %s5762_s10  ;;  %954 = vrot.lane.b32.xlu1 %v938_v43, %s5765_s16  ;;  %v2445_v41 = vld [vmem:[%s10007_s3 + $0x2a8] sm:$0xff] }
  0x62   :  { %4992 = vmatprep.subr.bf16.mxu0 %v10012_v34  ;;  %v5002_v43 = vpack.c.bf16 %v2445_v41, %v2444_v40 }
  0x64   :  { %4994 = vmatpush1.bf16.msra.mxu0 %v4993_v21 }
  0x65   :  { %956 = vrot.lane.b32.xlu0 %v939_v2, %s5765_s16  ;;  %434 = vrot.lane.b32.xlu1 %v419_v48, %s5763_s12  ;;  %v6207_v2 = vstv %s4402_s22  ;;  %v2448_v48 = vld [vmem:[%s10007_s3 + $0x2c0] sm:$0xff]  ;;  %s4432_s22 = sld [smem:[#allocation2 + $0x10]] }
  0x66   :  { %4995 = vmatprep.subr.bf16.mxu0 %v10012_v34  ;;  %v5008_v50 = vpack.c.bf16 %v2449_v49, %v2448_v48  ;;  %v461_v51 = vmul.f32 %v6207_v2, %v5811_v0  ;;  %v460_v54 = vmul.f32 %v6207_v2, %v5816_v1  ;;  %v205_v49 = vmul.f32 %v6179_v39, %v5960_v59 }
  0x68   :  { %4997 = vmatpush1.bf16.msra.mxu0 %v4996_v29 }
  0x69   :  { %1213 = vrot.lane.b32.xlu0 %v1197_v52, %s5766_s18  ;;  %1215 = vrot.lane.b32.xlu1 %v1198_v6, %s5766_s18  ;;  %v462_v52 = vmul.f32 %v6207_v2, %v5823_v3  ;;  %v6222_v6 = vstv %s4408_s0  ;;  %s6435_s0 = sld [smem:[#allocation2 + $0x14]] }
  0x6a   :  { %4998 = vmatprep.subr.bf16.mxu0 %v10012_v34  ;;  %v720_v55 = vmul.f32 %v6222_v6, %v5811_v0  ;;  %v719_v61 = vmul.f32 %v6222_v6, %v5816_v1 }
  0x6c   :  { %5000 = vmatpush1.bf16.msra.mxu0 %v4999_v37  ;;  %v6297_v37 = vstv %s4438_s24  ;;  %s6590_s24 = sld [smem:[#allocation2 + $0x15]] }
  0x6d   :  { %1476 = vrot.lane.b32.xlu0 %v1457_v57, %s5767_s1  ;;  %1478 = vrot.lane.b32.xlu1 %v1458_v58, %s5767_s1  ;;  %v10010_v57 = vmov 0.0   ;;  %v721_v58 = vmul.f32 %v6222_v6, %v5823_v3 }
  0x6e   :  { %5001 = vmatprep.subr.bf16.mxu0 %v10012_v34 }
  0x70   :  { %5003 = vmatpush1.bf16.msra.mxu0 %v5002_v43  ;;  %v6305_v43 = vstv %s53_s25  ;;  %s7973_s25 = sld [smem:[#allocation2 + $0x29]] }
  0x71   :  { %693 = vrot.lane.b32.xlu0 %v678_v4, %s5764_s14  ;;  %1474 = vrot.lane.b32.xlu1 %v1456_v5, %s5767_s1  ;;  %v979_v5 = vmul.f32 %v6241_v62, %v5811_v0 }
  0x72   :  { %5004 = vmatprep.subr.bf16.mxu0 %v10012_v34 }
  0x74   :  { %5006 = vmatpush1.bf16.msra.mxu0 %v5005_v46 }
  0x75   :  { %1765 = vrot.lane.b32.xlu0 %v1746_v11, %s5768_s19  ;;  %1767 = vrot.lane.b32.xlu1 %v1747_v10, %s5768_s19  ;;  %v978_v10 = vmul.f32 %v6241_v62, %v5816_v1 }
  0x76   :  { %5007 = vmatprep.subr.bf16.mxu0 %v10012_v34 }
  0x78   :  { %5009 = vmatpush1.bf16.msra.mxu0 %v5008_v50 }
  0x79   :  { %952 = vrot.lane.b32.xlu0 %v937_v16, %s5765_s16  ;;  %1763 = vrot.lane.b32.xlu1 %v1745_v17, %s5768_s19  ;;  %v1239_v16 = vmul.f32 %v6251_v8, %v5823_v3  ;;  %v1237_v17 = vmul.f32 %v6251_v8, %v5816_v1 }
  0x7a   :  { %2647 = vmatprep.subr.mxu0 %v10010_v57 }
  0x7c   :  { %2648 = vmatpush1.msra.mxu0 %v2450_v56 }
  0x7d   :  { %2054 = vrot.lane.b32.xlu0 %v2035_v24, %s5769_s6  ;;  %2056 = vrot.lane.b32.xlu1 %v2036_v25, %s5769_s6  ;;  %v6279_v24 = vstv %s4432_s22  ;;  %s7241_s22 = sld [smem:[#allocation2 + $0x1d]] }
  0x7e   :  { %5074 = vmatprep.subr.bf16.mxu0 %v10012_v34  ;;  %v1791_v28 = vmul.f32 %v6279_v24, %v5811_v0  ;;  %v1792_v35 = vmul.f32 %v6279_v24, %v5823_v3  ;;  %v1790_v36 = vmul.f32 %v6279_v24, %v5816_v1 }
  0x81   :  { %1211 = vrot.lane.b32.xlu0 %v1196_v30, %s5766_s18  ;;  %2052 = vrot.lane.b32.xlu1 %v2034_v31, %s5769_s6  ;;  %v6289_v31 = vstv %s71_s23 }
  0x85   :  { %1472 = vrot.lane.b32.xlu0 %v1455_v19, %s5767_s1  ;;  %1761 = vrot.lane.b32.xlu1 %v1744_v38, %s5768_s19  ;;  %v73_v19 = vmul.f32 %v6289_v31, %v5816_v1  ;;  %v74_v38 = vmul.f32 %v6289_v31, %v5811_v0 }
  0x87   :  { %v79_v44 = vadd.f32 %v73_v19, %v6305_v43  ;;  %v80_v45 = vadd.f32 %v74_v38, %v6305_v43 }
  0x89   :  { %2050 = vrot.lane.b32.xlu0 %v2033_v22, %s5769_s6  ;;  %215 = vrot.lane.b32.xlu1 %v202_v33, %s5762_s10  ;;  %v2080_v22 = vmul.f32 %v6297_v37, %v5811_v0  ;;  %v2081_v33 = vmul.f32 %v6297_v37, %v5823_v3  ;;  %v2079_v0 = vmul.f32 %v6297_v37, %v5816_v1 }
  0x8a   :  { %v206_v1 = vmul.f32 %v6179_v39, %v5965_v60 }
  0x8d   :  { %217 = vrot.lane.b32.xlu0 %v203_v42, %s5762_s10  ;;  %213 = vrot.lane.b32.xlu1 %v201_v47, %s5762_s10 }
  0x91   :  { %474 = vrot.lane.b32.xlu0 %v461_v51, %s5763_s12  ;;  %476 = vrot.lane.b32.xlu1 %v462_v52, %s5763_s12 }
  0x95   :  { %472 = vrot.lane.b32.xlu0 %v460_v54, %s5763_s12  ;;  %733 = vrot.lane.b32.xlu1 %v720_v55, %s5764_s14 }
  0x97   :  { %v6243_v63 = vpop.permute.xlu0 %171  ;;  %v170_v4 = vpop.permute.xlu1 %169 }
  0x98   :  { %v182_v47 = vsel %vm181_vm0, %v170_v4, %v6243_v63 }
  0x99   :  { %735 = vrot.lane.b32.xlu0 %v721_v58, %s5764_s14  ;;  %731 = vrot.lane.b32.xlu1 %v719_v61, %s5764_s14  ;;  %v193_v52 = vadd.f32 %v182_v47, %v79_v44 }
  0x9b   :  { %v6253_v9 = vpop.permute.xlu0 %173  ;;  %v431_v11 = vpop.permute.xlu1 %430 }
  0x9c   :  { %v183_v48 = vsel %vm181_vm0, %v6243_v63, %v6253_v9 }
  0x9d   :  { %992 = vrot.lane.b32.xlu0 %v979_v5, %s5765_s16  ;;  %994 = vrot.lane.b32.xlu1 %v980_v7, %s5765_s16  ;;  %v194_v54 = vadd.f32 %v183_v48, %v80_v45  ;;  %v464_v5 = vmul.f32 %v6207_v2, %v5960_v59  ;;  %v982_v45 = vmul.f32 %v6241_v62, %v5960_v59 }
  0x9f   :  { %v6261_v13 = vpop.permute.xlu0 %432  ;;  %v429_v15 = vpop.permute.xlu1 %428 }
  0xa0   :  { %v442_v50 = vsel %vm440_vm1, %v431_v11, %v6261_v13  ;;  %v441_v51 = vsel %vm440_vm1, %v429_v15, %v431_v11 }
  0xa1   :  { %990 = vrot.lane.b32.xlu0 %v978_v10, %s5765_s16  ;;  %1251 = vrot.lane.b32.xlu1 %v1238_v12, %s5766_s18  ;;  %v453_v63 = vadd.f32 %v442_v50, %v194_v54  ;;  %v452_v4 = vadd.f32 %v441_v51, %v193_v52  ;;  %v983_v50 = vmul.f32 %v6241_v62, %v5965_v60 }
  0xa2   :  { %v1241_v54 = vmul.f32 %v6251_v8, %v5960_v59 }
  0xa3   :  { %v690_v20 = vpop.permute.xlu0 %689  ;;  %v6271_v21 = vpop.permute.xlu1 %691 }
  0xa4   :  { %v701_v58 = vsel %vm699_vm2, %v690_v20, %v6271_v21 }
  0xa5   :  { %1253 = vrot.lane.b32.xlu0 %v1239_v16, %s5766_s18  ;;  %1249 = vrot.lane.b32.xlu1 %v1237_v17, %s5766_s18  ;;  %v712_v10 = vadd.f32 %v701_v58, %v453_v63  ;;  %v1242_v63 = vmul.f32 %v6251_v8, %v5965_v60 }
  0xa7   :  { %v688_v25 = vpop.permute.xlu0 %687  ;;  %v949_v26 = vpop.permute.xlu1 %948 }
  0xa8   :  { %v700_v61 = vsel %vm699_vm2, %v688_v25, %v690_v20 }
  0xa9   :  { %1517 = vrot.lane.b32.xlu0 %v1502_v23, %s5767_s1  ;;  %1519 = vrot.lane.b32.xlu1 %v1503_v14, %s5767_s1  ;;  %v711_v12 = vadd.f32 %v700_v61, %v452_v4  ;;  %v465_v23 = vmul.f32 %v6207_v2, %v5965_v60  ;;  %v1506_v4 = vmul.f32 %v6269_v18, %v5965_v60 }
  0xab   :  { %v6287_v29 = vpop.permute.xlu0 %950  ;;  %v947_v30 = vpop.permute.xlu1 %946 }
  0xac   :  { %v960_v7 = vsel %vm958_vm3, %v949_v26, %v6287_v29  ;;  %v959_v11 = vsel %vm958_vm3, %v947_v30, %v949_v26  ;;  %v723_v26 = vmul.f32 %v6222_v6, %v5960_v59 }
  0xad   :  { %1515 = vrot.lane.b32.xlu0 %v1501_v27, %s5767_s1  ;;  %1806 = vrot.lane.b32.xlu1 %v1791_v28, %s5768_s19  ;;  %v971_v14 = vadd.f32 %v960_v7, %v712_v10  ;;  %v970_v25 = vadd.f32 %v959_v11, %v711_v12  ;;  %v1507_v11 = vmul.f32 %v6269_v18, %v6080_v53 }
  0xae   :  { %v1505_v10 = vmul.f32 %v6269_v18, %v5960_v59 }
  0xaf   :  { %v1208_v40 = vpop.permute.xlu0 %1207  ;;  %v6303_v41 = vpop.permute.xlu1 %1209 }
  0xb0   :  { %v1219_v17 = vsel %vm1217_vm4, %v1208_v40, %v6303_v41 }
  0xb1   :  { %1808 = vrot.lane.b32.xlu0 %v1792_v35, %s5768_s19  ;;  %1804 = vrot.lane.b32.xlu1 %v1790_v36, %s5768_s19  ;;  %v1230_v30 = vadd.f32 %v1219_v17, %v971_v14  ;;  %v1795_v17 = vmul.f32 %v6279_v24, %v5965_v60 }
  0xb3   :  { %v1206_v46 = vpop.permute.xlu0 %1205  ;;  %v1469_v42 = vpop.permute.xlu1 %1468 }
  0xb4   :  { %v1218_v20 = vsel %vm1217_vm4, %v1206_v46, %v1208_v40 }
  0xb5   :  { %2095 = vrot.lane.b32.xlu0 %v2080_v22, %s5769_s6  ;;  %2097 = vrot.lane.b32.xlu1 %v2081_v33, %s5769_s6  ;;  %v1229_v35 = vadd.f32 %v1218_v20, %v970_v25  ;;  %v724_v22 = vmul.f32 %v6222_v6, %v5965_v60  ;;  %v1796_v20 = vmul.f32 %v6279_v24, %v6080_v53 }
  0xb7   :  { %v6329_v55 = vpop.permute.xlu0 %1470  ;;  %v1467_v56 = vpop.permute.xlu1 %1466 }
  0xb8   :  { %v1482_v27 = vsel %vm1480_vm5, %v1469_v42, %v6329_v55  ;;  %v1481_v28 = vsel %vm1480_vm5, %v1467_v56, %v1469_v42 }
  0xb9   :  { %2093 = vrot.lane.b32.xlu0 %v2079_v0, %s5769_s6  ;;  %221 = vrot.lane.b32.xlu1 %v205_v49, %s5762_s10  ;;  %v1494_v33 = vadd.f32 %v1482_v27, %v1230_v30  ;;  %v1493_v44 = vadd.f32 %v1481_v28, %v1229_v35  ;;  %v1794_v28 = vmul.f32 %v6279_v24, %v5960_v59 }
  0xba   :  { %v2084_v30 = vmul.f32 %v6297_v37, %v5965_v60 }
  0xbb   :  { %v1758_v15 = vpop.permute.xlu0 %1757  ;;  %v6343_v16 = vpop.permute.xlu1 %1759 }
  0xbc   :  { %v1771_v38 = vsel %vm1769_vm6, %v1758_v15, %v6343_v16 }
  0xbd   :  { %223 = vrot.lane.b32.xlu0 %v206_v1, %s5762_s10  ;;  %480 = vrot.lane.b32.xlu1 %v464_v5, %s5763_s12  ;;  %v1783_v46 = vadd.f32 %v1771_v38, %v1494_v33  ;;  %v2085_v38 = vmul.f32 %v6297_v37, %v6080_v53  ;;  %v204_v53 = vmul.f32 %v6179_v39, %v6030_v32 }
  0xbe   :  { %v76_v39 = vmul.f32 %v6289_v31, %v6030_v32 }
  0xbf   :  { %v1756_v36 = vpop.permute.xlu0 %1755  ;;  %v2047_v19 = vpop.permute.xlu1 %2046 }
  0xc0   :  { %v1770_v40 = vsel %vm1769_vm6, %v1756_v36, %v1758_v15 }
  0xc1   :  { %482 = vrot.lane.b32.xlu0 %v465_v23, %s5763_s12  ;;  %739 = vrot.lane.b32.xlu1 %v723_v26, %s5764_s14  ;;  %v1782_v42 = vadd.f32 %v1770_v40, %v1493_v44  ;;  %v2083_v40 = vmul.f32 %v6297_v37, %v5960_v59 }
  0xc3   :  { %v6366_v47 = vpop.permute.xlu0 %2048  ;;  %v2045_v48 = vpop.permute.xlu1 %2044 }
  0xc4   :  { %v2060_v0 = vsel %vm2058_vm7, %v2047_v19, %v6366_v47  ;;  %v2059_v49 = vsel %vm2058_vm7, %v2045_v48, %v2047_v19 }
  0xc5   :  { %v2072_v51 = vadd.f32 %v2060_v0, %v1783_v46  ;;  %v2071_v52 = vadd.f32 %v2059_v49, %v1782_v42  ;;  %741 = vrot.lane.b32.xlu0 %v724_v22, %s5764_s14  ;;  %998 = vrot.lane.b32.xlu1 %v982_v45, %s5765_s16  ;;  %v78_v22 = vmul.f32 %v6289_v31, %v5965_v60  ;;  %v2392_v60 = vld [vmem:[%s10007_s3 + $0x100] sm:$0xff]  ;;  %v2393_v46 = vld [vmem:[%s10007_s3 + $0x108] sm:$0xff] }
  0xc6   :  { %v463_v45 = vmul.f32 %v6207_v2, %v6030_v32  ;;  %v77_v42 = vmul.f32 %v6289_v31, %v5960_v59  ;;  %v75_v0 = vmul.f32 %v6289_v31, %v5823_v3  ;;  %v2411_v59 = vld [vmem:[%s10007_s3 + $0x198] sm:$0xff]  ;;  %v722_v3 = vmul.f32 %v6222_v6, %v6030_v32 }
  0xc7   :  { %v4445_v56 = vmul.f32 -1.442695, %v2072_v51  ;;  %v4444_v58 = vmul.f32 -1.442695, %v2071_v52  ;;  %v6377_v61 = vpop.permute.xlu0 %177  ;;  %v6379_v1 = vpop.permute.xlu1 %179  ;;  %v84_v48 = vadd.f32 %v78_v22, %v6305_v43  ;;  %v4941_v52 = vpack.c.bf16 %v2393_v46, %v2392_v60 }
  0xc8   :  { %v981_v31 = vmul.f32 %v6241_v62, %v6030_v32  ;;  %v6481_v6 = vadd.f32 %v75_v0, %v6305_v43  ;;  %v6484_v62 = vadd.f32 %v76_v39, %v6305_v43  ;;  %v2415_v0 = vld [vmem:[%s10007_s3 + $0x1b8] sm:$0xff] }
  0xc9   :  { %5554 = vpow2.f32 %v4444_v58  ;;  %1000 = vrot.lane.b32.xlu0 %v983_v50, %s5765_s16  ;;  %1257 = vrot.lane.b32.xlu1 %v1241_v54, %s5766_s18  ;;  %v2410_v50 = vld [vmem:[%s10007_s3 + $0x190] sm:$0xff]  ;;  %v2395_v58 = vld [vmem:[%s10007_s3 + $0x118] sm:$0xff] }
  0xca   :  { %5556 = vpow2.f32 %v4445_v56  ;;  %v2394_v56 = vld [vmem:[%s10007_s3 + $0x110] sm:$0xff] }
  0xcb   :  { %v6387_v5 = vpop.permute.xlu0 %436  ;;  %v6389_v7 = vpop.permute.xlu1 %438 }
  0xcc   :  { %v445_v22 = vsel %vm440_vm1, %v6387_v5, %v6389_v7 }
  0xcd   :  { %1259 = vrot.lane.b32.xlu0 %v1242_v63, %s5766_s18  ;;  %1525 = vrot.lane.b32.xlu1 %v1506_v4, %s5767_s1  ;;  %v4943_v63 = vpack.c.bf16 %v2411_v59, %v2410_v50  ;;  %v83_v4 = vadd.f32 %v77_v42, %v6305_v43  ;;  %v6503_v43 = vstv %s6435_s0  ;;  %v6558_v50 = vld [vmem:[%s10006_s2] sm:$0xff]  ;;  %s4421_s0 = sld [smem:[#allocation2 + $0x17]] }
  0xcf   :  { %v6397_v12 = vpop.permute.xlu0 %695  ;;  %v6399_v15 = vpop.permute.xlu1 %697 }
  0xd0   :  { %v704_v39 = vsel %vm699_vm2, %v6397_v12, %v6399_v15 }
  0xd1   :  { %1527 = vrot.lane.b32.xlu0 %v1507_v11, %s5767_s1  ;;  %1523 = vrot.lane.b32.xlu1 %v1505_v10, %s5767_s1  ;;  %v198_v11 = vadd.f32 %v6379_v1, %v84_v48  ;;  %v6531_v48 = vld [vmem:[%s10006_s2 + $0x8] sm:$0xff] }
  0xd3   :  { %v5555_v23 = vpop.eup %5554  ;;  %v6407_v14 = vpop.permute.xlu0 %175 }
  0xd4   :  { %v6409_v25 = vpop.permute.xlu1 %954  ;;  %v5557_v26 = vpop.eup %5556  ;;  %v2342_v27 = vadd.f32 1.0, %v5555_v23  ;;  %v2413_v23 = vld [vmem:[%s10007_s3 + $0x1a8] sm:$0xff] }
  0xd5   :  { %1814 = vrot.lane.b32.xlu0 %v1795_v17, %s5768_s19  ;;  %1816 = vrot.lane.b32.xlu1 %v1796_v20, %s5768_s19  ;;  %v2343_v35 = vadd.f32 1.0, %v5557_v26  ;;  %v2412_v20 = vld [vmem:[%s10007_s3 + $0x1a0] sm:$0xff]  ;;  %v186_v26 = vsel %vm181_vm0, %v6377_v61, %v6379_v1 }
  0xd6   :  { %5558 = vrcp.f32 %v2342_v27  ;;  %v6500_v27 = vstv %s6433_s26  ;;  %v2396_v1 = vld [vmem:[%s10007_s3 + $0x120] sm:$0xff]  ;;  %s8666_s26 = sld [smem:[#allocation2 + $0x2f]] }
  0xd7   :  { %v6417_v36 = vpop.permute.xlu0 %956  ;;  %5560 = vrcp.f32 %v2343_v35  ;;  %v1240_v35 = vmul.f32 %v6251_v8, %v6030_v32  ;;  %v2082_v8 = vmul.f32 %v6297_v37, %v6030_v32  ;;  %v2414_v37 = vld [vmem:[%s10007_s3 + $0x1b0] sm:$0xff]  ;;  %v6562_v59 = vmul.f32 %v6558_v50, %v6500_v27 }
  0xd8   :  { %v6419_v19 = vpop.permute.xlu1 %434 }
  0xd9   :  { %1812 = vrot.lane.b32.xlu0 %v1794_v28, %s5768_s19  ;;  %2103 = vrot.lane.b32.xlu1 %v2084_v30, %s5769_s6  ;;  %v4945_v28 = vpack.c.bf16 %v2395_v58, %v2394_v56  ;;  %v457_v30 = vadd.f32 %v6389_v7, %v198_v11  ;;  %v6535_v7 = vmul.f32 %v6531_v48, %v6500_v27 }
  0xda   :  { %v184_v58 = vsel %vm181_vm0, %v6253_v9, %v6407_v14  ;;  %v4951_v11 = vpack.c.bf16 %v2415_v0, %v2414_v37 }
  0xdb   :  { %v6429_v33 = vpop.permute.xlu0 %1213  ;;  %v716_v60 = vadd.f32 %v6399_v15, %v457_v30  ;;  %v2399_v15 = vld [vmem:[%s10007_s3 + $0x138] sm:$0xff] }
  0xdc   :  { %v6431_v44 = vpop.permute.xlu1 %1215 }
  0xdd   :  { %2105 = vrot.lane.b32.xlu0 %v2085_v38, %s5769_s6  ;;  %2101 = vrot.lane.b32.xlu1 %v2083_v40, %s5769_s6  ;;  %v1504_v38 = vmul.f32 %v6269_v18, %v6030_v32  ;;  %v2397_v40 = vld [vmem:[%s10007_s3 + $0x128] sm:$0xff]  ;;  %v4947_v18 = vpack.c.bf16 %v2413_v23, %v2412_v20  ;;  %v2416_v20 = vld [vmem:[%s10007_s3 + $0x1c0] sm:$0xff] }
  0xdf   :  { %v6456_v2 = vpop.permute.xlu0 %1476 }
  0xe0   :  { %v6458_v49 = vpop.permute.xlu1 %1478  ;;  %v5559_v51 = vpop.eup %5558 }
  0xe1   :  { %v5561_v54 = vpop.eup %5560  ;;  %219 = vrot.lane.b32.xlu0 %v204_v53, %s5762_s10  ;;  %478 = vrot.lane.b32.xlu1 %v463_v45, %s5763_s12  ;;  %v1793_v53 = vmul.f32 %v6279_v24, %v6030_v32  ;;  %v197_v45 = vadd.f32 %v186_v26, %v83_v4  ;;  %v6540_v32 = vld [vmem:[%s10006_s2 + $0x10] sm:$0xff]  ;;  %v1486_v4 = vsel %vm1480_vm5, %v6456_v2, %v6458_v49  ;;  %v2417_v49 = vld [vmem:[%s10007_s3 + $0x1c8] sm:$0xff] }
  0xe2   :  { %2519 = vmatprep.mubr.f32.mxu1 %v5561_v54  ;;  %v6544_v24 = vmul.f32 %v6540_v32, %v6500_v27  ;;  %v2398_v54 = vld [vmem:[%s10007_s3 + $0x130] sm:$0xff]  ;;  %v6579_v56 = vmul.f32 %v6540_v32, %v6503_v43 }
  0xe3   :  { %2520 = vmatmul.mubr.f32.vlgmr.msra.gmra.mrb[0].mxu1 %v5559_v51  ;;  %v6486_v10 = vpop.permute.xlu0 %693  ;;  %v6566_v51 = vmul.f32 %v6531_v48, %v6503_v43  ;;  %v4953_v30 = vpack.c.bf16 %v2399_v15, %v2398_v54 }
  0xe4   :  { %v6488_v17 = vpop.permute.xlu1 %1474  ;;  %4942 = vmatpush3.bf16.msra.mxu1 %v4941_v52  ;;  %v4949_v52 = vpack.c.bf16 %v2397_v40, %v2396_v1  ;;  %v185_v1 = vsel %vm181_vm0, %v6407_v14, %v6377_v61  ;;  %v443_v40 = vsel %vm440_vm1, %v6261_v13, %v6419_v19  ;;  %v444_v13 = vsel %vm440_vm1, %v6419_v19, %v6387_v5  ;;  %v2419_v5 = vld [vmem:[%s10007_s3 + $0x1d8] sm:$0xff] }
  0xe5   :  { %737 = vrot.lane.b32.xlu0 %v722_v3, %s5764_s14  ;;  %996 = vrot.lane.b32.xlu1 %v981_v31, %s5765_s16  ;;  %v456_v3 = vadd.f32 %v445_v22, %v197_v45  ;;  %v975_v31 = vadd.f32 %v6417_v36, %v716_v60  ;;  %v1222_v22 = vsel %vm1217_vm4, %v6429_v33, %v6431_v44 }
  0xe6   :  { %4944 = vmatprep.subr.bf16.mxu1 %v4943_v63  ;;  %v963_v63 = vsel %vm958_vm3, %v6409_v25, %v6417_v36  ;;  %v6600_v36 = vmul.f32 %v6558_v50, %v6503_v43  ;;  %v195_v45 = vadd.f32 %v184_v58, %v6481_v6  ;;  %v1485_v61 = vsel %vm1480_vm5, %v6488_v17, %v6456_v2 }
  0xe7   :  { %v6526_v46 = vpop.permute.xlu0 %1765  ;;  %v715_v23 = vadd.f32 %v704_v39, %v456_v3  ;;  %v1234_v26 = vadd.f32 %v6431_v44, %v975_v31  ;;  %v4955_v14 = vpack.c.bf16 %v2417_v49, %v2416_v20  ;;  %v702_v19 = vsel %vm699_vm2, %v6271_v21, %v6486_v10  ;;  %v2402_v21 = vld [vmem:[%s10007_s3 + $0x150] sm:$0xff] }
  0xe8   :  { %v1768_v42 = vpop.permute.xlu1 %1767  ;;  %4946 = vmatpush3.bf16.msra.mxu1 %v4945_v28  ;;  %v454_v6 = vadd.f32 %v443_v40, %v195_v45  ;;  %v703_v2 = vsel %vm699_vm2, %v6486_v10, %v6397_v12  ;;  %v2403_v12 = vld [vmem:[%s10007_s3 + $0x158] sm:$0xff]  ;;  %v6663_v58 = vstv %s6590_s24  ;;  %s8340_s24 = sld [smem:[#allocation4 + $0x3]] }
  0xe9   :  { %1255 = vrot.lane.b32.xlu0 %v1240_v35, %s5766_s18  ;;  %1521 = vrot.lane.b32.xlu1 %v1504_v38, %s5767_s1  ;;  %v2400_v35 = vld [vmem:[%s10007_s3 + $0x140] sm:$0xff]  ;;  %v2401_v38 = vld [vmem:[%s10007_s3 + $0x148] sm:$0xff]  ;;  %v974_v60 = vadd.f32 %v963_v63, %v715_v23  ;;  %v1498_v37 = vadd.f32 %v1486_v4, %v1234_v26  ;;  %v4961_v49 = vpack.c.bf16 %v2403_v12, %v2402_v21 }
  0xea   :  { %4948 = vmatprep.subr.bf16.mxu1 %v4947_v18  ;;  %v1775_v18 = vsel %vm1769_vm6, %v6526_v46, %v1768_v42  ;;  %v4957_v44 = vpack.c.bf16 %v2401_v38, %v2400_v35  ;;  %v196_v42 = vadd.f32 %v185_v1, %v6484_v62  ;;  %v713_v63 = vadd.f32 %v702_v19, %v454_v6  ;;  %v2420_v26 = vld [vmem:[%s10007_s3 + $0x1e0] sm:$0xff]  ;;  %v2718_v19 = vld [vmem:[%s10007_s3 + $0x358] sm:$0xff] }
  0xeb   :  { %v953_v9 = vpop.permute.xlu0 %952  ;;  %v1233_v0 = vadd.f32 %v1222_v22, %v974_v60  ;;  %v1787_v39 = vadd.f32 %v1775_v18, %v1498_v37  ;;  %v2423_v37 = vld [vmem:[%s10007_s3 + $0x1f8] sm:$0xff]  ;;  %v6739_v21 = vstv %s6686_s29  ;;  %s6778_s29 = sld [smem:[#allocation2 + $0x18]] }
  0xec   :  { %v6596_v28 = vpop.permute.xlu1 %1763  ;;  %4950 = vmatpush3.bf16.msra.mxu1 %v4949_v52  ;;  %v455_v15 = vadd.f32 %v444_v13, %v196_v42  ;;  %v961_v10 = vsel %vm958_vm3, %v6287_v29, %v953_v9  ;;  %v2421_v29 = vld [vmem:[%s10007_s3 + $0x1e8] sm:$0xff] }
  0xed   :  { %1810 = vrot.lane.b32.xlu0 %v1793_v53, %s5768_s19  ;;  %2099 = vrot.lane.b32.xlu1 %v2082_v8, %s5769_s6  ;;  %v2418_v8 = vld [vmem:[%s10007_s3 + $0x1d0] sm:$0xff]  ;;  %v1774_v62 = vsel %vm1769_vm6, %v6596_v28, %v6526_v46  ;;  %v1497_v3 = vadd.f32 %v1485_v61, %v1233_v0  ;;  %v962_v46 = vsel %vm958_vm3, %v953_v9, %v6409_v25  ;;  %v2407_v0 = vld [vmem:[%s10007_s3 + $0x178] sm:$0xff] }
  0xee   :  { %4952 = vmatprep.subr.bf16.mxu1 %v4951_v11  ;;  %v972_v35 = vadd.f32 %v961_v10, %v713_v63  ;;  %v4963_v40 = vpack.c.bf16 %v2421_v29, %v2420_v26 }
  0xef   :  { %v2055_v52 = vpop.permute.xlu0 %2054  ;;  %v1786_v4 = vadd.f32 %v1774_v62, %v1497_v3  ;;  %v762_v62 = vmul.f32 %v6558_v50, %v6663_v58 }
  0xf0   :  { %v2057_v53 = vpop.permute.xlu1 %2056  ;;  %4954 = vmatpush3.bf16.msra.mxu1 %v4953_v30 }
  0xf1   :  { %v2064_v54 = vsel %vm2058_vm7, %v2055_v52, %v2057_v53  ;;  %258 = vrot.lane.b32.xlu0 %v6535_v7, %s5762_s10  ;;  %260 = vrot.lane.b32.xlu1 %v6544_v24, %s5762_s10  ;;  %v4959_v7 = vpack.c.bf16 %v2419_v5, %v2418_v8  ;;  %v714_v24 = vadd.f32 %v703_v2, %v455_v15  ;;  %v2719_v2 = vld [vmem:[%s10007_s3 + $0x360] sm:$0xff] }
  0xf2   :  { %v2076_v31 = vadd.f32 %v2064_v54, %v1787_v39  ;;  %4956 = vmatprep.subr.bf16.mxu1 %v4955_v14  ;;  %v763_v14 = vmul.f32 %v6531_v48, %v6663_v58  ;;  %v5010_v12 = vpack.c.bf16 %v2719_v2, %v2718_v19 }
  0xf3   :  { %v1212_v20 = vpop.permute.xlu0 %1211  ;;  %v973_v38 = vadd.f32 %v962_v46, %v714_v24 }
  0xf4   :  { %v4449_v11 = vmul.f32 -1.442695, %v2076_v31  ;;  %v2053_v23 = vpop.permute.xlu1 %2052  ;;  %v1220_v25 = vsel %vm1217_vm4, %v6303_v41, %v1212_v20  ;;  %v1221_v9 = vsel %vm1217_vm4, %v1212_v20, %v6429_v33  ;;  %4958 = vmatpush3.bf16.msra.mxu1 %v4957_v44  ;;  %v2404_v41 = vld [vmem:[%s10007_s3 + $0x160] sm:$0xff]  ;;  %v2405_v33 = vld [vmem:[%s10007_s3 + $0x168] sm:$0xff] }
  0xf5   :  { %v2063_v30 = vsel %vm2058_vm7, %v2053_v23, %v2055_v52  ;;  %256 = vrot.lane.b32.xlu0 %v6562_v59, %s5762_s10  ;;  %517 = vrot.lane.b32.xlu1 %v6566_v51, %s5763_s12  ;;  %v1231_v22 = vadd.f32 %v1220_v25, %v972_v35  ;;  %v1232_v18 = vadd.f32 %v1221_v9, %v973_v38  ;;  %v2422_v51 = vld [vmem:[%s10007_s3 + $0x1f0] sm:$0xff]  ;;  %v6734_v31 = vld [vmem:[%s10006_s2 + $0x20] sm:$0xff] }
  0xf6   :  { %5562 = vpow2.f32 %v4449_v11  ;;  %v2075_v1 = vadd.f32 %v2063_v30, %v1786_v4  ;;  %4960 = vmatprep.subr.bf16.mxu1 %v4959_v7  ;;  %v4965_v44 = vpack.c.bf16 %v2405_v33, %v2404_v41  ;;  %v4967_v52 = vpack.c.bf16 %v2423_v37, %v2422_v51  ;;  %v6750_v11 = vld [vmem:[%s10006_s2 + $0x28] sm:$0xff]  ;;  %v2767_v51 = vld [vmem:[%s10007_s3 + $0x4e0] sm:$0xff] }
  0xf7   :  { %v1473_v60 = vpop.permute.xlu0 %1472  ;;  %v249_v20 = vmul.f32 %v6750_v11, %v6500_v27  ;;  %v1023_v30 = vmul.f32 %v6540_v32, %v6739_v21  ;;  %v508_v41 = vmul.f32 %v6750_v11, %v6503_v43  ;;  %v6776_v33 = vstv %s4421_s0  ;;  %s4412_s0 = sld [smem:[#allocation2 + $0x30]] }
  0xf8   :  { %v4448_v45 = vmul.f32 -1.442695, %v2075_v1  ;;  %v1762_v59 = vpop.permute.xlu1 %1761  ;;  %v1483_v13 = vsel %vm1480_vm5, %v6329_v55, %v1473_v60  ;;  %v1484_v61 = vsel %vm1480_vm5, %v1473_v60, %v6488_v17  ;;  %4962 = vmatpush3.bf16.msra.mxu1 %v4961_v49  ;;  %v764_v55 = vmul.f32 %v6540_v32, %v6663_v58  ;;  %v2406_v17 = vld [vmem:[%s10007_s3 + $0x170] sm:$0xff] }
  0xf9   :  { %v1495_v42 = vadd.f32 %v1483_v13, %v1231_v22  ;;  %v1496_v6 = vadd.f32 %v1484_v61, %v1232_v18  ;;  %519 = vrot.lane.b32.xlu0 %v6579_v56, %s5763_s12  ;;  %515 = vrot.lane.b32.xlu1 %v6600_v36, %s5763_s12  ;;  %v1772_v39 = vsel %vm1769_vm6, %v6343_v16, %v1762_v59 }
  0xfa   :  { %5564 = vpow2.f32 %v4448_v45  ;;  %v1773_v56 = vsel %vm1769_vm6, %v1762_v59, %v6596_v28  ;;  %4964 = vmatprep.subr.bf16.mxu1 %v4963_v40  ;;  %v4969_v54 = vpack.c.bf16 %v2407_v0, %v2406_v17  ;;  %v1021_v49 = vmul.f32 %v6558_v50, %v6739_v21  ;;  %v2766_v59 = vld [vmem:[%s10007_s3 + $0x4d8] sm:$0xff]  ;;  %v2768_v0 = vld [vmem:[%s10007_s3 + $0x4e8] sm:$0xff] }
  0xfb   :  { %v1784_v36 = vadd.f32 %v1772_v39, %v1495_v42  ;;  %v1785_v53 = vadd.f32 %v1773_v56, %v1496_v6  ;;  %v2051_v8 = vpop.permute.xlu0 %2050  ;;  %v507_v1 = vmul.f32 %v6734_v31, %v6503_v43  ;;  %v1281_v13 = vmul.f32 %v6531_v48, %v6776_v33  ;;  %v2769_v39 = vld [vmem:[%s10007_s3 + $0x4f0] sm:$0xff] }
  0xfc   :  { %v6716_v5 = vpop.permute.xlu1 %215  ;;  %v2061_v16 = vsel %vm2058_vm7, %v6366_v47, %v2051_v8  ;;  %v2062_v28 = vsel %vm2058_vm7, %v2051_v8, %v2053_v23  ;;  %4966 = vmatpush3.bf16.msra.mxu1 %v4965_v44  ;;  %v248_v47 = vmul.f32 %v6734_v31, %v6500_v27  ;;  %v1022_v23 = vmul.f32 %v6531_v48, %v6739_v21 }
  0xfd   :  { %v2073_v15 = vadd.f32 %v2061_v16, %v1784_v36  ;;  %v2074_v3 = vadd.f32 %v2062_v28, %v1785_v53  ;;  %776 = vrot.lane.b32.xlu0 %v763_v14, %s5764_s14  ;;  %778 = vrot.lane.b32.xlu1 %v764_v55, %s5764_s14  ;;  %v1282_v61 = vmul.f32 %v6540_v32, %v6776_v33  ;;  %v6801_v17 = vstv %s4390_s28  ;;  %v2770_v28 = vld [vmem:[%s10007_s3 + $0x4f8] sm:$0xff]  ;;  %s7535_s28 = sld [smem:[#allocation2 + $0x22]] }
  0xfe   :  { %4968 = vmatprep.subr.bf16.mxu1 %v4967_v52  ;;  %v5075_v6 = vpack.c.bf16 %v2767_v51, %v2766_v59  ;;  %v1280_v56 = vmul.f32 %v6558_v50, %v6776_v33  ;;  %v766_v52 = vmul.f32 %v6734_v31, %v6663_v58  ;;  %v6816_v36 = vstv %s6778_s29  ;;  %v2704_v51 = vld [vmem:[%s10007_s3 + $0x2e8] sm:$0xff]  ;;  %s7392_s29 = sld [smem:[#allocation2 + $0x1f]] }
  0xff   :  { %v4446_v46 = vmul.f32 -1.442695, %v2073_v15  ;;  %v4447_v7 = vmul.f32 -1.442695, %v2074_v3  ;;  %v6741_v63 = vpop.permute.xlu0 %217  ;;  %v88_v53 = vmul.f32 %v6531_v48, %v6801_v17  ;;  %v5078_v2 = vpack.c.bf16 %v2769_v39, %v2768_v0  ;;  %v2723_v0 = vld [vmem:[%s10007_s3 + $0x380] sm:$0xff] }
 0x100   :  { %v5563_v10 = vpop.eup %5562  ;;  %v6743_v24 = vpop.permute.xlu1 %213  ;;  %4970 = vmatpush3.bf16.msra.mxu1 %v4969_v54  ;;  %v6824_v16 = vstv %s4385_s30  ;;  %v767_v54 = vmul.f32 %v6750_v11, %v6663_v58  ;;  %v1550_v15 = vmul.f32 %v6531_v48, %v6816_v36  ;;  %v87_v3 = vmul.f32 %v6558_v50, %v6801_v17 }
 0x101   :  { %v2347_v4 = vadd.f32 1.0, %v5563_v10  ;;  %5566 = vpow2.f32 %v4446_v46  ;;  %774 = vrot.lane.b32.xlu0 %v762_v62, %s5764_s14  ;;  %264 = vrot.lane.b32.xlu1 %v248_v47, %s5762_s10  ;;  %v2771_v62 = vld [vmem:[%s10007_s3 + $0x500] sm:$0xff]  ;;  %v94_v47 = vadd.f32 %v88_v53, %v6824_v16  ;;  %v2702_v46 = vld [vmem:[%s10007_s3 + $0x2d8] sm:$0xff] }
 0x102   :  { %5011 = vmatprep.subr.bf16.mxu1 %v5010_v12  ;;  %v2774_v53 = vld [vmem:[%s10007_s3 + $0x518] sm:$0xff] }
 0x103   :  { %5568 = vrcp.f32 %v2347_v4  ;;  %v6756_v29 = vpop.permute.xlu0 %474  ;;  %v2720_v4 = vld [vmem:[%s10007_s3 + $0x368] sm:$0xff] }
 0x104   :  { %v5565_v26 = vpop.eup %5564  ;;  %5570 = vpow2.f32 %v4447_v7  ;;  %v6758_v25 = vpop.permute.xlu1 %476  ;;  %v2703_v7 = vld [vmem:[%s10007_s3 + $0x2e0] sm:$0xff] }
 0x105   :  { %v2346_v9 = vadd.f32 1.0, %v5565_v26  ;;  %266 = vrot.lane.b32.xlu0 %v249_v20, %s5762_s10  ;;  %1035 = vrot.lane.b32.xlu1 %v1022_v23, %s5765_s16  ;;  %v5081_v20 = vpack.c.bf16 %v2771_v62, %v2770_v28  ;;  %v226_v23 = vsel %vm181_vm0, %v6716_v5, %v6741_v63  ;;  %v2721_v26 = vld [vmem:[%s10007_s3 + $0x370] sm:$0xff]  ;;  %v5012_v59 = vpack.c.bf16 %v2703_v7, %v2702_v46  ;;  %v2706_v46 = vld [vmem:[%s10007_s3 + $0x2f8] sm:$0xff] }
 0x106   :  { %v6916_v62 = vstv %s6839_s27  ;;  %s8824_s27 = sld [smem:[#allocation2 + $0x34]] }
 0x107   :  { %5572 = vrcp.f32 %v2346_v9  ;;  %v6766_v35 = vpop.permute.xlu0 %472  ;;  %v2772_v9 = vld [vmem:[%s10007_s3 + $0x508] sm:$0xff] }
 0x108   :  { %v6768_v38 = vpop.permute.xlu1 %733 }
 0x109   :  { %1037 = vrot.lane.b32.xlu0 %v1023_v30, %s5765_s16  ;;  %1033 = vrot.lane.b32.xlu1 %v1021_v49, %s5765_s16  ;;  %v2773_v30 = vld [vmem:[%s10007_s3 + $0x510] sm:$0xff] }
 0x10a   :  { %v5084_v39 = vpack.c.bf16 %v2773_v30, %v2772_v9 }
 0x10b   :  { %v5567_v40 = vpop.eup %5566  ;;  %v6780_v22 = vpop.permute.xlu0 %735 }
 0x10c   :  { %v6782_v18 = vpop.permute.xlu1 %731  ;;  %v2344_v60 = vadd.f32 1.0, %v5567_v40 }
 0x10d   :  { %v5569_v45 = vpop.eup %5568  ;;  %523 = vrot.lane.b32.xlu0 %v507_v1, %s5763_s12  ;;  %525 = vrot.lane.b32.xlu1 %v508_v41, %s5763_s12  ;;  %v1551_v1 = vmul.f32 %v6540_v32, %v6816_v36  ;;  %v1549_v41 = vmul.f32 %v6558_v50, %v6816_v36  ;;  %v743_v30 = vsel %vm699_vm2, %v6782_v18, %v6768_v38 }
 0x10e   :  { %v5571_v37 = vpop.eup %5570  ;;  %4450 = vmatprep.mubr.msk.f32.mxu0 %vm2451_vm8, %v5569_v45  ;;  %5574 = vrcp.f32 %v2344_v60  ;;  %v93_v45 = vadd.f32 %v87_v3, %v6824_v16  ;;  %v485_v60 = vsel %vm440_vm1, %v6756_v29, %v6758_v25 }
 0x10f   :  { %v2345_v14 = vadd.f32 1.0, %v5571_v37  ;;  %v6797_v44 = vpop.permute.xlu0 %992  ;;  %v237_v37 = vadd.f32 %v226_v23, %v94_v47 }
 0x110   :  { %v6799_v42 = vpop.permute.xlu1 %994 }
 0x111   :  { %v5573_v55 = vpop.eup %5572  ;;  %5576 = vrcp.f32 %v2345_v14  ;;  %1294 = vrot.lane.b32.xlu0 %v1281_v13, %s5766_s18  ;;  %1296 = vrot.lane.b32.xlu1 %v1282_v61, %s5766_s18  ;;  %v5014_v14 = vpack.c.bf16 %v2721_v26, %v2720_v4  ;;  %v496_v28 = vadd.f32 %v485_v60, %v237_v37  ;;  %v2725_v26 = vld [vmem:[%s10007_s3 + $0x390] sm:$0xff] }
 0x112   :  { %2660 = vmatmul.mubr.f32.vlgmr.msra.gmra.mrb[0].mxu0 %v5573_v55  ;;  %v2722_v55 = vld [vmem:[%s10007_s3 + $0x378] sm:$0xff] }
 0x113   :  { %v6820_v8 = vpop.permute.xlu0 %990  ;;  %5076 = vmatpush1.bf16.msra.mxu0 %v5075_v6  ;;  %v2705_v6 = vld [vmem:[%s10007_s3 + $0x2f0] sm:$0xff]  ;;  %v5018_v47 = vpack.c.bf16 %v2723_v0, %v2722_v55 }
 0x114   :  { %v6822_v19 = vpop.permute.xlu1 %1251  ;;  %5077 = vmatprep.subr.bf16.mxu0 %v10012_v34  ;;  %v5016_v3 = vpack.c.bf16 %v2705_v6, %v2704_v51  ;;  %v1002_v18 = vsel %vm958_vm3, %v6820_v8, %v6797_v44  ;;  %v2726_v8 = vld [vmem:[%s10007_s3 + $0x398] sm:$0xff] }
 0x115   :  { %1292 = vrot.lane.b32.xlu0 %v1280_v56, %s5766_s18  ;;  %782 = vrot.lane.b32.xlu1 %v766_v52, %s5764_s14  ;;  %v225_v56 = vsel %vm181_vm0, %v6743_v24, %v6716_v5  ;;  %v744_v52 = vsel %vm699_vm2, %v6768_v38, %v6780_v22  ;;  %v1025_v5 = vmul.f32 %v6734_v31, %v6739_v21 }
 0x116   :  { %v1026_v24 = vmul.f32 %v6750_v11, %v6739_v21  ;;  %v236_v7 = vadd.f32 %v225_v56, %v93_v45  ;;  %v755_v4 = vadd.f32 %v744_v52, %v496_v28  ;;  %v1840_v38 = vmul.f32 %v6540_v32, %v6916_v62  ;;  %v2727_v56 = vld [vmem:[%s10007_s3 + $0x3a0] sm:$0xff] }
 0x117   :  { %v6844_v12 = vpop.permute.xlu0 %1253  ;;  %5079 = vmatpush1.bf16.msra.mxu0 %v5078_v2  ;;  %v2775_v2 = vld [vmem:[%s10007_s3 + $0x520] sm:$0xff]  ;;  %v1838_v28 = vmul.f32 %v6558_v50, %v6916_v62 }
 0x118   :  { %v6846_v10 = vpop.permute.xlu1 %1249  ;;  %5080 = vmatprep.subr.bf16.mxu0 %v10012_v34  ;;  %v5575_v49 = vpop.eup %5574  ;;  %v5087_v9 = vpack.c.bf16 %v2775_v2, %v2774_v53 }
 0x119   :  { %784 = vrot.lane.b32.xlu0 %v767_v54, %s5764_s14  ;;  %1565 = vrot.lane.b32.xlu1 %v1550_v15, %s5767_s1  ;;  %v484_v54 = vsel %vm440_vm1, %v6766_v35, %v6756_v29  ;;  %v1003_v15 = vsel %vm958_vm3, %v6797_v44, %v6799_v42  ;;  %v2707_v29 = vld [vmem:[%s10007_s3 + $0x300] sm:$0xff]  ;;  %v2724_v35 = vld [vmem:[%s10007_s3 + $0x388] sm:$0xff]  ;;  %v1261_v53 = vsel %vm1217_vm4, %v6846_v10, %v6822_v19 }
 0x11a   :  { %v495_v45 = vadd.f32 %v484_v54, %v236_v7  ;;  %v1014_v60 = vadd.f32 %v1003_v15, %v755_v4  ;;  %v5020_v51 = vpack.c.bf16 %v2707_v29, %v2706_v46  ;;  %v5022_v37 = vpack.c.bf16 %v2725_v26, %v2724_v35  ;;  %v2709_v44 = vld [vmem:[%s10007_s3 + $0x310] sm:$0xff]  ;;  %v2710_v26 = vld [vmem:[%s10007_s3 + $0x318] sm:$0xff] }
 0x11b   :  { %v5577_v40 = vpop.eup %5576  ;;  %v6883_v13 = vpop.permute.xlu0 %1517  ;;  %5082 = vmatpush1.bf16.msra.mxu0 %v5081_v20  ;;  %v5026_v46 = vpack.c.bf16 %v2727_v56, %v2726_v8  ;;  %v2731_v56 = vld [vmem:[%s10007_s3 + $0x3c0] sm:$0xff] }
 0x11c   :  { %2589 = vmatprep.mubr.f32.mxu1 %v5577_v40  ;;  %v6885_v61 = vpop.permute.xlu1 %1519  ;;  %5083 = vmatprep.subr.bf16.mxu0 %v10012_v34  ;;  %v2777_v40 = vld [vmem:[%s10007_s3 + $0x530] sm:$0xff]  ;;  %v754_v6 = vadd.f32 %v743_v30, %v495_v45 }
 0x11d   :  { %2590 = vmatmul.mubr.f32.vlgmr.msra.gmra.mrb[2].mxu1 %v5575_v49  ;;  %1567 = vrot.lane.b32.xlu0 %v1551_v1, %s5767_s1  ;;  %v1262_v49 = vsel %vm1217_vm4, %v6822_v19, %v6844_v12  ;;  %v1839_v1 = vmul.f32 %v6531_v48, %v6916_v62  ;;  %v1284_v19 = vmul.f32 %v6734_v31, %v6776_v33 }
 0x11e   :  { %1563 = vrot.lane.b32.xlu1 %v1549_v41, %s5767_s1  ;;  %5013 = vmatpush3.bf16.msra.mxu1 %v5012_v59  ;;  %v2776_v41 = vld [vmem:[%s10007_s3 + $0x528] sm:$0xff]  ;;  %v1530_v59 = vsel %vm1480_vm5, %v6883_v13, %v6885_v61  ;;  %v1273_v55 = vadd.f32 %v1262_v49, %v1014_v60  ;;  %v1013_v54 = vadd.f32 %v1002_v18, %v754_v6 }
 0x11f   :  { %v1516_v20 = vpop.permute.xlu0 %1515  ;;  %5015 = vmatprep.subr.bf16.mxu1 %v5014_v14  ;;  %5085 = vmatpush1.bf16.msra.mxu0 %v5084_v39  ;;  %v2708_v14 = vld [vmem:[%s10007_s3 + $0x308] sm:$0xff]  ;;  %v5090_v52 = vpack.c.bf16 %v2777_v40, %v2776_v41  ;;  %v2729_v41 = vld [vmem:[%s10007_s3 + $0x3b0] sm:$0xff] }
 0x120   :  { %v1807_v23 = vpop.permute.xlu1 %1806  ;;  %5086 = vmatprep.subr.bf16.mxu0 %v10012_v34  ;;  %v1542_v15 = vadd.f32 %v1530_v59, %v1273_v55  ;;  %v1529_v10 = vsel %vm1480_vm5, %v1516_v20, %v6883_v13  ;;  %v1272_v7 = vadd.f32 %v1261_v53, %v1013_v54  ;;  %v2728_v13 = vld [vmem:[%s10007_s3 + $0x3a8] sm:$0xff]  ;;  %v2783_v53 = vld [vmem:[%s10007_s3 + $0x560] sm:$0xff] }
 0x121   :  { %1041 = vrot.lane.b32.xlu0 %v1025_v5, %s5765_s16  ;;  %v2778_v5 = vld [vmem:[%s10007_s3 + $0x538] sm:$0xff]  ;;  %v2780_v40 = vld [vmem:[%s10007_s3 + $0x548] sm:$0xff]  ;;  %v5030_v6 = vpack.c.bf16 %v2729_v41, %v2728_v13  ;;  %v7086_v13 = vld [vmem:[%s10006_s2 + $0x30] sm:$0xff] }
 0x122   :  { %1043 = vrot.lane.b32.xlu1 %v1026_v24, %s5765_s16  ;;  %5017 = vmatpush3.bf16.msra.mxu1 %v5016_v3  ;;  %v2779_v24 = vld [vmem:[%s10007_s3 + $0x540] sm:$0xff]  ;;  %v6998_v3 = vstv %s6924_s7  ;;  %v1541_v45 = vadd.f32 %v1529_v10, %v1272_v7  ;;  %v2712_v55 = vld [vmem:[%s10007_s3 + $0x328] sm:$0xff]  ;;  %s7937_s7 = sld [smem:[#allocation2 + $0x28]] }
 0x123   :  { %v6966_v0 = vpop.permute.xlu0 %1808  ;;  %5019 = vmatprep.subr.bf16.mxu1 %v5018_v47  ;;  %5088 = vmatpush1.bf16.msra.mxu0 %v5087_v9  ;;  %v5024_v47 = vpack.c.bf16 %v2709_v44, %v2708_v14  ;;  %v2711_v9 = vld [vmem:[%s10007_s3 + $0x320] sm:$0xff]  ;;  %v5093_v20 = vpack.c.bf16 %v2779_v24, %v2778_v5  ;;  %v1554_v5 = vmul.f32 %v6750_v11, %v6816_v36  ;;  %v2732_v7 = vld [vmem:[%s10007_s3 + $0x3c8] sm:$0xff] }
 0x124   :  { %v1805_v39 = vpop.permute.xlu1 %1804  ;;  %v1819_v2 = vsel %vm1769_vm6, %v1807_v23, %v6966_v0  ;;  %5089 = vmatprep.subr.bf16.mxu0 %v10012_v34  ;;  %v5028_v18 = vpack.c.bf16 %v2711_v9, %v2710_v26  ;;  %v2784_v26 = vld [vmem:[%s10007_s3 + $0x568] sm:$0xff]  ;;  %v2785_v9 = vld [vmem:[%s10007_s3 + $0x570] sm:$0xff] }
 0x125   :  { %1854 = vrot.lane.b32.xlu0 %v1839_v1, %s5768_s19  ;;  %v1831_v4 = vadd.f32 %v1819_v2, %v1542_v15  ;;  %v1818_v30 = vsel %vm1769_vm6, %v1805_v39, %v1807_v23  ;;  %v1285_v1 = vmul.f32 %v6750_v11, %v6776_v33  ;;  %v2781_v23 = vld [vmem:[%s10007_s3 + $0x550] sm:$0xff] }
 0x126   :  { %1856 = vrot.lane.b32.xlu1 %v1840_v38, %s5768_s19  ;;  %5021 = vmatpush3.bf16.msra.mxu1 %v5020_v51  ;;  %v2128_v38 = vmul.f32 %v6531_v48, %v6998_v3  ;;  %v1830_v59 = vadd.f32 %v1818_v30, %v1541_v45  ;;  %v2713_v39 = vld [vmem:[%s10007_s3 + $0x330] sm:$0xff]  ;;  %v2730_v48 = vld [vmem:[%s10007_s3 + $0x3b8] sm:$0xff]  ;;  %v5096_v44 = vpack.c.bf16 %v2781_v23, %v2780_v40  ;;  %v2716_v23 = vld [vmem:[%s10007_s3 + $0x348] sm:$0xff] }
 0x127   :  { %v2096_v29 = vpop.permute.xlu0 %2095  ;;  %5023 = vmatprep.subr.bf16.mxu1 %v5022_v37  ;;  %5091 = vmatpush1.bf16.msra.mxu0 %v5090_v52  ;;  %v2782_v52 = vld [vmem:[%s10007_s3 + $0x558] sm:$0xff]  ;;  %v5032_v24 = vpack.c.bf16 %v2713_v39, %v2712_v55  ;;  %v5034_v10 = vpack.c.bf16 %v2731_v56, %v2730_v48  ;;  %v2127_v30 = vmul.f32 %v6558_v50, %v6998_v3  ;;  %v2717_v45 = vld [vmem:[%s10007_s3 + $0x350] sm:$0xff] }
 0x128   :  { %v7000_v35 = vpop.permute.xlu1 %2097  ;;  %5092 = vmatprep.subr.bf16.mxu0 %v10012_v34  ;;  %v2750_v50 = vld [vmem:[%s10007_s3 + $0x458] sm:$0xff] }
 0x129   :  { %v2108_v49 = vsel %vm2058_vm7, %v2096_v29, %v7000_v35  ;;  %1852 = vrot.lane.b32.xlu0 %v1838_v28, %s5768_s19  ;;  %v2129_v28 = vmul.f32 %v6540_v32, %v6998_v3 }
 0x12a   :  { %v2120_v60 = vadd.f32 %v2108_v49, %v1831_v4  ;;  %1300 = vrot.lane.b32.xlu1 %v1284_v19, %s5766_s18  ;;  %5025 = vmatpush3.bf16.msra.mxu1 %v5024_v47  ;;  %v2714_v47 = vld [vmem:[%s10007_s3 + $0x338] sm:$0xff]  ;;  %v5099_v4 = vpack.c.bf16 %v2783_v53, %v2782_v52  ;;  %v2788_v52 = vld [vmem:[%s10007_s3 + $0x588] sm:$0xff]  ;;  %v2789_v53 = vld [vmem:[%s10007_s3 + $0x590] sm:$0xff] }
 0x12b   :  { %v2094_v37 = vpop.permute.xlu0 %2093  ;;  %5027 = vmatprep.subr.bf16.mxu1 %v5026_v46  ;;  %5094 = vmatpush1.bf16.msra.mxu0 %v5093_v20  ;;  %v2715_v46 = vld [vmem:[%s10007_s3 + $0x340] sm:$0xff]  ;;  %v1555_v20 = vmul.f32 %v7086_v13, %v6816_v36 }
 0x12c   :  { %v4452_v51 = vmul.f32 -1.442695, %v2120_v60  ;;  %v7030_v14 = vpop.permute.xlu1 %221  ;;  %v2107_v8 = vsel %vm2058_vm7, %v2094_v37, %v2096_v29  ;;  %5095 = vmatprep.subr.bf16.mxu0 %v10012_v34  ;;  %v2733_v29 = vld [vmem:[%s10007_s3 + $0x3d0] sm:$0xff]  ;;  %v5036_v49 = vpack.c.bf16 %v2715_v46, %v2714_v47  ;;  %v5102_v60 = vpack.c.bf16 %v2785_v9, %v2784_v26 }
 0x12d   :  { %v2119_v2 = vadd.f32 %v2107_v8, %v1830_v59  ;;  %1302 = vrot.lane.b32.xlu0 %v1285_v1, %s5766_s18  ;;  %v5038_v40 = vpack.c.bf16 %v2733_v29, %v2732_v7  ;;  %v2787_v59 = vld [vmem:[%s10007_s3 + $0x580] sm:$0xff]  ;;  %v1843_v37 = vmul.f32 %v6750_v11, %v6916_v62  ;;  %v5108_v46 = vpack.c.bf16 %v2789_v53, %v2788_v52 }
 0x12e   :  { %5578 = vpow2.f32 %v4452_v51  ;;  %2143 = vrot.lane.b32.xlu1 %v2128_v38, %s5769_s6  ;;  %5029 = vmatpush3.bf16.msra.mxu1 %v5028_v18  ;;  %v2751_v38 = vld [vmem:[%s10007_s3 + $0x460] sm:$0xff]  ;;  %v2786_v18 = vld [vmem:[%s10007_s3 + $0x578] sm:$0xff]  ;;  %v1553_v51 = vmul.f32 %v6734_v31, %v6816_v36  ;;  %v2132_v26 = vmul.f32 %v6750_v11, %v6998_v3  ;;  %v2133_v9 = vmul.f32 %v7086_v13, %v6998_v3 }
 0x12f   :  { %v4451_v54 = vmul.f32 -1.442695, %v2119_v2  ;;  %v7058_v15 = vpop.permute.xlu0 %223  ;;  %5031 = vmatprep.subr.bf16.mxu1 %v5030_v6  ;;  %5097 = vmatpush1.bf16.msra.mxu0 %v5096_v44  ;;  %v5040_v6 = vpack.c.bf16 %v2717_v45, %v2716_v23  ;;  %v5042_v44 = vpack.c.bf16 %v2751_v38, %v2750_v50  ;;  %v5105_v8 = vpack.c.bf16 %v2787_v59, %v2786_v18  ;;  %v2791_v29 = vld [vmem:[%s10007_s3 + $0x5a0] sm:$0xff]  ;;  %v7172_v50 = vld [vmem:[%s10006_s2 + $0x18] sm:$0xff] }
 0x130   :  { %v7060_v19 = vpop.permute.xlu1 %480  ;;  %5098 = vmatprep.subr.bf16.mxu0 %v10012_v34  ;;  %v1844_v2 = vmul.f32 %v7086_v13, %v6916_v62  ;;  %v229_v45 = vsel %vm181_vm0, %v7030_v14, %v7058_v15  ;;  %v247_v38 = vmul.f32 %v7172_v50, %v6500_v27  ;;  %v2734_v27 = vld [vmem:[%s10007_s3 + $0x3d8] sm:$0xff] }
 0x131   :  { %5580 = vpow2.f32 %v4451_v54  ;;  %2145 = vrot.lane.b32.xlu0 %v2129_v28, %s5769_s6  ;;  %v1842_v28 = vmul.f32 %v6734_v31, %v6916_v62  ;;  %v92_v54 = vmul.f32 %v6750_v11, %v6801_v17 }
 0x132   :  { %1573 = vrot.lane.b32.xlu1 %v1554_v5, %s5767_s1  ;;  %5033 = vmatpush3.bf16.msra.mxu1 %v5032_v24  ;;  %v91_v24 = vmul.f32 %v6734_v31, %v6801_v17 }
 0x133   :  { %v7092_v1 = vpop.permute.xlu0 %482  ;;  %5035 = vmatprep.subr.bf16.mxu1 %v5034_v10  ;;  %5100 = vmatpush1.bf16.msra.mxu0 %v5099_v4  ;;  %v2790_v4 = vld [vmem:[%s10007_s3 + $0x598] sm:$0xff] }
 0x134   :  { %v7094_v41 = vpop.permute.xlu1 %739  ;;  %5101 = vmatprep.subr.bf16.mxu0 %v10012_v34  ;;  %v5111_v23 = vpack.c.bf16 %v2791_v29, %v2790_v4  ;;  %v488_v18 = vsel %vm440_vm1, %v7060_v19, %v7092_v1  ;;  %v1024_v29 = vmul.f32 %v7172_v50, %v6739_v21  ;;  %v1283_v21 = vmul.f32 %v7172_v50, %v6776_v33 }
 0x135   :  { %1575 = vrot.lane.b32.xlu0 %v1555_v20, %s5767_s1  ;;  %v97_v20 = vadd.f32 %v91_v24, %v6824_v16 }
 0x136   :  { %2141 = vrot.lane.b32.xlu1 %v2127_v30, %s5769_s6  ;;  %5037 = vmatpush3.bf16.msra.mxu1 %v5036_v49  ;;  %v98_v30 = vadd.f32 %v92_v54, %v6824_v16 }
 0x137   :  { %v7121_v39 = vpop.permute.xlu0 %741  ;;  %5039 = vmatprep.subr.bf16.mxu1 %v5038_v40  ;;  %5103 = vmatpush1.bf16.msra.mxu0 %v5102_v60  ;;  %v2131_v60 = vmul.f32 %v6734_v31, %v6998_v3  ;;  %v240_v59 = vadd.f32 %v229_v45, %v97_v20  ;;  %v2755_v45 = vld [vmem:[%s10007_s3 + $0x480] sm:$0xff] }
 0x138   :  { %v5579_v55 = vpop.eup %5578  ;;  %v7123_v48 = vpop.permute.xlu1 %998  ;;  %5104 = vmatprep.subr.bf16.mxu0 %v10012_v34 }
 0x139   :  { %v2685_v56 = vadd.f32 1.0, %v5579_v55  ;;  %1571 = vrot.lane.b32.xlu0 %v1553_v51, %s5767_s1  ;;  %v241_v51 = vadd.f32 %v7058_v15, %v98_v30  ;;  %v2735_v15 = vld [vmem:[%s10007_s3 + $0x3e0] sm:$0xff]  ;;  %v499_v52 = vadd.f32 %v488_v18, %v240_v59 }
 0x13a   :  { %1862 = vrot.lane.b32.xlu1 %v1843_v37, %s5768_s19  ;;  %5041 = vmatpush3.bf16.msra.mxu1 %v5040_v6 }
 0x13b   :  { %5582 = vrcp.f32 %v2685_v56  ;;  %v5581_v5 = vpop.eup %5580  ;;  %v7142_v10 = vpop.permute.xlu0 %1000  ;;  %5043 = vmatprep.subr.bf16.mxu1 %v5042_v44  ;;  %5106 = vmatpush1.bf16.msra.mxu0 %v5105_v8  ;;  %v747_v44 = vsel %vm699_vm2, %v7094_v41, %v7121_v39  ;;  %v506_v8 = vmul.f32 %v7172_v50, %v6503_v43  ;;  %v2792_v56 = vld [vmem:[%s10007_s3 + $0x5a8] sm:$0xff]  ;;  %v500_v53 = vadd.f32 %v7092_v1, %v241_v51 }
 0x13c   :  { %v7144_v47 = vpop.permute.xlu1 %1257  ;;  %v2684_v7 = vadd.f32 1.0, %v5581_v5  ;;  %5107 = vmatprep.subr.bf16.mxu0 %v10012_v34  ;;  %v765_v43 = vmul.f32 %v7172_v50, %v6663_v58  ;;  %v1006_v5 = vsel %vm958_vm3, %v7123_v48, %v7142_v10  ;;  %v758_v1 = vadd.f32 %v747_v44, %v499_v52  ;;  %v2757_v52 = vld [vmem:[%s10007_s3 + $0x490] sm:$0xff] }
 0x13d   :  { %1864 = vrot.lane.b32.xlu0 %v1844_v2, %s5768_s19  ;;  %v2752_v2 = vld [vmem:[%s10007_s3 + $0x468] sm:$0xff]  ;;  %v759_v24 = vadd.f32 %v7121_v39, %v500_v53  ;;  %v2737_v39 = vld [vmem:[%s10007_s3 + $0x3f0] sm:$0xff] }
 0x13e   :  { %1860 = vrot.lane.b32.xlu1 %v1842_v28, %s5768_s19  ;;  %5584 = vrcp.f32 %v2684_v7  ;;  %v2753_v28 = vld [vmem:[%s10007_s3 + $0x470] sm:$0xff]  ;;  %v1017_v20 = vadd.f32 %v1006_v5, %v758_v1 }
 0x13f   :  { %v1260_v49 = vpop.permute.xlu0 %1259  ;;  %5109 = vmatpush1.bf16.msra.mxu0 %v5108_v46  ;;  %v5044_v46 = vpack.c.bf16 %v2735_v15, %v2734_v27  ;;  %v1018_v30 = vadd.f32 %v7142_v10, %v759_v24 }
 0x140   :  { %v1526_v40 = vpop.permute.xlu1 %1525  ;;  %5110 = vmatprep.subr.bf16.mxu0 %v10012_v34  ;;  %v1265_v4 = vsel %vm1217_vm4, %v7144_v47, %v1260_v49 }
 0x141   :  { %2151 = vrot.lane.b32.xlu0 %v2132_v26, %s5769_s6  ;;  %v5046_v26 = vpack.c.bf16 %v2753_v28, %v2752_v2  ;;  %v1276_v33 = vadd.f32 %v1265_v4, %v1017_v20  ;;  %v1277_v18 = vadd.f32 %v1260_v49, %v1018_v30  ;;  %v2738_v49 = vld [vmem:[%s10007_s3 + $0x3f8] sm:$0xff]  ;;  %v2740_v4 = vld [vmem:[%s10007_s3 + $0x408] sm:$0xff] }
 0x142   :  { %2153 = vrot.lane.b32.xlu1 %v2133_v9, %s5769_s6  ;;  %v2736_v9 = vld [vmem:[%s10007_s3 + $0x3e8] sm:$0xff] }
 0x143   :  { %v1528_v37 = vpop.permute.xlu0 %1527  ;;  %5112 = vmatpush1.bf16.msra.mxu0 %v5111_v23  ;;  %v2754_v23 = vld [vmem:[%s10007_s3 + $0x478] sm:$0xff]  ;;  %v5048_v44 = vpack.c.bf16 %v2737_v39, %v2736_v9  ;;  %v7297_v39 = vstv %s7241_s22  ;;  %s7863_s22 = sld [smem:[#allocation2 + $0x26]] }
 0x144   :  { %v7180_v6 = vpop.permute.xlu1 %1523  ;;  %2988 = vmatprep.subr.mxu0 %v10010_v57 }
 0x145   :  { %v5583_v55 = vpop.eup %5582  ;;  %2149 = vrot.lane.b32.xlu0 %v2131_v60, %s5769_s6  ;;  %v1534_v60 = vsel %vm1480_vm5, %v1526_v40, %v1528_v37  ;;  %v1533_v10 = vsel %vm1480_vm5, %v7180_v6, %v1526_v40 }
 0x146   :  { %262 = vrot.lane.b32.xlu1 %v247_v38, %s5762_s10  ;;  %2860 = vmatprep.mubr.f32.mxu1 %v5583_v55  ;;  %v89_v38 = vmul.f32 %v6540_v32, %v6801_v17  ;;  %v90_v55 = vmul.f32 %v7172_v50, %v6801_v17  ;;  %v1552_v32 = vmul.f32 %v7172_v50, %v6816_v36  ;;  %v2739_v17 = vld [vmem:[%s10007_s3 + $0x400] sm:$0xff]  ;;  %v2756_v36 = vld [vmem:[%s10007_s3 + $0x488] sm:$0xff] }
 0x147   :  { %v1815_v54 = vpop.permute.xlu0 %1814  ;;  %2989 = vmatpush1.msra.mxu0 %v2792_v56  ;;  %v1546_v27 = vadd.f32 %v1534_v60, %v1277_v18  ;;  %v1545_v15 = vadd.f32 %v1533_v10, %v1276_v33  ;;  %v1841_v56 = vmul.f32 %v7172_v50, %v6916_v62  ;;  %v5052_v62 = vpack.c.bf16 %v2739_v17, %v2738_v49  ;;  %v2742_v18 = vld [vmem:[%s10007_s3 + $0x418] sm:$0xff] }
 0x148   :  { %v1817_v58 = vpop.permute.xlu1 %1816  ;;  %v5585_v7 = vpop.eup %5584  ;;  %5177 = vmatprep.subr.bf16.mxu0 %v10012_v34  ;;  %v95_v53 = vadd.f32 %v89_v38, %v6824_v16  ;;  %v96_v24 = vadd.f32 %v90_v55, %v6824_v16  ;;  %v2741_v16 = vld [vmem:[%s10007_s3 + $0x410] sm:$0xff] }
 0x149   :  { %521 = vrot.lane.b32.xlu0 %v506_v8, %s5763_s12  ;;  %2861 = vmatmul.mubr.f32.vlgmr.msra.gmra.mrb[4].mxu1 %v5585_v7  ;;  %v1823_v37 = vsel %vm1769_vm6, %v1815_v54, %v1817_v58  ;;  %v5050_v8 = vpack.c.bf16 %v2755_v45, %v2754_v23  ;;  %v5054_v7 = vpack.c.bf16 %v2757_v52, %v2756_v36 }
 0x14a   :  { %780 = vrot.lane.b32.xlu1 %v765_v43, %s5764_s14  ;;  %5045 = vmatpush3.bf16.msra.mxu1 %v5044_v46  ;;  %v7270_v43 = vstv %s7211_s8  ;;  %v1835_v2 = vadd.f32 %v1823_v37, %v1546_v27  ;;  %v2130_v46 = vmul.f32 %v7172_v50, %v6998_v3  ;;  %v2758_v3 = vld [vmem:[%s10007_s3 + $0x498] sm:$0xff]  ;;  %v2759_v50 = vld [vmem:[%s10007_s3 + $0x4a0] sm:$0xff]  ;;  %v5056_v45 = vpack.c.bf16 %v2741_v16, %v2740_v4 }
 0x14b   :  { %v7243_v59 = vpop.permute.xlu0 %1812  ;;  %5047 = vmatprep.subr.bf16.mxu1 %v5046_v26  ;;  %v291_v9 = vmul.f32 %v6734_v31, %v7270_v43  ;;  %v292_v38 = vmul.f32 %v6750_v11, %v7270_v43  ;;  %v5058_v33 = vpack.c.bf16 %v2759_v50, %v2758_v3  ;;  %v2761_v37 = vld [vmem:[%s10007_s3 + $0x4b0] sm:$0xff]  ;;  %v551_v52 = vmul.f32 %v6750_v11, %v7297_v39  ;;  %v2746_v50 = vld [vmem:[%s10007_s3 + $0x438] sm:$0xff] }
 0x14c   :  { %v2104_v51 = vpop.permute.xlu1 %2103  ;;  %v1822_v40 = vsel %vm1769_vm6, %v7243_v59, %v1815_v54 }
 0x14d   :  { %1039 = vrot.lane.b32.xlu0 %v1024_v29, %s5765_s16  ;;  %v1834_v28 = vadd.f32 %v1822_v40, %v1545_v15 }
 0x14e   :  { %1298 = vrot.lane.b32.xlu1 %v1283_v21, %s5766_s18  ;;  %5049 = vmatpush3.bf16.msra.mxu1 %v5048_v44 }
 0x14f   :  { %v2106_v5 = vpop.permute.xlu0 %2105  ;;  %5051 = vmatprep.subr.bf16.mxu1 %v5050_v8 }
 0x150   :  { %v7272_v1 = vpop.permute.xlu1 %2101  ;;  %v2112_v54 = vsel %vm2058_vm7, %v2104_v51, %v2106_v5  ;;  %v2762_v5 = vld [vmem:[%s10007_s3 + $0x4b8] sm:$0xff] }
 0x151   :  { %v2111_v58 = vsel %vm2058_vm7, %v7272_v1, %v2104_v51  ;;  %v2124_v29 = vadd.f32 %v2112_v54, %v1835_v2  ;;  %1569 = vrot.lane.b32.xlu0 %v1552_v32, %s5767_s1  ;;  %v2743_v51 = vld [vmem:[%s10007_s3 + $0x420] sm:$0xff] }
 0x152   :  { %v2123_v26 = vadd.f32 %v2111_v58, %v1834_v28  ;;  %1858 = vrot.lane.b32.xlu1 %v1841_v56, %s5768_s19  ;;  %5053 = vmatpush3.bf16.msra.mxu1 %v5052_v62  ;;  %v5060_v15 = vpack.c.bf16 %v2743_v51, %v2742_v18  ;;  %v7359_v58 = vstv %s7299_s20  ;;  %s4422_s20 = sld [smem:[#allocation2 + $0x20]] }
 0x153   :  { %v4456_v20 = vmul.f32 -1.442695, %v2124_v29  ;;  %v220_v21 = vpop.permute.xlu0 %219  ;;  %5055 = vmatprep.subr.bf16.mxu1 %v5054_v7  ;;  %v810_v51 = vmul.f32 %v6750_v11, %v7359_v58  ;;  %v2749_v11 = vld [vmem:[%s10007_s3 + $0x450] sm:$0xff] }
 0x154   :  { %v4455_v30 = vmul.f32 -1.442695, %v2123_v26  ;;  %v479_v23 = vpop.permute.xlu1 %478  ;;  %v227_v60 = vsel %vm181_vm0, %v6741_v63, %v220_v21  ;;  %v228_v10 = vsel %vm181_vm0, %v220_v21, %v7030_v14  ;;  %v550_v63 = vmul.f32 %v6734_v31, %v7297_v39  ;;  %v2760_v14 = vld [vmem:[%s10007_s3 + $0x4a8] sm:$0xff] }
 0x155   :  { %5586 = vpow2.f32 %v4456_v20  ;;  %v238_v55 = vadd.f32 %v227_v60, %v95_v53  ;;  %v239_v44 = vadd.f32 %v228_v10, %v96_v24  ;;  %2147 = vrot.lane.b32.xlu0 %v2130_v46, %s5769_s6  ;;  %v486_v40 = vsel %vm440_vm1, %v6758_v25, %v479_v23  ;;  %v2745_v53 = vld [vmem:[%s10007_s3 + $0x430] sm:$0xff]  ;;  %v2763_v24 = vld [vmem:[%s10007_s3 + $0x4c0] sm:$0xff]  ;;  %v2764_v21 = vld [vmem:[%s10007_s3 + $0x4c8] sm:$0xff] }
 0x156   :  { %307 = vrot.lane.b32.xlu1 %v291_v9, %s5762_s10  ;;  %5588 = vpow2.f32 %v4455_v30  ;;  %v487_v32 = vsel %vm440_vm1, %v479_v23, %v7060_v19  ;;  %5057 = vmatpush3.bf16.msra.mxu1 %v5056_v45  ;;  %v5062_v25 = vpack.c.bf16 %v2761_v37, %v2760_v14  ;;  %v2744_v19 = vld [vmem:[%s10007_s3 + $0x428] sm:$0xff]  ;;  %v5066_v3 = vpack.c.bf16 %v2763_v24, %v2762_v5  ;;  %v2765_v23 = vld [vmem:[%s10007_s3 + $0x4d0] sm:$0xff] }
 0x157   :  { %v497_v8 = vadd.f32 %v486_v40, %v238_v55  ;;  %v498_v49 = vadd.f32 %v487_v32, %v239_v44  ;;  %v738_v17 = vpop.permute.xlu0 %737  ;;  %5059 = vmatprep.subr.bf16.mxu1 %v5058_v33  ;;  %v5064_v29 = vpack.c.bf16 %v2745_v53, %v2744_v19  ;;  %v809_v30 = vmul.f32 %v6734_v31, %v7359_v58  ;;  %v2748_v37 = vld [vmem:[%s10007_s3 + $0x448] sm:$0xff] }
 0x158   :  { %v997_v27 = vpop.permute.xlu1 %996  ;;  %v745_v56 = vsel %vm699_vm2, %v6780_v22, %v738_v17  ;;  %v746_v36 = vsel %vm699_vm2, %v738_v17, %v7094_v41  ;;  %v7344_v22 = vld [vmem:[%s10006_s2 + $0x8] sm:$0xff]  ;;  %v5070_v14 = vpack.c.bf16 %v2765_v23, %v2764_v21  ;;  %v3060_v17 = vld [vmem:[%s10007_s3 + $0x638] sm:$0xff]  ;;  %v5072_v19 = vpack.c.bf16 %v2749_v11, %v2748_v37  ;;  %v3113_v37 = vld [vmem:[%s10007_s3 + $0x7e0] sm:$0xff] }
 0x159   :  { %v756_v2 = vadd.f32 %v745_v56, %v497_v8  ;;  %v757_v28 = vadd.f32 %v746_v36, %v498_v49  ;;  %309 = vrot.lane.b32.xlu0 %v292_v38, %s5762_s10  ;;  %v288_v41 = vmul.f32 %v7344_v22, %v7270_v43  ;;  %v1004_v62 = vsel %vm958_vm3, %v6799_v42, %v997_v27  ;;  %v7368_v42 = vld [vmem:[%s10006_s2 + $0x10] sm:$0xff]  ;;  %v3114_v11 = vld [vmem:[%s10007_s3 + $0x7e8] sm:$0xff] }
 0x15a   :  { %566 = vrot.lane.b32.xlu1 %v550_v63, %s5763_s12  ;;  %v1005_v54 = vsel %vm958_vm3, %v997_v27, %v7123_v48  ;;  %5061 = vmatpush3.bf16.msra.mxu1 %v5060_v15  ;;  %v289_v48 = vmul.f32 %v7368_v42, %v7270_v43  ;;  %v3059_v49 = vld [vmem:[%s10007_s3 + $0x630] sm:$0xff] }
 0x15b   :  { %v1015_v46 = vadd.f32 %v1004_v62, %v756_v2  ;;  %v1016_v7 = vadd.f32 %v1005_v54, %v757_v28  ;;  %v1256_v4 = vpop.permute.xlu0 %1255  ;;  %5063 = vmatprep.subr.bf16.mxu1 %v5062_v25  ;;  %v5113_v53 = vpack.c.bf16 %v3060_v17, %v3059_v49  ;;  %v7447_v62 = vld [vmem:[%s10006_s2 + $0x20] sm:$0xff] }
 0x15c   :  { %v1522_v16 = vpop.permute.xlu1 %1521  ;;  %v1263_v26 = vsel %vm1217_vm4, %v6844_v12, %v1256_v4  ;;  %v1264_v9 = vsel %vm1217_vm4, %v1256_v4, %v7144_v47  ;;  %v2747_v12 = vld [vmem:[%s10007_s3 + $0x440] sm:$0xff]  ;;  %v3107_v4 = vld [vmem:[%s10007_s3 + $0x7b0] sm:$0xff] }
 0x15d   :  { %v1274_v20 = vadd.f32 %v1263_v26, %v1015_v46  ;;  %v1275_v47 = vadd.f32 %v1264_v9, %v1016_v7  ;;  %568 = vrot.lane.b32.xlu0 %v551_v52, %s5763_s12  ;;  %v1531_v45 = vsel %vm1480_vm5, %v6885_v61, %v1522_v16  ;;  %v1532_v60 = vsel %vm1480_vm5, %v1522_v16, %v7180_v6  ;;  %v7454_v46 = vld [vmem:[%s10006_s2 + $0x28] sm:$0xff]  ;;  %v3108_v16 = vld [vmem:[%s10007_s3 + $0x7b8] sm:$0xff] }
 0x15e   :  { %301 = vrot.lane.b32.xlu1 %v288_v41, %s5762_s10  ;;  %5065 = vmatpush3.bf16.msra.mxu1 %v5064_v29  ;;  %v5068_v55 = vpack.c.bf16 %v2747_v12, %v2746_v50  ;;  %v7436_v41 = vstv %s7392_s29  ;;  %v806_v12 = vmul.f32 %v7344_v22, %v7359_v58  ;;  %s7630_s29 = sld [smem:[#allocation2 + $0x23]] }
 0x15f   :  { %v5587_v10 = vpop.eup %5586  ;;  %v1543_v38 = vadd.f32 %v1531_v45, %v1274_v20  ;;  %v1544_v33 = vadd.f32 %v1532_v60, %v1275_v47  ;;  %v1811_v31 = vpop.permute.xlu0 %1810  ;;  %5067 = vmatprep.subr.bf16.mxu1 %v5066_v3  ;;  %10044 = vst [vmem:[#allocation8_spill] sm:$0xff] %v7436_v41  ;;  %v1068_v54 = vmul.f32 %v7447_v62, %v7436_v41  ;;  %v3109_v20 = vld [vmem:[%s10007_s3 + $0x7c0] sm:$0xff]  ;;  %v3110_v47 = vld [vmem:[%s10007_s3 + $0x7c8] sm:$0xff] }
 0x160   :  { %v2100_v18 = vpop.permute.xlu1 %2099  ;;  %v5589_v44 = vpop.eup %5588  ;;  %v2689_v63 = vadd.f32 1.0, %v5587_v10  ;;  %v1820_v61 = vsel %vm1769_vm6, %v6966_v0, %v1811_v31  ;;  %v1821_v6 = vsel %vm1769_vm6, %v1811_v31, %v7243_v59  ;;  %v7411_v0 = vld [vmem:[%s10006_s2] sm:$0xff]  ;;  %v1069_v7 = vmul.f32 %v7454_v46, %v7436_v41  ;;  %v3112_v31 = vld [vmem:[%s10007_s3 + $0x7d8] sm:$0xff] }
 0x161   :  { %v2688_v40 = vadd.f32 1.0, %v5589_v44  ;;  %v1832_v32 = vadd.f32 %v1820_v61, %v1543_v38  ;;  %v1833_v8 = vadd.f32 %v1821_v6, %v1544_v33  ;;  %303 = vrot.lane.b32.xlu0 %v289_v48, %s5762_s10  ;;  %v287_v59 = vmul.f32 %v7411_v0, %v7270_v43  ;;  %v3111_v33 = vld [vmem:[%s10007_s3 + $0x7d0] sm:$0xff] }
 0x162   :  { %825 = vrot.lane.b32.xlu1 %v809_v30, %s5764_s14  ;;  %5590 = vrcp.f32 %v2689_v63  ;;  %v2109_v27 = vsel %vm2058_vm7, %v7000_v35, %v2100_v18  ;;  %v2110_v15 = vsel %vm2058_vm7, %v2100_v18, %v7272_v1  ;;  %5069 = vmatpush3.bf16.msra.mxu1 %v5068_v55  ;;  %v547_v35 = vmul.f32 %v7344_v22, %v7297_v39 }
 0x163   :  { %5592 = vrcp.f32 %v2688_v40  ;;  %v2121_v56 = vadd.f32 %v2109_v27, %v1832_v32  ;;  %v2122_v36 = vadd.f32 %v2110_v15, %v1833_v8  ;;  %v7425_v52 = vpop.permute.xlu0 %258  ;;  %5071 = vmatprep.subr.bf16.mxu1 %v5070_v14  ;;  %v548_v1 = vmul.f32 %v7368_v42, %v7297_v39  ;;  %v3115_v27 = vld [vmem:[%s10007_s3 + $0x7f0] sm:$0xff]  ;;  %v3116_v15 = vld [vmem:[%s10007_s3 + $0x7f8] sm:$0xff] }
 0x164   :  { %v7427_v25 = vpop.permute.xlu1 %260  ;;  %v5178_v48 = vpack.c.bf16 %v3108_v16, %v3107_v4  ;;  %v546_v50 = vmul.f32 %v7411_v0, %v7297_v39  ;;  %v7481_v30 = vstv %s4422_s20  ;;  %v5181_v45 = vpack.c.bf16 %v3110_v47, %v3109_v20  ;;  %v3045_v20 = vld [vmem:[%s10007_s3 + $0x5c0] sm:$0xff]  ;;  %v3046_v47 = vld [vmem:[%s10007_s3 + $0x5c8] sm:$0xff] }
 0x165   :  { %v4453_v2 = vmul.f32 -1.442695, %v2121_v56  ;;  %v4454_v28 = vmul.f32 -1.442695, %v2122_v36  ;;  %827 = vrot.lane.b32.xlu0 %v810_v51, %s5764_s14  ;;  %10045 = vst [vmem:[#allocation9_spill] sm:$0xff] %v7481_v30  ;;  %v807_v10 = vmul.f32 %v7368_v42, %v7359_v58  ;;  %v1327_v38 = vmul.f32 %v7447_v62, %v7481_v30 }
 0x166   :  { %299 = vrot.lane.b32.xlu1 %v287_v59, %s5762_s10  ;;  %5073 = vmatpush3.bf16.msra.mxu1 %v5072_v19  ;;  %v5184_v61 = vpack.c.bf16 %v3112_v31, %v3111_v33  ;;  %v1328_v6 = vmul.f32 %v7454_v46, %v7481_v30  ;;  %v805_v14 = vmul.f32 %v7411_v0, %v7359_v58  ;;  %v7516_v40 = vstv %s4428_s11  ;;  %v3043_v19 = vld [vmem:[%s10007_s3 + $0x5b0] sm:$0xff]  ;;  %v3120_v31 = vld [vmem:[%s10007_s3 + $0x818] sm:$0xff]  ;;  %s7642_s11 = sld [smem:[#allocation4 + $0x2]] }
 0x167   :  { %5594 = vpow2.f32 %v4453_v2  ;;  %v7438_v5 = vpop.permute.xlu0 %256  ;;  %5114 = vmatprep.subr.bf16.mxu1 %v5113_v53  ;;  %10046 = vst [vmem:[#allocation10_spill] sm:$0xff] %v7516_v40  ;;  %v5187_v59 = vpack.c.bf16 %v3114_v11, %v3113_v37  ;;  %v1602_v49 = vmul.f32 %v7454_v46, %v7516_v40  ;;  %v1603_v17 = vmul.f32 %v7086_v13, %v7516_v40  ;;  %v3044_v53 = vld [vmem:[%s10007_s3 + $0x5b8] sm:$0xff]  ;;  %v3061_v2 = vld [vmem:[%s10007_s3 + $0x640] sm:$0xff]  ;;  %v3119_v33 = vld [vmem:[%s10007_s3 + $0x810] sm:$0xff] }
 0x168   :  { %v7440_v24 = vpop.permute.xlu1 %517  ;;  %5596 = vpow2.f32 %v4454_v28  ;;  %v3062_v28 = vld [vmem:[%s10007_s3 + $0x648] sm:$0xff]  ;;  %v1066_v16 = vmul.f32 %v7368_v42, %v7436_v41  ;;  %v3047_v37 = vld [vmem:[%s10007_s3 + $0x5d0] sm:$0xff]  ;;  %v3048_v11 = vld [vmem:[%s10007_s3 + $0x5d8] sm:$0xff] }
 0x169   :  { %560 = vrot.lane.b32.xlu0 %v547_v35, %s5763_s12  ;;  %v5190_v35 = vpack.c.bf16 %v3116_v15, %v3115_v27  ;;  %v3121_v15 = vld [vmem:[%s10007_s3 + $0x820] sm:$0xff] }
 0x16a   :  { %562 = vrot.lane.b32.xlu1 %v548_v1, %s5763_s12  ;;  %v1065_v1 = vmul.f32 %v7344_v22, %v7436_v41 }
 0x16b   :  { %v7464_v29 = vpop.permute.xlu0 %519 }
 0x16c   :  { %v7466_v26 = vpop.permute.xlu1 %515  ;;  %v5591_v9 = vpop.eup %5590 }
 0x16d   :  { %v5593_v3 = vpop.eup %5592  ;;  %1084 = vrot.lane.b32.xlu0 %v1068_v54, %s5765_s16  ;;  %4457 = vmatprep.mubr.msk.f32.mxu0 %vm2451_vm8, %v5591_v9  ;;  %v3117_v54 = vld [vmem:[%s10007_s3 + $0x800] sm:$0xff]  ;;  %v5115_v9 = vpack.c.bf16 %v3044_v53, %v3043_v19  ;;  %v3122_v19 = vld [vmem:[%s10007_s3 + $0x828] sm:$0xff] }
 0x16e   :  { %1086 = vrot.lane.b32.xlu1 %v1069_v7, %s5765_s16  ;;  %3001 = vmatmul.mubr.f32.vlgmr.msra.gmra.mrb[0].mxu0 %v5593_v3  ;;  %v3118_v7 = vld [vmem:[%s10007_s3 + $0x808] sm:$0xff] }
 0x16f   :  { %v7483_v21 = vpop.permute.xlu0 %776  ;;  %5179 = vmatpush1.bf16.msra.mxu0 %v5178_v48 }
 0x170   :  { %v7485_v23 = vpop.permute.xlu1 %778  ;;  %5180 = vmatprep.subr.bf16.mxu0 %v10012_v34 }
 0x171   :  { %v5595_v60 = vpop.eup %5594  ;;  %558 = vrot.lane.b32.xlu0 %v546_v50, %s5763_s12 }
 0x172   :  { %819 = vrot.lane.b32.xlu1 %v806_v12, %s5764_s14  ;;  %v5597_v18 = vpop.eup %5596  ;;  %v2686_v51 = vadd.f32 1.0, %v5595_v60  ;;  %v5117_v12 = vpack.c.bf16 %v3062_v28, %v3061_v2  ;;  %v3064_v60 = vld [vmem:[%s10007_s3 + $0x658] sm:$0xff]  ;;  %v5123_v2 = vpack.c.bf16 %v3048_v11, %v3047_v37 }
 0x173   :  { %v2687_v55 = vadd.f32 1.0, %v5597_v18  ;;  %v7500_v44 = vpop.permute.xlu0 %774  ;;  %5182 = vmatpush1.bf16.msra.mxu0 %v5181_v45  ;;  %v3063_v45 = vld [vmem:[%s10007_s3 + $0x650] sm:$0xff]  ;;  %v1064_v18 = vmul.f32 %v7411_v0, %v7436_v41 }
 0x174   :  { %v7502_v63 = vpop.permute.xlu1 %264  ;;  %5598 = vrcp.f32 %v2686_v51  ;;  %5183 = vmatprep.subr.bf16.mxu0 %v10012_v34  ;;  %v7596_v51 = vstv %s7535_s28  ;;  %s7609_s28 = sld [smem:[#allocation2 + $0x12]]  ;;  %v786_v41 = vsel %vm699_vm2, %v7500_v44, %v7483_v21 }
 0x175   :  { %5600 = vrcp.f32 %v2687_v55  ;;  %821 = vrot.lane.b32.xlu0 %v807_v10, %s5764_s14  ;;  %v5193_v10 = vpack.c.bf16 %v3118_v7, %v3117_v54  ;;  %v5119_v55 = vpack.c.bf16 %v3046_v47, %v3045_v20  ;;  %v1891_v27 = vmul.f32 %v7454_v46, %v7596_v51  ;;  %v3049_v54 = vld [vmem:[%s10007_s3 + $0x5e0] sm:$0xff]  ;;  %v3050_v7 = vld [vmem:[%s10007_s3 + $0x5e8] sm:$0xff]  ;;  %v3124_v20 = vld [vmem:[%s10007_s3 + $0x838] sm:$0xff] }
 0x176   :  { %1343 = vrot.lane.b32.xlu1 %v1327_v38, %s5766_s18  ;;  %v1601_v38 = vmul.f32 %v7447_v62, %v7516_v40  ;;  %v1892_v53 = vmul.f32 %v7086_v13, %v7596_v51  ;;  %v1325_v47 = vmul.f32 %v7368_v42, %v7481_v30  ;;  %v1890_v11 = vmul.f32 %v7447_v62, %v7596_v51 }
 0x177   :  { %v7519_v32 = vpop.permute.xlu0 %266  ;;  %5185 = vmatpush1.bf16.msra.mxu0 %v5184_v61  ;;  %v1888_v44 = vmul.f32 %v7368_v42, %v7596_v51 }
 0x178   :  { %v7521_v8 = vpop.permute.xlu1 %1035  ;;  %5186 = vmatprep.subr.bf16.mxu0 %v10012_v34 }
 0x179   :  { %1345 = vrot.lane.b32.xlu0 %v1328_v6, %s5766_s18 }
 0x17a   :  { %817 = vrot.lane.b32.xlu1 %v805_v14, %s5764_s14  ;;  %v5121_v14 = vpack.c.bf16 %v3064_v60, %v3063_v45  ;;  %v5127_v45 = vpack.c.bf16 %v3050_v7, %v3049_v54  ;;  %v3053_v54 = vld [vmem:[%s10007_s3 + $0x600] sm:$0xff]  ;;  %v3054_v7 = vld [vmem:[%s10007_s3 + $0x608] sm:$0xff] }
 0x17b   :  { %v7538_v56 = vpop.permute.xlu0 %1037  ;;  %5188 = vmatpush1.bf16.msra.mxu0 %v5187_v59  ;;  %v3065_v59 = vld [vmem:[%s10007_s3 + $0x660] sm:$0xff] }
 0x17c   :  { %v7540_v36 = vpop.permute.xlu1 %1033  ;;  %5189 = vmatprep.subr.bf16.mxu0 %v10012_v34 }
 0x17d   :  { %1621 = vrot.lane.b32.xlu0 %v1602_v49, %s5767_s1  ;;  %v3066_v49 = vld [vmem:[%s10007_s3 + $0x668] sm:$0xff] }
 0x17e   :  { %1623 = vrot.lane.b32.xlu1 %v1603_v17, %s5767_s1  ;;  %v5599_v4 = vpop.eup %5598  ;;  %v5196_v17 = vpack.c.bf16 %v3120_v31, %v3119_v33  ;;  %v3051_v33 = vld [vmem:[%s10007_s3 + $0x5f0] sm:$0xff]  ;;  %v3052_v31 = vld [vmem:[%s10007_s3 + $0x5f8] sm:$0xff] }
 0x17f   :  { %v5601_v48 = vpop.eup %5600  ;;  %v7567_v3 = vpop.permute.xlu0 %523  ;;  %5191 = vmatpush1.bf16.msra.mxu0 %v5190_v35 }
 0x180   :  { %v7569_v50 = vpop.permute.xlu1 %525  ;;  %2930 = vmatprep.mubr.f32.mxu1 %v5601_v48  ;;  %5192 = vmatprep.subr.bf16.mxu0 %v10012_v34  ;;  %v1324_v48 = vmul.f32 %v7344_v22, %v7481_v30 }
 0x181   :  { %2931 = vmatmul.mubr.f32.vlgmr.msra.gmra.mrb[6].mxu1 %v5599_v4  ;;  %1078 = vrot.lane.b32.xlu0 %v1065_v1, %s5765_s16  ;;  %v5125_v1 = vpack.c.bf16 %v3066_v49, %v3065_v59  ;;  %v3067_v4 = vld [vmem:[%s10007_s3 + $0x670] sm:$0xff]  ;;  %v3125_v59 = vld [vmem:[%s10007_s3 + $0x840] sm:$0xff]  ;;  %v3126_v49 = vld [vmem:[%s10007_s3 + $0x848] sm:$0xff] }
 0x182   :  { %1080 = vrot.lane.b32.xlu1 %v1066_v16, %s5765_s16  ;;  %5116 = vmatpush3.bf16.msra.mxu1 %v5115_v9  ;;  %v3068_v16 = vld [vmem:[%s10007_s3 + $0x678] sm:$0xff]  ;;  %v5199_v9 = vpack.c.bf16 %v3122_v19, %v3121_v15  ;;  %v5131_v15 = vpack.c.bf16 %v3052_v31, %v3051_v33 }
 0x183   :  { %v7598_v61 = vpop.permute.xlu0 %1294  ;;  %5118 = vmatprep.subr.bf16.mxu1 %v5117_v12  ;;  %5194 = vmatpush1.bf16.msra.mxu0 %v5193_v10  ;;  %v3123_v12 = vld [vmem:[%s10007_s3 + $0x830] sm:$0xff] }
 0x184   :  { %v7600_v6 = vpop.permute.xlu1 %1296  ;;  %5195 = vmatprep.subr.bf16.mxu0 %v10012_v34  ;;  %v5202_v37 = vpack.c.bf16 %v3124_v20, %v3123_v12  ;;  %v3127_v20 = vld [vmem:[%s10007_s3 + $0x850] sm:$0xff] }
 0x185   :  { %1619 = vrot.lane.b32.xlu0 %v1601_v38, %s5767_s1  ;;  %v5129_v38 = vpack.c.bf16 %v3068_v16, %v3067_v4  ;;  %v7711_v4 = vstv %s7642_s11  ;;  %v3071_v16 = vld [vmem:[%s10007_s3 + $0x690] sm:$0xff]  ;;  %s8299_s11 = sld [smem:[#allocation2 + $0x1b]] }
 0x186   :  { %1076 = vrot.lane.b32.xlu1 %v1064_v18, %s5765_s16  ;;  %5120 = vmatpush3.bf16.msra.mxu1 %v5119_v55  ;;  %v7674_v18 = vstv %s7609_s28  ;;  %v3069_v55 = vld [vmem:[%s10007_s3 + $0x680] sm:$0xff]  ;;  %s8018_s28 = sld [smem:[#allocation2 + $0x2a]] }
 0x187   :  { %v7632_v28 = vpop.permute.xlu0 %1292  ;;  %5122 = vmatprep.subr.bf16.mxu1 %v5121_v14  ;;  %5197 = vmatpush1.bf16.msra.mxu0 %v5196_v17  ;;  %v3070_v14 = vld [vmem:[%s10007_s3 + $0x688] sm:$0xff]  ;;  %v1323_v17 = vmul.f32 %v7411_v0, %v7481_v30  ;;  %v102_v19 = vmul.f32 %v7344_v22, %v7674_v18  ;;  %v101_v31 = vmul.f32 %v7411_v0, %v7674_v18 }
 0x188   :  { %v7634_v35 = vpop.permute.xlu1 %782  ;;  %5198 = vmatprep.subr.bf16.mxu0 %v10012_v34 }
 0x189   :  { %1910 = vrot.lane.b32.xlu0 %v1891_v27, %s5768_s19  ;;  %v7696_v27 = vstv %s7630_s29  ;;  %v108_v33 = vadd.f32 %v102_v19, %v7711_v4  ;;  %v1598_v19 = vmul.f32 %v7344_v22, %v7516_v40  ;;  %s4411_s29 = sld [smem:[#allocation2 + $0x27]] }
 0x18a   :  { %1912 = vrot.lane.b32.xlu1 %v1892_v53, %s5768_s19  ;;  %5124 = vmatpush3.bf16.msra.mxu1 %v5123_v2  ;;  %v2180_v12 = vmul.f32 %v7454_v46, %v7696_v27 }
 0x18b   :  { %v7663_v60 = vpop.permute.xlu0 %784  ;;  %5126 = vmatprep.subr.bf16.mxu1 %v5125_v1  ;;  %5200 = vmatpush1.bf16.msra.mxu0 %v5199_v9  ;;  %v5133_v1 = vpack.c.bf16 %v3070_v14, %v3069_v55  ;;  %v3072_v9 = vld [vmem:[%s10007_s3 + $0x698] sm:$0xff] }
 0x18c   :  { %v7665_v10 = vpop.permute.xlu1 %1565  ;;  %5201 = vmatprep.subr.bf16.mxu0 %v10012_v34 }
 0x18d   :  { %1337 = vrot.lane.b32.xlu0 %v1324_v48, %s5766_s18  ;;  %v5205_v48 = vpack.c.bf16 %v3126_v49, %v3125_v59  ;;  %v269_v59 = vsel %vm181_vm0, %v7425_v52, %v7427_v25  ;;  %v3073_v49 = vld [vmem:[%s10007_s3 + $0x6a0] sm:$0xff] }
 0x18e   :  { %1339 = vrot.lane.b32.xlu1 %v1325_v47, %s5766_s18  ;;  %5128 = vmatpush3.bf16.msra.mxu1 %v5127_v45  ;;  %v3128_v47 = vld [vmem:[%s10007_s3 + $0x858] sm:$0xff]  ;;  %v2181_v45 = vmul.f32 %v7086_v13, %v7696_v27 }
 0x18f   :  { %v7700_v53 = vpop.permute.xlu0 %1567  ;;  %5130 = vmatprep.subr.bf16.mxu1 %v5129_v38  ;;  %5203 = vmatpush1.bf16.msra.mxu0 %v5202_v37  ;;  %v5135_v38 = vpack.c.bf16 %v3054_v7, %v3053_v54  ;;  %v5137_v37 = vpack.c.bf16 %v3072_v9, %v3071_v16  ;;  %v3056_v13 = vld [vmem:[%s10007_s3 + $0x618] sm:$0xff]  ;;  %v3130_v54 = vld [vmem:[%s10007_s3 + $0x868] sm:$0xff]  ;;  %v528_v7 = vsel %vm440_vm1, %v7440_v24, %v7464_v29 }
 0x190   :  { %v7702_v2 = vpop.permute.xlu1 %1563  ;;  %5204 = vmatprep.subr.bf16.mxu0 %v10012_v34  ;;  %v1599_v16 = vmul.f32 %v7368_v42, %v7516_v40 }
 0x191   :  { %1908 = vrot.lane.b32.xlu0 %v1890_v11, %s5768_s19  ;;  %v3055_v11 = vld [vmem:[%s10007_s3 + $0x610] sm:$0xff] }
 0x192   :  { %1335 = vrot.lane.b32.xlu1 %v1323_v17, %s5766_s18  ;;  %5132 = vmatpush3.bf16.msra.mxu1 %v5131_v15  ;;  %v3074_v17 = vld [vmem:[%s10007_s3 + $0x6a8] sm:$0xff]  ;;  %v5208_v15 = vpack.c.bf16 %v3128_v47, %v3127_v20  ;;  %v5139_v9 = vpack.c.bf16 %v3056_v13, %v3055_v11 }
 0x193   :  { %v7735_v55 = vpop.permute.xlu0 %1041  ;;  %5134 = vmatprep.subr.bf16.mxu1 %v5133_v1  ;;  %5206 = vmatpush1.bf16.msra.mxu0 %v5205_v48  ;;  %v3129_v1 = vld [vmem:[%s10007_s3 + $0x860] sm:$0xff]  ;;  %v280_v48 = vadd.f32 %v269_v59, %v108_v33  ;;  %v5141_v57 = vpack.c.bf16 %v3074_v17, %v3073_v49  ;;  %v787_v33 = vsel %vm699_vm2, %v7483_v21, %v7485_v23  ;;  %v10047_v59 = vmov 0.0|0.0   ;;  %v3131_v49 = vld [vmem:[%s10007_s3 + $0x870] sm:$0xff]  ;;  %v3132_v17 = vld [vmem:[%s10007_s3 + $0x878] sm:$0xff] }
 0x194   :  { %v7737_v14 = vpop.permute.xlu1 %1043  ;;  %5207 = vmatprep.subr.bf16.mxu0 %v10012_v34  ;;  %v3057_v34 = vld [vmem:[%s10007_s3 + $0x620] sm:$0xff]  ;;  %v5211_v11 = vpack.c.bf16 %v3130_v54, %v3129_v1  ;;  %v1578_v21 = vsel %vm1480_vm5, %v7665_v10, %v7700_v53 }
 0x195   :  { %2199 = vrot.lane.b32.xlu0 %v2180_v12, %s5769_s6  ;;  %v107_v12 = vadd.f32 %v101_v31, %v7711_v4  ;;  %v3091_v31 = vld [vmem:[%s10007_s3 + $0x730] sm:$0xff]  ;;  %v539_v13 = vadd.f32 %v528_v7, %v280_v48 }
 0x196   :  { %2201 = vrot.lane.b32.xlu1 %v2181_v45, %s5769_s6  ;;  %5136 = vmatpush3.bf16.msra.mxu1 %v5135_v38  ;;  %v3058_v45 = vld [vmem:[%s10007_s3 + $0x628] sm:$0xff]  ;;  %v268_v38 = vsel %vm181_vm0, %v7438_v5, %v7425_v52  ;;  %v2179_v52 = vmul.f32 %v7447_v62, %v7696_v27  ;;  %v1597_v5 = vmul.f32 %v7411_v0, %v7516_v40 }
 0x197   :  { %v7771_v20 = vpop.permute.xlu0 %1854  ;;  %5138 = vmatprep.subr.bf16.mxu1 %v5137_v37  ;;  %v3092_v37 = vld [vmem:[%s10007_s3 + $0x738] sm:$0xff]  ;;  %5209 = vmatpush1.bf16.msra.mxu0 %v5208_v15  ;;  %v527_v15 = vsel %vm440_vm1, %v7466_v26, %v7440_v24  ;;  %v5143_v1 = vpack.c.bf16 %v3058_v45, %v3057_v34  ;;  %v279_v54 = vadd.f32 %v268_v38, %v107_v12 }
 0x198   :  { %v7773_v47 = vpop.permute.xlu1 %1856  ;;  %5210 = vmatprep.subr.bf16.mxu0 %v10047_v59  ;;  %v798_v7 = vadd.f32 %v787_v33, %v539_v13  ;;  %v5145_v30 = vpack.c.bf16 %v3092_v37, %v3091_v31  ;;  %v1305_v24 = vsel %vm1217_vm4, %v7598_v61, %v7600_v6  ;;  %v5214_v26 = vpack.c.bf16 %v3132_v17, %v3131_v49 }
 0x199   :  { %1613 = vrot.lane.b32.xlu0 %v1598_v19, %s5767_s1  ;;  %v1046_v19 = vsel %vm958_vm3, %v7521_v8, %v7538_v56  ;;  %v1887_v34 = vmul.f32 %v7344_v22, %v7596_v51  ;;  %v106_v45 = vmul.f32 %v7454_v46, %v7674_v18  ;;  %v1867_v31 = vsel %vm1769_vm6, %v7771_v20, %v7773_v47 }
 0x19a   :  { %1615 = vrot.lane.b32.xlu1 %v1599_v16, %s5767_s1  ;;  %5140 = vmatpush3.bf16.msra.mxu1 %v5139_v9  ;;  %v538_v16 = vadd.f32 %v527_v15, %v279_v54  ;;  %v1057_v9 = vadd.f32 %v1046_v19, %v798_v7  ;;  %v10048_v46 = vmov 0.0   ;;  %v105_v13 = vmul.f32 %v7447_v62, %v7674_v18 }
 0x19b   :  { %v1853_v48 = vpop.permute.xlu0 %1852  ;;  %5142 = vmatprep.subr.bf16.mxu1 %v5141_v57  ;;  %5212 = vmatpush1.bf16.msra.mxu0 %v5211_v11  ;;  %v1045_v57 = vsel %vm958_vm3, %v7540_v36, %v7521_v8  ;;  %v1304_v36 = vsel %vm1217_vm4, %v7632_v28, %v7598_v61  ;;  %v1577_v61 = vsel %vm1480_vm5, %v7702_v2, %v7665_v10  ;;  %v7877_v7 = vstv %s7833_s15 }
 0x19c   :  { %v7812_v40 = vpop.permute.xlu1 %1300  ;;  %5213 = vmatprep.subr.bf16.mxu0 %v10047_v59  ;;  %v797_v12 = vadd.f32 %v786_v41, %v538_v16  ;;  %v1316_v38 = vadd.f32 %v1305_v24, %v1057_v9  ;;  %v1886_v41 = vmul.f32 %v7411_v0, %v7596_v51  ;;  %v2176_v28 = vmul.f32 %v7344_v22, %v7696_v27 }
 0x19d   :  { %2197 = vrot.lane.b32.xlu0 %v2179_v52, %s5769_s6  ;;  %v112_v52 = vadd.f32 %v106_v45, %v7711_v4  ;;  %v1866_v10 = vsel %vm1769_vm6, %v1853_v48, %v7771_v20  ;;  %v2175_v54 = vmul.f32 %v7411_v0, %v7696_v27  ;;  %v111_v20 = vadd.f32 %v105_v13, %v7711_v4 }
 0x19e   :  { %1611 = vrot.lane.b32.xlu1 %v1597_v5, %s5767_s1  ;;  %5144 = vmatpush3.bf16.msra.mxu1 %v5143_v1  ;;  %v1056_v37 = vadd.f32 %v1045_v57, %v797_v12  ;;  %v1590_v11 = vadd.f32 %v1578_v21, %v1316_v38  ;;  %v2177_v1 = vmul.f32 %v7368_v42, %v7696_v27 }
 0x19f   :  { %v7837_v33 = vpop.permute.xlu0 %1302  ;;  %5146 = vmatprep.subr.bf16.mxu1 %v5145_v30  ;;  %5215 = vmatpush1.bf16.msra.mxu0 %v5214_v26  ;;  %v3133_v30 = vld [vmem:[%s10007_s3 + $0x880] sm:$0xff]  ;;  %v284_v48 = vadd.f32 %v7519_v32, %v112_v52  ;;  %v334_v45 = vmul.f32 %v7447_v62, %v7877_v7 }
 0x1a0   :  { %v2144_v8 = vpop.permute.xlu1 %2143  ;;  %3329 = vmatprep.subr.mxu0 %v10048_v46  ;;  %v1315_v5 = vadd.f32 %v1304_v36, %v1056_v37  ;;  %v1879_v49 = vadd.f32 %v1867_v31, %v1590_v11  ;;  %v7904_v11 = vstv %s7863_s22  ;;  %s8736_s22 = sld [smem:[#allocation2 + $0x32]] }
 0x1a1   :  { %1902 = vrot.lane.b32.xlu0 %v1887_v34, %s5768_s19  ;;  %v272_v34 = vsel %vm181_vm0, %v7502_v63, %v7519_v32  ;;  %v543_v21 = vadd.f32 %v7569_v50, %v284_v48  ;;  %v531_v32 = vsel %vm440_vm1, %v7567_v3, %v7569_v50  ;;  %v7935_v48 = vstv %s4411_s29  ;;  %s8633_s29 = sld [smem:[#allocation2 + $0x2e]] }
 0x1a2   :  { %1904 = vrot.lane.b32.xlu1 %v1888_v44, %s5768_s19  ;;  %v1589_v22 = vadd.f32 %v1577_v61, %v1315_v5  ;;  %v7890_v44 = vld [vmem:[%s10006_s2 + $0x18] sm:$0xff]  ;;  %v283_v38 = vadd.f32 %v272_v34, %v111_v20  ;;  %v332_v61 = vmul.f32 %v7368_v42, %v7877_v7  ;;  %v591_v20 = vmul.f32 %v7368_v42, %v7904_v11 }
 0x1a3   :  { %v7861_v17 = vpop.permute.xlu0 %2145  ;;  %3330 = vmatpush1.msra.mxu0 %v3133_v30  ;;  %v333_v12 = vmul.f32 %v7890_v44, %v7877_v7  ;;  %v103_v34 = vmul.f32 %v7368_v42, %v7674_v18 }
 0x1a4   :  { %v1574_v15 = vpop.permute.xlu1 %1573  ;;  %v2156_v2 = vsel %vm2058_vm7, %v2144_v8, %v7861_v17  ;;  %5280 = vmatprep.subr.bf16.mxu0 %v10047_v59  ;;  %v1878_v24 = vadd.f32 %v1866_v10, %v1589_v22  ;;  %v542_v50 = vadd.f32 %v531_v32, %v283_v38 }
 0x1a5   :  { %v2168_v19 = vadd.f32 %v2156_v2, %v1879_v49  ;;  %1900 = vrot.lane.b32.xlu0 %v1886_v41, %s5768_s19  ;;  %v790_v41 = vsel %vm699_vm2, %v7634_v35, %v7663_v60  ;;  %v1308_v2 = vsel %vm1217_vm4, %v7812_v40, %v7837_v33 }
 0x1a6   :  { %2191 = vrot.lane.b32.xlu1 %v2176_v28, %s5769_s6  ;;  %v1049_v28 = vsel %vm958_vm3, %v7735_v55, %v7737_v14  ;;  %v801_v52 = vadd.f32 %v790_v41, %v542_v50 }
 0x1a7   :  { %v4459_v26 = vmul.f32 -1.442695, %v2168_v19  ;;  %v1576_v16 = vpop.permute.xlu0 %1575 }
 0x1a8   :  { %v2142_v9 = vpop.permute.xlu1 %2141  ;;  %v1582_v13 = vsel %vm1480_vm5, %v1574_v15, %v1576_v16 }
 0x1a9   :  { %v2155_v57 = vsel %vm2058_vm7, %v2142_v9, %v2144_v8  ;;  %5602 = vpow2.f32 %v4459_v26  ;;  %2193 = vrot.lane.b32.xlu0 %v2177_v1, %s5769_s6  ;;  %v802_v8 = vadd.f32 %v7663_v60, %v543_v21  ;;  %v592_v60 = vmul.f32 %v7890_v44, %v7904_v11 }
 0x1aa   :  { %v2167_v0 = vadd.f32 %v2155_v57, %v1878_v24  ;;  %2189 = vrot.lane.b32.xlu1 %v2175_v54, %s5769_s6  ;;  %v593_v1 = vmul.f32 %v7447_v62, %v7904_v11 }
 0x1ab   :  { %v7901_v31 = vpop.permute.xlu0 %1571  ;;  %v1061_v30 = vadd.f32 %v7737_v14, %v802_v8  ;;  %v1060_v14 = vadd.f32 %v1049_v28, %v801_v52 }
 0x1ac   :  { %v4458_v36 = vmul.f32 -1.442695, %v2167_v0  ;;  %v1863_v37 = vpop.permute.xlu1 %1862  ;;  %v1581_v54 = vsel %vm1480_vm5, %v7901_v31, %v1574_v15  ;;  %v104_v15 = vmul.f32 %v7890_v44, %v7674_v18  ;;  %v852_v18 = vmul.f32 %v7447_v62, %v7935_v48 }
 0x1ad   :  { %348 = vrot.lane.b32.xlu0 %v333_v12, %s5762_s10  ;;  %v1320_v5 = vadd.f32 %v7837_v33, %v1061_v30  ;;  %v1319_v24 = vadd.f32 %v1308_v2, %v1060_v14  ;;  %v109_v30 = vadd.f32 %v103_v34, %v7711_v4  ;;  %v7971_v14 = vstv %s7937_s7 }
 0x1ae   :  { %5604 = vpow2.f32 %v4458_v36  ;;  %350 = vrot.lane.b32.xlu1 %v334_v45, %s5762_s10  ;;  %v851_v45 = vmul.f32 %v7890_v44, %v7935_v48 }
 0x1af   :  { %v1865_v49 = vpop.permute.xlu0 %1864  ;;  %v1594_v19 = vadd.f32 %v1582_v13, %v1320_v5  ;;  %v1593_v12 = vadd.f32 %v1581_v54, %v1319_v24  ;;  %v290_v5 = vmul.f32 %v7890_v44, %v7270_v43 }
 0x1b0   :  { %v7921_v10 = vpop.permute.xlu1 %1860  ;;  %v1871_v22 = vsel %vm1769_vm6, %v1863_v37, %v1865_v49 }
 0x1b1   :  { %346 = vrot.lane.b32.xlu0 %v332_v61, %s5762_s10  ;;  %v1883_v26 = vadd.f32 %v1871_v22, %v1594_v19  ;;  %v1870_v21 = vsel %vm1769_vm6, %v7921_v10, %v1863_v37  ;;  %v110_v61 = vadd.f32 %v104_v15, %v7711_v4  ;;  %v850_v4 = vmul.f32 %v7368_v42, %v7935_v48 }
 0x1b2   :  { %607 = vrot.lane.b32.xlu1 %v592_v60, %s5763_s12  ;;  %v1882_v36 = vadd.f32 %v1870_v21, %v1593_v12  ;;  %v3076_v12 = vld [vmem:[%s10007_s3 + $0x6b8] sm:$0xff] }
 0x1b3   :  { %v5603_v33 = vpop.eup %5602  ;;  %v2152_v16 = vpop.permute.xlu0 %2151 }
 0x1b4   :  { %v2154_v9 = vpop.permute.xlu1 %2153  ;;  %v3026_v57 = vadd.f32 1.0, %v5603_v33 }
 0x1b5   :  { %v2160_v0 = vsel %vm2058_vm7, %v2152_v16, %v2154_v9  ;;  %609 = vrot.lane.b32.xlu0 %v593_v1, %s5763_s12 }
 0x1b6   :  { %v2172_v32 = vadd.f32 %v2160_v0, %v1883_v26  ;;  %5606 = vrcp.f32 %v3026_v57  ;;  %605 = vrot.lane.b32.xlu1 %v591_v20, %s5763_s12  ;;  %v4519_v38 = vpop.f32.mrb[0].mxu1  ;;  %v1110_v26 = vmul.f32 %v7890_v44, %v7971_v14 }
 0x1b7   :  { %v4520_v37 = vpop.f32.mrb[1].mxu1  ;;  %v7952_v50 = vpop.permute.xlu0 %2149 }
 0x1b8   :  { %v5605_v8 = vpop.eup %5604  ;;  %v4463_v41 = vmul.f32 -1.442695, %v2172_v32  ;;  %v7956_v13 = vadd.f32 %v4520_v37, %v4519_v38  ;;  %v2159_v60 = vsel %vm2058_vm7, %v7952_v50, %v2152_v16  ;;  %v263_v52 = vpop.permute.xlu1 %262  ;;  %v3094_v38 = vld [vmem:[%s10007_s3 + $0x748] sm:$0xff] }
 0x1b9   :  { %v3025_v28 = vadd.f32 1.0, %v5605_v8  ;;  %v2171_v49 = vadd.f32 %v2159_v60, %v1882_v36  ;;  %v270_v2 = vsel %vm181_vm0, %v7427_v25, %v263_v52  ;;  %v271_v22 = vsel %vm181_vm0, %v263_v52, %v7502_v63  ;;  %866 = vrot.lane.b32.xlu0 %v851_v45, %s5764_s14 }
 0x1ba   :  { %5608 = vpow2.f32 %v4463_v41  ;;  %868 = vrot.lane.b32.xlu1 %v852_v18, %s5764_s14  ;;  %v281_v19 = vadd.f32 %v270_v2, %v109_v30  ;;  %v282_v1 = vadd.f32 %v271_v22, %v110_v61  ;;  %v8016_v36 = vstv %s7973_s25  ;;  %v3078_v2 = vld [vmem:[%s10007_s3 + $0x6c8] sm:$0xff]  ;;  %s9560_s25 = sld [smem:[#allocation2 + $0x2d]] }
 0x1bb   :  { %5610 = vrcp.f32 %v3025_v28  ;;  %v4462_v43 = vmul.f32 -1.442695, %v2171_v49  ;;  %v522_v54 = vpop.permute.xlu0 %521 }
 0x1bc   :  { %v529_v25 = vsel %vm440_vm1, %v7464_v29, %v522_v54  ;;  %v530_v63 = vsel %vm440_vm1, %v522_v54, %v7567_v3  ;;  %v781_v20 = vpop.permute.xlu1 %780  ;;  %v1111_v29 = vmul.f32 %v7447_v62, %v7971_v14  ;;  %v1370_v54 = vmul.f32 %v7447_v62, %v8016_v36 }
 0x1bd   :  { %5612 = vpow2.f32 %v4462_v43  ;;  %v540_v33 = vadd.f32 %v529_v25, %v281_v19  ;;  %v541_v24 = vadd.f32 %v530_v63, %v282_v1  ;;  %305 = vrot.lane.b32.xlu0 %v290_v5, %s5762_s10  ;;  %v788_v16 = vsel %vm699_vm2, %v7485_v23, %v781_v20  ;;  %v3096_v43 = vld [vmem:[%s10007_s3 + $0x758] sm:$0xff] }
 0x1be   :  { %v789_v9 = vsel %vm699_vm2, %v781_v20, %v7634_v35  ;;  %864 = vrot.lane.b32.xlu1 %v850_v4, %s5764_s14  ;;  %v3075_v35 = vld [vmem:[%s10007_s3 + $0x6b0] sm:$0xff] }
 0x1bf   :  { %v799_v3 = vadd.f32 %v788_v16, %v540_v33  ;;  %v800_v34 = vadd.f32 %v789_v9, %v541_v24  ;;  %v1040_v15 = vpop.permute.xlu0 %1039  ;;  %v5147_v28 = vpack.c.bf16 %v3076_v12, %v3075_v35 }
 0x1c0   :  { %v5607_v57 = vpop.eup %5606  ;;  %v1047_v21 = vsel %vm958_vm3, %v7538_v56, %v1040_v15  ;;  %v1048_v0 = vsel %vm958_vm3, %v1040_v15, %v7735_v55  ;;  %v1299_v23 = vpop.permute.xlu1 %1298  ;;  %v549_v56 = vmul.f32 %v7890_v44, %v7297_v39  ;;  %v3093_v55 = vld [vmem:[%s10007_s3 + $0x740] sm:$0xff]  ;;  %v1109_v39 = vmul.f32 %v7368_v42, %v7971_v14 }
 0x1c1   :  { %v1058_v32 = vadd.f32 %v1047_v21, %v799_v3  ;;  %v1059_v45 = vadd.f32 %v1048_v0, %v800_v34  ;;  %1125 = vrot.lane.b32.xlu0 %v1110_v26, %s5765_s16  ;;  %v1306_v18 = vsel %vm1217_vm4, %v7600_v6, %v1299_v23  ;;  %v1307_v8 = vsel %vm1217_vm4, %v1299_v23, %v7812_v40  ;;  %v3077_v42 = vld [vmem:[%s10007_s3 + $0x6c0] sm:$0xff]  ;;  %v3080_v3 = vld [vmem:[%s10007_s3 + $0x6d8] sm:$0xff]  ;;  %v8071_v21 = vld [vmem:[%s10006_s2 + $0x10] sm:$0xff] }
 0x1c2   :  { %1127 = vrot.lane.b32.xlu1 %v1111_v29, %s5765_s16  ;;  %3201 = vmatprep.mubr.f32.mxu1 %v5607_v57  ;;  %v5149_v49 = vpack.c.bf16 %v3094_v38, %v3093_v55  ;;  %v5151_v24 = vpack.c.bf16 %v3078_v2, %v3077_v42  ;;  %v3079_v29 = vld [vmem:[%s10007_s3 + $0x6d0] sm:$0xff]  ;;  %v3098_v57 = vld [vmem:[%s10007_s3 + $0x768] sm:$0xff]  ;;  %10050 = vst [vmem:[#allocation12_spill] sm:$0xff] %v8071_v21  ;;  %v3081_v55 = vld [vmem:[%s10007_s3 + $0x6e0] sm:$0xff] }
 0x1c3   :  { %v1317_v37 = vadd.f32 %v1306_v18, %v1058_v32  ;;  %v1318_v30 = vadd.f32 %v1307_v8, %v1059_v45  ;;  %v1570_v61 = vpop.permute.xlu0 %1569  ;;  %v1368_v0 = vmul.f32 %v8071_v21, %v8016_v36  ;;  %v5155_v32 = vpack.c.bf16 %v3080_v3, %v3079_v29  ;;  %v3082_v38 = vld [vmem:[%s10007_s3 + $0x6e8] sm:$0xff]  ;;  %v3099_v8 = vld [vmem:[%s10007_s3 + $0x770] sm:$0xff]  ;;  %v3101_v42 = vld [vmem:[%s10007_s3 + $0x780] sm:$0xff] }
 0x1c4   :  { %v5609_v41 = vpop.eup %5608  ;;  %v1579_v40 = vsel %vm1480_vm5, %v7700_v53, %v1570_v61  ;;  %v1580_v52 = vsel %vm1480_vm5, %v1570_v61, %v7901_v31  ;;  %v1859_v5 = vpop.permute.xlu1 %1858  ;;  %v1369_v53 = vmul.f32 %v7890_v44, %v8016_v36  ;;  %v3095_v31 = vld [vmem:[%s10007_s3 + $0x750] sm:$0xff]  ;;  %v3448_v61 = vld [vmem:[%s10007_s3 + $0xa88] sm:$0xff] }
 0x1c5   :  { %v5611_v60 = vpop.eup %5610  ;;  %v3030_v6 = vadd.f32 1.0, %v5609_v41  ;;  %v1591_v22 = vadd.f32 %v1579_v40, %v1317_v37  ;;  %v1592_v4 = vadd.f32 %v1580_v52, %v1318_v30  ;;  %564 = vrot.lane.b32.xlu0 %v549_v56, %s5763_s12  ;;  %v1868_v19 = vsel %vm1769_vm6, %v7773_v47, %v1859_v5  ;;  %v3084_v52 = vld [vmem:[%s10007_s3 + $0x6f8] sm:$0xff]  ;;  %v3102_v2 = vld [vmem:[%s10007_s3 + $0x788] sm:$0xff] }
 0x1c6   :  { %v1869_v1 = vsel %vm1769_vm6, %v1859_v5, %v7921_v10  ;;  %1123 = vrot.lane.b32.xlu1 %v1109_v39, %s5765_s16  ;;  %3202 = vmatmul.mubr.f32.vlgmr.msra.gmra.mrb[8].mxu1 %v5611_v60  ;;  %v5153_v9 = vpack.c.bf16 %v3096_v43, %v3095_v31  ;;  %v3100_v39 = vld [vmem:[%s10007_s3 + $0x778] sm:$0xff]  ;;  %v5159_v30 = vpack.c.bf16 %v3082_v38, %v3081_v55  ;;  %v10051_v5 = vld [vmem:[#allocation8_spill] sm:$0xff]  ;;  %v10052_v38 = vld [vmem:[#allocation9_spill] sm:$0xff] }
 0x1c7   :  { %5614 = vrcp.f32 %v3030_v6  ;;  %v5613_v25 = vpop.eup %5612  ;;  %v1880_v63 = vadd.f32 %v1868_v19, %v1591_v22  ;;  %v1881_v20 = vadd.f32 %v1869_v1, %v1592_v4  ;;  %v2148_v33 = vpop.permute.xlu0 %2147  ;;  %5148 = vmatpush3.bf16.msra.mxu1 %v5147_v28  ;;  %v3449_v28 = vld [vmem:[%s10007_s3 + $0xa90] sm:$0xff]  ;;  %v5161_v40 = vpack.c.bf16 %v3100_v39, %v3099_v8  ;;  %v3450_v19 = vld [vmem:[%s10007_s3 + $0xa98] sm:$0xff]  ;;  %v3451_v1 = vld [vmem:[%s10007_s3 + $0xaa0] sm:$0xff] }
 0x1c8   :  { %v3029_v26 = vadd.f32 1.0, %v5613_v25  ;;  %v2157_v16 = vsel %vm2058_vm7, %v7861_v17, %v2148_v33  ;;  %v2158_v47 = vsel %vm2058_vm7, %v2148_v33, %v7952_v50  ;;  %v8050_v10 = vpop.permute.xlu1 %307  ;;  %5150 = vmatprep.subr.bf16.mxu1 %v5149_v49  ;;  %v808_v17 = vmul.f32 %v7890_v44, %v7359_v58  ;;  %v3097_v50 = vld [vmem:[%s10007_s3 + $0x760] sm:$0xff]  ;;  %v3086_v33 = vld [vmem:[%s10007_s3 + $0x708] sm:$0xff] }
 0x1c9   :  { %10049 = vst [vmem:[#allocation11_spill] sm:$0xff] %v8050_v10  ;;  %v2169_v34 = vadd.f32 %v2157_v16, %v1880_v63  ;;  %v2170_v15 = vadd.f32 %v2158_v47, %v1881_v20  ;;  %1384 = vrot.lane.b32.xlu0 %v1369_v53, %s5766_s18  ;;  %v8076_v58 = vstv %s8018_s28  ;;  %v5157_v56 = vpack.c.bf16 %v3098_v57, %v3097_v50  ;;  %v3085_v20 = vld [vmem:[%s10007_s3 + $0x700] sm:$0xff]  ;;  %v3104_v16 = vld [vmem:[%s10007_s3 + $0x798] sm:$0xff] }
 0x1ca   :  { %5616 = vrcp.f32 %v3029_v26  ;;  %1386 = vrot.lane.b32.xlu1 %v1370_v54, %s5766_s18  ;;  %v1648_v18 = vmul.f32 %v7890_v44, %v8076_v58  ;;  %v1649_v41 = vmul.f32 %v7447_v62, %v8076_v58  ;;  %v3083_v62 = vld [vmem:[%s10007_s3 + $0x6f0] sm:$0xff]  ;;  %v1067_v49 = vmul.f32 %v7890_v44, %v10051_v5  ;;  %v8165_v47 = vld [vmem:[%s10006_s2 + $0x20] sm:$0xff]  ;;  %v3106_v39 = vld [vmem:[%s10007_s3 + $0x7a8] sm:$0xff] }
 0x1cb   :  { %v4460_v23 = vmul.f32 -1.442695, %v2169_v34  ;;  %v4461_v35 = vmul.f32 -1.442695, %v2170_v15  ;;  %v8080_v12 = vpop.permute.xlu0 %309  ;;  %5152 = vmatpush3.bf16.msra.mxu1 %v5151_v24  ;;  %v1647_v22 = vmul.f32 %v8071_v21, %v8076_v58  ;;  %v8132_v4 = vstv %s8078_s13  ;;  %v3103_v26 = vld [vmem:[%s10007_s3 + $0x790] sm:$0xff]  ;;  %v3105_v8 = vld [vmem:[%s10007_s3 + $0x7a0] sm:$0xff] }
 0x1cc   :  { %v8082_v45 = vpop.permute.xlu1 %566  ;;  %5154 = vmatprep.subr.bf16.mxu1 %v5153_v9  ;;  %v5281_v53 = vpack.c.bf16 %v3449_v28, %v3448_v61  ;;  %v5163_v43 = vpack.c.bf16 %v3084_v52, %v3083_v62  ;;  %v5165_v63 = vpack.c.bf16 %v3102_v2, %v3101_v42  ;;  %v1937_v24 = vmul.f32 %v7890_v44, %v8132_v4  ;;  %v3453_v50 = vld [vmem:[%s10007_s3 + $0xab0] sm:$0xff]  ;;  %v3455_v62 = vld [vmem:[%s10007_s3 + $0xac0] sm:$0xff]  ;;  %v3090_v42 = vld [vmem:[%s10007_s3 + $0x728] sm:$0xff] }
 0x1cd   :  { %5618 = vpow2.f32 %v4460_v23  ;;  %823 = vrot.lane.b32.xlu0 %v808_v17, %s5764_s14  ;;  %v1938_v9 = vmul.f32 %v8165_v47, %v8132_v4  ;;  %v5284_v29 = vpack.c.bf16 %v3451_v1, %v3450_v19  ;;  %v5167_v15 = vpack.c.bf16 %v3086_v33, %v3085_v20  ;;  %v3452_v17 = vld [vmem:[%s10007_s3 + $0xaa8] sm:$0xff]  ;;  %v3457_v33 = vld [vmem:[%s10007_s3 + $0xad0] sm:$0xff] }
 0x1ce   :  { %5620 = vpow2.f32 %v4461_v35  ;;  %1382 = vrot.lane.b32.xlu1 %v1368_v0, %s5766_s18  ;;  %v5169_v35 = vpack.c.bf16 %v3104_v16, %v3103_v26  ;;  %v5287_v61 = vpack.c.bf16 %v3453_v50, %v3452_v17  ;;  %v5173_v5 = vpack.c.bf16 %v3106_v39, %v3105_v8  ;;  %v3456_v20 = vld [vmem:[%s10007_s3 + $0xac8] sm:$0xff]  ;;  %v10053_v26 = vld [vmem:[#allocation10_spill] sm:$0xff]  ;;  %v3403_v17 = vld [vmem:[%s10007_s3 + $0x920] sm:$0xff] }
 0x1cf   :  { %v8102_v37 = vpop.permute.xlu0 %568  ;;  %5156 = vmatpush3.bf16.msra.mxu1 %v5155_v32  ;;  %v3087_v32 = vld [vmem:[%s10007_s3 + $0x710] sm:$0xff]  ;;  %v1600_v16 = vmul.f32 %v7890_v44, %v10053_v26  ;;  %v3386_v39 = vld [vmem:[%s10007_s3 + $0x898] sm:$0xff] }
 0x1d0   :  { %v8110_v6 = vpop.permute.xlu1 %301  ;;  %5158 = vmatprep.subr.bf16.mxu1 %v5157_v56  ;;  %v3088_v56 = vld [vmem:[%s10007_s3 + $0x718] sm:$0xff] }
 0x1d1   :  { %v5615_v60 = vpop.eup %5614  ;;  %1665 = vrot.lane.b32.xlu0 %v1648_v18, %s5767_s1  ;;  %v1326_v18 = vmul.f32 %v7890_v44, %v10052_v38 }
 0x1d2   :  { %4464 = vmatprep.mubr.msk.f32.mxu0 %vm2451_vm8, %v5615_v60  ;;  %1667 = vrot.lane.b32.xlu1 %v1649_v41, %s5767_s1  ;;  %v1936_v41 = vmul.f32 %v8071_v21, %v8132_v4  ;;  %v5171_v60 = vpack.c.bf16 %v3088_v56, %v3087_v32  ;;  %v3458_v32 = vld [vmem:[%s10007_s3 + $0xad8] sm:$0xff]  ;;  %v3459_v56 = vld [vmem:[%s10007_s3 + $0xae0] sm:$0xff] }
 0x1d3   :  { %v8136_v31 = vpop.permute.xlu0 %303  ;;  %5160 = vmatpush3.bf16.msra.mxu1 %v5159_v30  ;;  %v8199_v30 = vstv %s8134_s21  ;;  %s8708_s21 = sld [smem:[#allocation2 + $0x31]] }
 0x1d4   :  { %v5617_v54 = vpop.eup %5616  ;;  %v8144_v25 = vpop.permute.xlu1 %825  ;;  %5162 = vmatprep.subr.bf16.mxu1 %v5161_v40  ;;  %v3454_v40 = vld [vmem:[%s10007_s3 + $0xab8] sm:$0xff]  ;;  %v2226_v2 = vmul.f32 %v7890_v44, %v8199_v30 }
 0x1d5   :  { %1082 = vrot.lane.b32.xlu0 %v1067_v49, %s5765_s16  ;;  %3342 = vmatmul.mubr.f32.vlgmr.msra.gmra.mrb[0].mxu0 %v5617_v54  ;;  %v3089_v49 = vld [vmem:[%s10007_s3 + $0x720] sm:$0xff]  ;;  %v5290_v19 = vpack.c.bf16 %v3455_v62, %v3454_v40  ;;  %v5296_v62 = vpack.c.bf16 %v3459_v56, %v3458_v32  ;;  %v3408_v56 = vld [vmem:[%s10007_s3 + $0x948] sm:$0xff] }
 0x1d6   :  { %1663 = vrot.lane.b32.xlu1 %v1647_v22, %s5767_s1  ;;  %5282 = vmatpush1.bf16.msra.mxu0 %v5281_v53  ;;  %v3400_v22 = vld [vmem:[%s10007_s3 + $0x908] sm:$0xff]  ;;  %v3401_v53 = vld [vmem:[%s10007_s3 + $0x910] sm:$0xff]  ;;  %v5175_v54 = vpack.c.bf16 %v3090_v42, %v3089_v49 }
 0x1d7   :  { %v5619_v3 = vpop.eup %5618  ;;  %v8169_v34 = vpop.permute.xlu0 %827  ;;  %5164 = vmatpush3.bf16.msra.mxu1 %v5163_v43  ;;  %5283 = vmatprep.subr.bf16.mxu0 %v10047_v59  ;;  %v2227_v43 = vmul.f32 %v8165_v47, %v8199_v30  ;;  %v8305_v42 = vld [vmem:[%s10006_s2 + $0x8] sm:$0xff] }
 0x1d8   :  { %v5621_v57 = vpop.eup %5620  ;;  %v3027_v0 = vadd.f32 1.0, %v5619_v3  ;;  %v8178_v23 = vpop.permute.xlu1 %299  ;;  %5166 = vmatprep.subr.bf16.mxu1 %v5165_v63  ;;  %v2225_v3 = vmul.f32 %v8071_v21, %v8199_v30 }
 0x1d9   :  { %v3028_v55 = vadd.f32 1.0, %v5621_v57  ;;  %1954 = vrot.lane.b32.xlu0 %v1937_v24, %s5768_s19  ;;  %v5216_v24 = vpack.c.bf16 %v3401_v53, %v3400_v22  ;;  %v5293_v57 = vpack.c.bf16 %v3457_v33, %v3456_v20  ;;  %v3388_v53 = vld [vmem:[%s10007_s3 + $0x8a8] sm:$0xff]  ;;  %v3406_v20 = vld [vmem:[%s10007_s3 + $0x938] sm:$0xff]  ;;  %v3407_v33 = vld [vmem:[%s10007_s3 + $0x940] sm:$0xff] }
 0x1da   :  { %5622 = vrcp.f32 %v3027_v0  ;;  %1956 = vrot.lane.b32.xlu1 %v1938_v9, %s5768_s19  ;;  %5285 = vmatpush1.bf16.msra.mxu0 %v5284_v29  ;;  %v3384_v9 = vld [vmem:[%s10007_s3 + $0x888] sm:$0xff]  ;;  %v3385_v29 = vld [vmem:[%s10007_s3 + $0x890] sm:$0xff] }
 0x1db   :  { %5624 = vrcp.f32 %v3028_v55  ;;  %v8201_v28 = vpop.permute.xlu0 %560  ;;  %5168 = vmatpush3.bf16.msra.mxu1 %v5167_v15  ;;  %5286 = vmatprep.subr.bf16.mxu0 %v10047_v59  ;;  %v3402_v15 = vld [vmem:[%s10007_s3 + $0x918] sm:$0xff]  ;;  %v5218_v55 = vpack.c.bf16 %v3385_v29, %v3384_v9  ;;  %v3463_v29 = vld [vmem:[%s10007_s3 + $0xb00] sm:$0xff] }
 0x1dc   :  { %v8210_v52 = vpop.permute.xlu1 %562  ;;  %5170 = vmatprep.subr.bf16.mxu1 %v5169_v35  ;;  %v5220_v8 = vpack.c.bf16 %v3403_v17, %v3402_v15  ;;  %v3462_v9 = vld [vmem:[%s10007_s3 + $0xaf8] sm:$0xff]  ;;  %v590_v15 = vmul.f32 %v8305_v42, %v7904_v11  ;;  %v5228_v17 = vpack.c.bf16 %v3407_v33, %v3406_v20 }
 0x1dd   :  { %1341 = vrot.lane.b32.xlu0 %v1326_v18, %s5766_s18  ;;  %v1889_v18 = vmul.f32 %v7890_v44, %v7596_v51  ;;  %v3405_v51 = vld [vmem:[%s10007_s3 + $0x930] sm:$0xff] }
 0x1de   :  { %1952 = vrot.lane.b32.xlu1 %v1936_v41, %s5768_s19  ;;  %5288 = vmatpush1.bf16.msra.mxu0 %v5287_v61  ;;  %v3387_v41 = vld [vmem:[%s10007_s3 + $0x8a0] sm:$0xff]  ;;  %v2178_v61 = vmul.f32 %v7890_v44, %v7696_v27  ;;  %v3460_v27 = vld [vmem:[%s10007_s3 + $0xae8] sm:$0xff]  ;;  %v3461_v44 = vld [vmem:[%s10007_s3 + $0xaf0] sm:$0xff] }
 0x1df   :  { %v8230_v1 = vpop.permute.xlu0 %1084  ;;  %5172 = vmatpush3.bf16.msra.mxu1 %v5171_v60  ;;  %5289 = vmatprep.subr.bf16.mxu0 %v10047_v59  ;;  %v3404_v60 = vld [vmem:[%s10007_s3 + $0x928] sm:$0xff]  ;;  %v5222_v49 = vpack.c.bf16 %v3387_v41, %v3386_v39  ;;  %v5299_v26 = vpack.c.bf16 %v3461_v44, %v3460_v27  ;;  %v849_v44 = vmul.f32 %v8305_v42, %v7935_v48 }
 0x1e0   :  { %v8233_v63 = vpop.permute.xlu1 %1086  ;;  %5174 = vmatprep.subr.bf16.mxu1 %v5173_v5  ;;  %v5224_v22 = vpack.c.bf16 %v3405_v51, %v3404_v60  ;;  %v3465_v60 = vld [vmem:[%s10007_s3 + $0xb10] sm:$0xff] }
 0x1e1   :  { %2243 = vrot.lane.b32.xlu0 %v2226_v2, %s5769_s6  ;;  %v331_v2 = vmul.f32 %v8305_v42, %v7877_v7 }
 0x1e2   :  { %2245 = vrot.lane.b32.xlu1 %v2227_v43, %s5769_s6  ;;  %5291 = vmatpush1.bf16.msra.mxu0 %v5290_v19  ;;  %v3389_v43 = vld [vmem:[%s10007_s3 + $0x8b0] sm:$0xff]  ;;  %v8319_v19 = vld [vmem:[%s10006_s2] sm:$0xff] }
 0x1e3   :  { %v8259_v50 = vpop.permute.xlu0 %558  ;;  %5176 = vmatpush3.bf16.msra.mxu1 %v5175_v54  ;;  %5292 = vmatprep.subr.bf16.mxu0 %v10047_v59  ;;  %v330_v54 = vmul.f32 %v8319_v19, %v7877_v7  ;;  %v589_v32 = vmul.f32 %v8319_v19, %v7904_v11 }
 0x1e4   :  { %v5623_v0 = vpop.eup %5622  ;;  %v8262_v35 = vpop.permute.xlu1 %819  ;;  %5217 = vmatprep.subr.bf16.mxu1 %v5216_v24 }
 0x1e5   :  { %v5625_v38 = vpop.eup %5624  ;;  %1617 = vrot.lane.b32.xlu0 %v1600_v16, %s5767_s1 }
 0x1e6   :  { %2241 = vrot.lane.b32.xlu1 %v2225_v3, %s5769_s6  ;;  %3271 = vmatprep.mubr.f32.mxu1 %v5625_v38  ;;  %v5226_v3 = vpack.c.bf16 %v3389_v43, %v3388_v53  ;;  %v848_v53 = vmul.f32 %v8319_v19, %v7935_v48  ;;  %v3410_v43 = vld [vmem:[%s10007_s3 + $0x958] sm:$0xff] }
 0x1e7   :  { %3272 = vmatmul.mubr.f32.vlgmr.msra.gmra.mrb[10].mxu1 %v5623_v0  ;;  %v8288_v40 = vpop.permute.xlu0 %821  ;;  %5294 = vmatpush1.bf16.msra.mxu0 %v5293_v57  ;;  %v3390_v57 = vld [vmem:[%s10007_s3 + $0x8b8] sm:$0xff]  ;;  %v3391_v0 = vld [vmem:[%s10007_s3 + $0x8c0] sm:$0xff] }
 0x1e8   :  { %v8290_v5 = vpop.permute.xlu1 %1343  ;;  %5295 = vmatprep.subr.bf16.mxu0 %v10047_v59  ;;  %5219 = vmatpush3.bf16.msra.mxu1 %v5218_v55  ;;  %v3409_v55 = vld [vmem:[%s10007_s3 + $0x950] sm:$0xff]  ;;  %v5230_v51 = vpack.c.bf16 %v3391_v0, %v3390_v57  ;;  %v8414_v57 = vstv %s8340_s24  ;;  %v1108_v0 = vmul.f32 %v8305_v42, %v7971_v14  ;;  %s8428_s24 = sld [smem:[#allocation2 + $0x24]] }
 0x1e9   :  { %1906 = vrot.lane.b32.xlu0 %v1889_v18, %s5768_s19  ;;  %5221 = vmatprep.subr.bf16.mxu1 %v5220_v8  ;;  %v5302_v8 = vpack.c.bf16 %v3463_v29, %v3462_v9  ;;  %v8400_v9 = vld [vmem:[%s10006_s2 + $0x28] sm:$0xff] }
 0x1ea   :  { %2195 = vrot.lane.b32.xlu1 %v2178_v61, %s5769_s6  ;;  %v3464_v61 = vld [vmem:[%s10007_s3 + $0xb08] sm:$0xff] }
 0x1eb   :  { %v8329_v24 = vpop.permute.xlu0 %1345  ;;  %5297 = vmatpush1.bf16.msra.mxu0 %v5296_v62  ;;  %v8372_v62 = vstv %s8299_s11  ;;  %s8442_s11 = sld [smem:[#allocation4 + $0x4]] }
 0x1ec   :  { %v8331_v16 = vpop.permute.xlu1 %817  ;;  %5298 = vmatprep.subr.bf16.mxu0 %v10047_v59  ;;  %5223 = vmatpush3.bf16.msra.mxu1 %v5222_v49  ;;  %v5232_v49 = vpack.c.bf16 %v3409_v55, %v3408_v56  ;;  %v120_v29 = vmul.f32 %v8400_v9, %v8372_v62  ;;  %v3394_v56 = vld [vmem:[%s10007_s3 + $0x8d8] sm:$0xff]  ;;  %v3395_v55 = vld [vmem:[%s10007_s3 + $0x8e0] sm:$0xff] }
 0x1ed   :  { %344 = vrot.lane.b32.xlu0 %v331_v2, %s5762_s10  ;;  %5225 = vmatprep.subr.bf16.mxu1 %v5224_v22  ;;  %v3392_v2 = vld [vmem:[%s10007_s3 + $0x8c8] sm:$0xff]  ;;  %v3393_v22 = vld [vmem:[%s10007_s3 + $0x8d0] sm:$0xff] }
 0x1ee   :  { %342 = vrot.lane.b32.xlu1 %v330_v54, %s5762_s10  ;;  %v3411_v54 = vld [vmem:[%s10007_s3 + $0x960] sm:$0xff] }
 0x1ef   :  { %v8360_v18 = vpop.permute.xlu0 %1621  ;;  %5300 = vmatpush1.bf16.msra.mxu0 %v5299_v26  ;;  %v5305_v26 = vpack.c.bf16 %v3465_v60, %v3464_v61 }
 0x1f0   :  { %v4554_v38 = vpop.f32.mrb[2].mxu1  ;;  %v8362_v41 = vpop.permute.xlu1 %1623  ;;  %5301 = vmatprep.subr.bf16.mxu0 %v10047_v59  ;;  %5227 = vmatpush3.bf16.msra.mxu1 %v5226_v3 }
 0x1f1   :  { %v4555_v39 = vpop.f32.mrb[3].mxu1  ;;  %603 = vrot.lane.b32.xlu0 %v590_v15, %s5763_s12  ;;  %5229 = vmatprep.subr.bf16.mxu1 %v5228_v17  ;;  %v3467_v15 = vld [vmem:[%s10007_s3 + $0xb20] sm:$0xff]  ;;  %v5234_v17 = vpack.c.bf16 %v3393_v22, %v3392_v2  ;;  %v5238_v2 = vpack.c.bf16 %v3395_v55, %v3394_v56  ;;  %v1367_v22 = vmul.f32 %v8305_v42, %v8016_v36  ;;  %v3470_v55 = vld [vmem:[%s10007_s3 + $0xb38] sm:$0xff] }
 0x1f2   :  { %v4556_v27 = vadd.f32 %v4555_v39, %v4554_v38  ;;  %601 = vrot.lane.b32.xlu1 %v589_v32, %s5763_s12  ;;  %v5236_v32 = vpack.c.bf16 %v3411_v54, %v3410_v43  ;;  %v1107_v38 = vmul.f32 %v8319_v19, %v7971_v14  ;;  %v3413_v39 = vld [vmem:[%s10007_s3 + $0x970] sm:$0xff]  ;;  %v3396_v43 = vld [vmem:[%s10007_s3 + $0x8e8] sm:$0xff] }
 0x1f3   :  { %v8395_v33 = vpop.permute.xlu0 %1078  ;;  %5303 = vmatpush1.bf16.msra.mxu0 %v5302_v8  ;;  %v3412_v8 = vld [vmem:[%s10007_s3 + $0x968] sm:$0xff]  ;;  %v3397_v54 = vld [vmem:[%s10007_s3 + $0x8f0] sm:$0xff] }
 0x1f4   :  { %v8393_v20 = vadd.f32 %v4556_v27, %v7956_v13  ;;  %v8404_v3 = vpop.permute.xlu1 %1080  ;;  %5304 = vmatprep.subr.bf16.mxu0 %v10047_v59  ;;  %v3466_v13 = vld [vmem:[%s10007_s3 + $0xb18] sm:$0xff]  ;;  %5231 = vmatpush3.bf16.msra.mxu1 %v5230_v51  ;;  %v126_v51 = vadd.f32 %v120_v29, %v8414_v57 }
 0x1f5   :  { %862 = vrot.lane.b32.xlu0 %v849_v44, %s5764_s14  ;;  %5233 = vmatprep.subr.bf16.mxu1 %v5232_v49  ;;  %v5308_v60 = vpack.c.bf16 %v3467_v15, %v3466_v13  ;;  %v3468_v44 = vld [vmem:[%s10007_s3 + $0xb28] sm:$0xff]  ;;  %v3469_v49 = vld [vmem:[%s10007_s3 + $0xb30] sm:$0xff]  ;;  %v3414_v29 = vld [vmem:[%s10007_s3 + $0x978] sm:$0xff]  ;;  %v119_v15 = vmul.f32 %v8165_v47, %v8372_v62 }
 0x1f6   :  { %10054 = vst [vmem:[#allocation8_spill] sm:$0xff] %v8393_v20  ;;  %860 = vrot.lane.b32.xlu1 %v848_v53, %s5764_s14  ;;  %v5240_v53 = vpack.c.bf16 %v3413_v39, %v3412_v8  ;;  %v3415_v13 = vld [vmem:[%s10007_s3 + $0x980] sm:$0xff]  ;;  %v5242_v8 = vpack.c.bf16 %v3397_v54, %v3396_v43  ;;  %v1646_v39 = vmul.f32 %v8305_v42, %v8076_v58  ;;  %v3433_v43 = vld [vmem:[%s10007_s3 + $0xa10] sm:$0xff] }
 0x1f7   :  { %v8436_v61 = vpop.permute.xlu0 %1619  ;;  %5306 = vmatpush1.bf16.msra.mxu0 %v5305_v26  ;;  %v1366_v26 = vmul.f32 %v8319_v19, %v8016_v36  ;;  %v125_v54 = vadd.f32 %v119_v15, %v8414_v57  ;;  %v3472_v15 = vld [vmem:[%s10007_s3 + $0xb48] sm:$0xff] }
 0x1f8   :  { %10055 = vst [vmem:[#allocation9_spill] sm:$0xff] %v8436_v61  ;;  %v8439_v27 = vpop.permute.xlu1 %1076  ;;  %5307 = vmatprep.subr.bf16.mxu0 %v10047_v59  ;;  %5235 = vmatpush3.bf16.msra.mxu1 %v5234_v17 }
 0x1f9   :  { %10056 = vst [vmem:[#allocation10_spill] sm:$0xff] %v8439_v27  ;;  %1121 = vrot.lane.b32.xlu0 %v1108_v0, %s5765_s16  ;;  %5237 = vmatprep.subr.bf16.mxu1 %v5236_v32  ;;  %v5311_v0 = vpack.c.bf16 %v3469_v49, %v3468_v44  ;;  %v327_v32 = vadd.f32 %v8080_v12, %v126_v51  ;;  %v3398_v51 = vld [vmem:[%s10007_s3 + $0x8f8] sm:$0xff]  ;;  %v3399_v44 = vld [vmem:[%s10007_s3 + $0x900] sm:$0xff]  ;;  %v8514_v27 = vstv %s8442_s11 }
 0x1fa   :  { %1119 = vrot.lane.b32.xlu1 %v1107_v38, %s5765_s16  ;;  %v3471_v38 = vld [vmem:[%s10007_s3 + $0xb40] sm:$0xff] }
 0x1fb   :  { %v8470_v17 = vpop.permute.xlu0 %1910  ;;  %5309 = vmatpush1.bf16.msra.mxu0 %v5308_v60  ;;  %v5244_v60 = vpack.c.bf16 %v3415_v13, %v3414_v29  ;;  %v586_v49 = vadd.f32 %v8102_v37, %v327_v32  ;;  %v5314_v13 = vpack.c.bf16 %v3471_v38, %v3470_v55  ;;  %v315_v32 = vsel %vm181_vm0, %v8050_v10, %v8080_v12 }
 0x1fc   :  { %v1913_v56 = vpop.permute.xlu1 %1912  ;;  %5310 = vmatprep.subr.bf16.mxu0 %v10047_v59  ;;  %5239 = vmatpush3.bf16.msra.mxu1 %v5238_v2  ;;  %v1645_v2 = vmul.f32 %v8319_v19, %v8076_v58  ;;  %v1935_v12 = vmul.f32 %v8305_v42, %v8132_v4 }
 0x1fd   :  { %1380 = vrot.lane.b32.xlu0 %v1367_v22, %s5766_s18  ;;  %5241 = vmatprep.subr.bf16.mxu1 %v5240_v53  ;;  %v8494_v22 = vstv %s8428_s24  ;;  %v3432_v53 = vld [vmem:[%s10007_s3 + $0xa08] sm:$0xff]  ;;  %v845_v20 = vadd.f32 %v8169_v34, %v586_v49  ;;  %v574_v49 = vsel %vm440_vm1, %v8082_v45, %v8102_v37  ;;  %v833_v37 = vsel %vm699_vm2, %v8144_v25, %v8169_v34  ;;  %v3773_v34 = vld [vmem:[%s10007_s3 + $0xce0] sm:$0xff] }
 0x1fe   :  { %1378 = vrot.lane.b32.xlu1 %v1366_v26, %s5766_s18  ;;  %10057 = vst [vmem:[#allocation13_spill] sm:$0xff] %v8494_v22  ;;  %v133_v26 = vmul.f32 %v8165_v47, %v8494_v22  ;;  %v3473_v47 = vld [vmem:[%s10007_s3 + $0xb50] sm:$0xff]  ;;  %v5248_v55 = vpack.c.bf16 %v3433_v43, %v3432_v53  ;;  %v1919_v43 = vsel %vm1769_vm6, %v8470_v17, %v1913_v56 }
 0x1ff   :  { %v8503_v29 = vpop.permute.xlu0 %1337  ;;  %5312 = vmatpush1.bf16.msra.mxu0 %v5311_v0  ;;  %v5246_v0 = vpack.c.bf16 %v3399_v44, %v3398_v51  ;;  %v1104_v10 = vadd.f32 %v8233_v63, %v845_v20  ;;  %v5317_v44 = vpack.c.bf16 %v3473_v47, %v3472_v15  ;;  %v2223_v56 = vmul.f32 %v8319_v19, %v8199_v30 }
 0x200   :  { %v8511_v21 = vpop.permute.xlu1 %1339  ;;  %5313 = vmatprep.subr.bf16.mxu0 %v10047_v59  ;;  %5243 = vmatpush3.bf16.msra.mxu1 %v5242_v8  ;;  %v8527_v38 = vadd.f32 %v133_v26, %v8514_v27  ;;  %v1934_v8 = vmul.f32 %v8319_v19, %v8132_v4  ;;  %v116_v26 = vmul.f32 %v8305_v42, %v8372_v62 }
 0x201   :  { %1661 = vrot.lane.b32.xlu0 %v1646_v39, %s5767_s1  ;;  %5245 = vmatprep.subr.bf16.mxu1 %v5244_v60  ;;  %v326_v39 = vadd.f32 %v315_v32, %v125_v54  ;;  %v1630_v60 = vsel %vm1480_vm5, %v8360_v18, %v8362_v41  ;;  %v1363_v20 = vadd.f32 %v8329_v24, %v1104_v10  ;;  %v3774_v10 = vld [vmem:[%s10007_s3 + $0xce8] sm:$0xff] }
 0x202   :  { %10058 = vst [vmem:[#allocation14_spill] sm:$0xff] %v8527_v38  ;;  %1659 = vrot.lane.b32.xlu1 %v1645_v2, %s5767_s1  ;;  %v2224_v41 = vmul.f32 %v8305_v42, %v8199_v30  ;;  %v1092_v54 = vsel %vm958_vm3, %v8230_v1, %v8233_v63  ;;  %v115_v47 = vmul.f32 %v8319_v19, %v8372_v62  ;;  %v3767_v38 = vld [vmem:[%s10007_s3 + $0xcb0] sm:$0xff] }
 0x203   :  { %v8539_v51 = vpop.permute.xlu0 %1908  ;;  %5315 = vmatpush1.bf16.msra.mxu0 %v5314_v13  ;;  %v585_v2 = vadd.f32 %v574_v49, %v326_v39  ;;  %v1642_v13 = vadd.f32 %v1630_v60, %v1363_v20  ;;  %v5351_v49 = vpack.c.bf16 %v3774_v10, %v3773_v34  ;;  %v335_v60 = vmul.f32 %v8400_v9, %v7877_v7 }
 0x204   :  { %10059 = vst [vmem:[#allocation15_spill] sm:$0xff] %v8539_v51  ;;  %v8545_v53 = vpop.permute.xlu1 %1335  ;;  %5316 = vmatprep.subr.bf16.mxu0 %v10047_v59  ;;  %5247 = vmatpush3.bf16.msra.mxu1 %v5246_v0  ;;  %v1351_v0 = vsel %vm1217_vm4, %v8290_v5, %v8329_v24  ;;  %v1629_v24 = vsel %vm1480_vm5, %v8436_v61, %v8360_v18 }
 0x205   :  { %1950 = vrot.lane.b32.xlu0 %v1935_v12, %s5768_s19  ;;  %5249 = vmatprep.subr.bf16.mxu1 %v5248_v55  ;;  %v844_v32 = vadd.f32 %v833_v37, %v585_v2  ;;  %v1931_v63 = vadd.f32 %v1919_v43, %v1642_v13  ;;  %v3474_v55 = vld [vmem:[%s10007_s3 + $0xb58] sm:$0xff]  ;;  %v594_v37 = vmul.f32 %v8400_v9, %v7904_v11 }
 0x206   :  { %1948 = vrot.lane.b32.xlu1 %v1934_v8, %s5768_s19  ;;  %v122_v20 = vadd.f32 %v116_v26, %v8414_v57  ;;  %v121_v7 = vadd.f32 %v115_v47, %v8414_v57  ;;  %v1918_v18 = vsel %vm1769_vm6, %v8539_v51, %v8470_v17  ;;  %v311_v11 = vsel %vm181_vm0, %v8178_v23, %v8110_v6  ;;  %v3769_v51 = vld [vmem:[%s10007_s3 + $0xcc0] sm:$0xff] }
 0x207   :  { %v2200_v15 = vpop.permute.xlu0 %2199  ;;  %5318 = vmatpush1.bf16.msra.mxu0 %v5317_v44  ;;  %v1103_v8 = vadd.f32 %v1092_v54, %v844_v32  ;;  %v853_v13 = vmul.f32 %v8400_v9, %v7935_v48  ;;  %v1112_v17 = vmul.f32 %v8400_v9, %v7971_v14  ;;  %v830_v48 = vsel %vm699_vm2, %v8262_v35, %v8288_v40 }
 0x208   :  { %v2202_v12 = vpop.permute.xlu1 %2201  ;;  %3670 = vmatprep.subr.mxu0 %v10048_v46  ;;  %v322_v47 = vadd.f32 %v311_v11, %v121_v7  ;;  %v829_v14 = vsel %vm699_vm2, %v8331_v16, %v8262_v35 }
 0x209   :  { %v2208_v39 = vsel %vm2058_vm7, %v2200_v15, %v2202_v12  ;;  %2239 = vrot.lane.b32.xlu0 %v2224_v41, %s5769_s6  ;;  %v1362_v2 = vadd.f32 %v1351_v0, %v1103_v8  ;;  %v312_v41 = vsel %vm181_vm0, %v8110_v6, %v8136_v31  ;;  %v570_v6 = vsel %vm440_vm1, %v8259_v50, %v8201_v28 }
 0x20a   :  { %v2220_v44 = vadd.f32 %v2208_v39, %v1931_v63  ;;  %2237 = vrot.lane.b32.xlu1 %v2223_v56, %s5769_s6  ;;  %v571_v56 = vsel %vm440_vm1, %v8201_v28, %v8210_v52  ;;  %v323_v26 = vadd.f32 %v312_v41, %v122_v20  ;;  %v1371_v28 = vmul.f32 %v8400_v9, %v8016_v36  ;;  %v10062_v39 = vld [vmem:[#allocation10_spill] sm:$0xff] }
 0x20b   :  { %v1614_v43 = vpop.permute.xlu0 %1613  ;;  %3671 = vmatpush1.msra.mxu0 %v3474_v55  ;;  %v1641_v54 = vadd.f32 %v1629_v24, %v1362_v2  ;;  %v581_v50 = vadd.f32 %v570_v6, %v322_v47  ;;  %v1088_v35 = vsel %vm958_vm3, %v10062_v39, %v8395_v33  ;;  %v1348_v24 = vsel %vm1217_vm4, %v8503_v29, %v8511_v21 }
 0x20c   :  { %v4470_v34 = vmul.f32 -1.442695, %v2220_v44  ;;  %v8594_v10 = vpop.permute.xlu1 %1615  ;;  %5352 = vmatprep.subr.bf16.mxu0 %v5351_v49  ;;  %v582_v12 = vadd.f32 %v571_v56, %v323_v26  ;;  %v1089_v49 = vsel %vm958_vm3, %v8395_v33, %v8404_v3  ;;  %v1347_v20 = vsel %vm1217_vm4, %v8545_v53, %v8503_v29  ;;  %v8647_v33 = vld [vmem:[%s10006_s2 + $0x30] sm:$0xff] }
 0x20d   :  { %10060 = vst [vmem:[#allocation16_spill] sm:$0xff] %v8594_v10  ;;  %352 = vrot.lane.b32.xlu0 %v335_v60, %s5762_s10  ;;  %v1930_v23 = vadd.f32 %v1918_v18, %v1641_v54  ;;  %v840_v36 = vadd.f32 %v829_v14, %v581_v50  ;;  %10064 = vst [vmem:[#allocation18_spill] sm:$0xff] %v8647_v33  ;;  %v1651_v2 = vmul.f32 %v8647_v33, %v8076_v58 }
 0x20e   :  { %5626 = vpow2.f32 %v4470_v34  ;;  %611 = vrot.lane.b32.xlu1 %v594_v37, %s5763_s12  ;;  %v841_v8 = vadd.f32 %v830_v48, %v582_v12  ;;  %v1626_v7 = vsel %vm1480_vm5, %v1614_v43, %v8594_v10  ;;  %v1939_v29 = vmul.f32 %v8400_v9, %v8132_v4  ;;  %v3771_v10 = vld [vmem:[%s10007_s3 + $0xcd0] sm:$0xff] }
 0x20f   :  { %v8611_v32 = vpop.permute.xlu0 %2197  ;;  %v1099_v41 = vadd.f32 %v1088_v35, %v840_v36  ;;  %v1940_v6 = vmul.f32 %v8647_v33, %v8132_v4 }
 0x210   :  { %10061 = vst [vmem:[#allocation17_spill] sm:$0xff] %v8611_v32  ;;  %v2207_v0 = vsel %vm2058_vm7, %v8611_v32, %v2200_v15  ;;  %v1612_v63 = vpop.permute.xlu1 %1611  ;;  %v1650_v15 = vmul.f32 %v8400_v9, %v8076_v58  ;;  %v1100_v37 = vadd.f32 %v1089_v49, %v841_v8 }
 0x211   :  { %v2219_v55 = vadd.f32 %v2207_v0, %v1930_v23  ;;  %870 = vrot.lane.b32.xlu0 %v853_v13, %s5764_s14  ;;  %v1625_v18 = vsel %vm1480_vm5, %v1612_v63, %v1614_v43  ;;  %v1358_v54 = vadd.f32 %v1347_v20, %v1099_v41  ;;  %v2228_v43 = vmul.f32 %v8400_v9, %v8199_v30 }
 0x212   :  { %1129 = vrot.lane.b32.xlu1 %v1112_v17, %s5765_s16  ;;  %v1359_v53 = vadd.f32 %v1348_v24, %v1100_v37  ;;  %v8671_v0 = vstv %s8633_s29  ;;  %v2229_v9 = vmul.f32 %v8647_v33, %v8199_v30  ;;  %v10068_v30 = vld [vmem:[#allocation12_spill] sm:$0xff] }
 0x213   :  { %v4469_v16 = vmul.f32 -1.442695, %v2219_v55  ;;  %v1903_v60 = vpop.permute.xlu0 %1902  ;;  %v1637_v23 = vadd.f32 %v1625_v18, %v1358_v54  ;;  %v375_v37 = vmul.f32 %v10068_v30, %v8671_v0  ;;  %v373_v20 = vmul.f32 %v8319_v19, %v8671_v0  ;;  %v3757_v54 = vld [vmem:[%s10007_s3 + $0xc60] sm:$0xff] }
 0x214   :  { %v8638_v44 = vpop.permute.xlu1 %1904  ;;  %v1638_v17 = vadd.f32 %v1626_v7, %v1359_v53 }
 0x215   :  { %10063 = vst [vmem:[#allocation10_spill] sm:$0xff] %v8638_v44  ;;  %5628 = vpow2.f32 %v4469_v16  ;;  %1388 = vrot.lane.b32.xlu0 %v1371_v28, %s5766_s18  ;;  %v1915_v13 = vsel %vm1769_vm6, %v1903_v60, %v8638_v44 }
 0x216   :  { %1669 = vrot.lane.b32.xlu1 %v1650_v15, %s5767_s1  ;;  %v1927_v47 = vadd.f32 %v1915_v13, %v1638_v17  ;;  %v374_v15 = vmul.f32 %v8305_v42, %v8671_v0  ;;  %v3758_v13 = vld [vmem:[%s10007_s3 + $0xc68] sm:$0xff]  ;;  %v3776_v17 = vld [vmem:[%s10007_s3 + $0xcf8] sm:$0xff] }
 0x217   :  { %v1901_v34 = vpop.permute.xlu0 %1900 }
 0x218   :  { %v5627_v11 = vpop.eup %5626  ;;  %v2192_v58 = vpop.permute.xlu1 %2191  ;;  %v1914_v26 = vsel %vm1769_vm6, %v1901_v34, %v1903_v60 }
 0x219   :  { %v3371_v56 = vadd.f32 1.0, %v5627_v11  ;;  %1671 = vrot.lane.b32.xlu0 %v1651_v2, %s5767_s1  ;;  %v1926_v63 = vadd.f32 %v1914_v26, %v1637_v23  ;;  %v8695_v2 = vstv %s8666_s26  ;;  %v8712_v11 = vstv %s4412_s0 }
 0x21a   :  { %1958 = vrot.lane.b32.xlu1 %v1939_v29, %s5768_s19  ;;  %v633_v53 = vmul.f32 %v8305_v42, %v8695_v2  ;;  %v634_v18 = vmul.f32 %v10068_v30, %v8695_v2  ;;  %v632_v26 = vmul.f32 %v8319_v19, %v8695_v2  ;;  %v5353_v23 = vpack.c.bf16 %v3758_v13, %v3757_v54  ;;  %v3779_v54 = vld [vmem:[%s10007_s3 + $0xd10] sm:$0xff]  ;;  %v3780_v13 = vld [vmem:[%s10007_s3 + $0xd18] sm:$0xff] }
 0x21b   :  { %5630 = vrcp.f32 %v3371_v56  ;;  %v8668_v48 = vpop.permute.xlu0 %2193  ;;  %v3775_v56 = vld [vmem:[%s10007_s3 + $0xcf0] sm:$0xff] }
 0x21c   :  { %10065 = vst [vmem:[#allocation19_spill] sm:$0xff] %v8668_v48  ;;  %v2204_v12 = vsel %vm2058_vm7, %v2192_v58, %v8668_v48  ;;  %v2190_v14 = vpop.permute.xlu1 %2189  ;;  %v4589_v28 = vpop.f32.mrb[4].mxu1  ;;  %v8916_v48 = vstv %s8824_s27 }
 0x21d   :  { %v2216_v4 = vadd.f32 %v2204_v12, %v1927_v47  ;;  %v2203_v55 = vsel %vm2058_vm7, %v2190_v14, %v2192_v58  ;;  %1960 = vrot.lane.b32.xlu0 %v1940_v6, %s5768_s19  ;;  %v4590_v49 = vpop.f32.mrb[5].mxu1  ;;  %v892_v6 = vmul.f32 %v8305_v42, %v8712_v11  ;;  %v3759_v12 = vld [vmem:[%s10007_s3 + $0xc70] sm:$0xff]  ;;  %v3760_v14 = vld [vmem:[%s10007_s3 + $0xc78] sm:$0xff]  ;;  %10075 = vst [vmem:[#allocation27_spill] sm:$0xff] %v8916_v48 }
 0x21e   :  { %v2215_v50 = vadd.f32 %v2203_v55, %v1926_v63  ;;  %2247 = vrot.lane.b32.xlu1 %v2228_v43, %s5769_s6  ;;  %v8682_v35 = vadd.f32 %v4590_v49, %v4589_v28  ;;  %v5355_v63 = vpack.c.bf16 %v3776_v17, %v3775_v56 }
 0x21f   :  { %v5629_v8 = vpop.eup %5628  ;;  %v4466_v39 = vmul.f32 -1.442695, %v2216_v4  ;;  %v8684_v16 = vpop.permute.xlu0 %348 }
 0x220   :  { %10066 = vst [vmem:[#allocation20_spill] sm:$0xff] %v8682_v35  ;;  %v3370_v60 = vadd.f32 1.0, %v5629_v8  ;;  %v4465_v36 = vmul.f32 -1.442695, %v2215_v50  ;;  %v8686_v24 = vpop.permute.xlu1 %350  ;;  %v3778_v50 = vld [vmem:[%s10007_s3 + $0xd08] sm:$0xff]  ;;  %v891_v8 = vmul.f32 %v8319_v19, %v8712_v11  ;;  %v3772_v35 = vld [vmem:[%s10007_s3 + $0xcd8] sm:$0xff] }
 0x221   :  { %10067 = vst [vmem:[#allocation21_spill] sm:$0xff] %v8686_v24  ;;  %5632 = vpow2.f32 %v4466_v39  ;;  %2249 = vrot.lane.b32.xlu0 %v2229_v9, %s5769_s6  ;;  %v3777_v9 = vld [vmem:[%s10007_s3 + $0xd00] sm:$0xff] }
 0x222   :  { %5634 = vrcp.f32 %v3370_v60  ;;  %387 = vrot.lane.b32.xlu1 %v374_v15, %s5762_s10  ;;  %v893_v15 = vmul.f32 %v10068_v30, %v8712_v11  ;;  %v8759_v60 = vstv %s8708_s21  ;;  %s9579_s21 = sld [smem:[#allocation4 + $0x5]] }
 0x223   :  { %5636 = vpow2.f32 %v4465_v36  ;;  %v8697_v41 = vpop.permute.xlu0 %346  ;;  %10072 = vst [vmem:[#allocation24_spill] sm:$0xff] %v8759_v60  ;;  %v5357_v36 = vpack.c.bf16 %v3760_v14, %v3759_v12  ;;  %v1151_v56 = vmul.f32 %v8305_v42, %v8759_v60  ;;  %v1152_v17 = vmul.f32 %v10068_v30, %v8759_v60  ;;  %v3764_v12 = vld [vmem:[%s10007_s3 + $0xc98] sm:$0xff]  ;;  %v3781_v30 = vld [vmem:[%s10007_s3 + $0xd20] sm:$0xff] }
 0x224   :  { %10069 = vst [vmem:[#allocation12_spill] sm:$0xff] %v8697_v41  ;;  %v8699_v7 = vpop.permute.xlu1 %607 }
 0x225   :  { %v5631_v29 = vpop.eup %5630  ;;  %389 = vrot.lane.b32.xlu0 %v375_v37, %s5762_s10 }
 0x226   :  { %385 = vrot.lane.b32.xlu1 %v373_v20, %s5762_s10  ;;  %4471 = vmatprep.mubr.msk.f32.mxu0 %vm2451_vm8, %v5631_v29  ;;  %v5359_v20 = vpack.c.bf16 %v3778_v50, %v3777_v9  ;;  %v3761_v29 = vld [vmem:[%s10007_s3 + $0xc80] sm:$0xff]  ;;  %v3416_v9 = vld [vmem:[%s10007_s3 + $0x988] sm:$0xff]  ;;  %v3417_v50 = vld [vmem:[%s10007_s3 + $0x990] sm:$0xff] }
 0x227   :  { %v8710_v34 = vpop.permute.xlu0 %609 }
 0x228   :  { %10070 = vst [vmem:[#allocation22_spill] sm:$0xff] %v8710_v34  ;;  %v8720_v58 = vpop.permute.xlu1 %605 }
 0x229   :  { %646 = vrot.lane.b32.xlu0 %v633_v53, %s5763_s12  ;;  %v3762_v53 = vld [vmem:[%s10007_s3 + $0xc88] sm:$0xff] }
 0x22a   :  { %648 = vrot.lane.b32.xlu1 %v634_v18, %s5763_s12 }
 0x22b   :  { %v5633_v43 = vpop.eup %5632  ;;  %v8734_v47 = vpop.permute.xlu0 %866 }
 0x22c   :  { %v5635_v4 = vpop.eup %5634  ;;  %v3367_v55 = vadd.f32 1.0, %v5633_v43  ;;  %v8744_v28 = vpop.permute.xlu1 %868  ;;  %v5363_v43 = vpack.c.bf16 %v3780_v13, %v3779_v54 }
 0x22d   :  { %10071 = vst [vmem:[#allocation23_spill] sm:$0xff] %v8744_v28  ;;  %v5637_v49 = vpop.eup %5636  ;;  %644 = vrot.lane.b32.xlu0 %v632_v26, %s5763_s12  ;;  %3683 = vmatmul.mubr.f32.vlgmr.msra.gmra.mrb[0].mxu0 %v5635_v4  ;;  %v5361_v26 = vpack.c.bf16 %v3762_v53, %v3761_v29  ;;  %v3782_v4 = vld [vmem:[%s10007_s3 + $0xd28] sm:$0xff]  ;;  %v3765_v29 = vld [vmem:[%s10007_s3 + $0xca0] sm:$0xff] }
 0x22e   :  { %5638 = vrcp.f32 %v3367_v55  ;;  %v3366_v39 = vadd.f32 1.0, %v5637_v49  ;;  %905 = vrot.lane.b32.xlu1 %v892_v6, %s5764_s14  ;;  %5354 = vmatpush3.bf16.msra.mxu0 %v5353_v23  ;;  %v8788_v23 = vstv %s8736_s22  ;;  %v1150_v55 = vmul.f32 %v8319_v19, %v8759_v60  ;;  %v3766_v53 = vld [vmem:[%s10007_s3 + $0xca8] sm:$0xff] }
 0x22f   :  { %v8761_v37 = vpop.permute.xlu0 %305  ;;  %5356 = vmatprep.subr.bf16.mxu0 %v5355_v63  ;;  %10073 = vst [vmem:[#allocation25_spill] sm:$0xff] %v8788_v23  ;;  %v3763_v63 = vld [vmem:[%s10007_s3 + $0xc90] sm:$0xff]  ;;  %v1410_v49 = vmul.f32 %v8305_v42, %v8788_v23 }
 0x230   :  { %5640 = vrcp.f32 %v3366_v39  ;;  %v8769_v18 = vpop.permute.xlu1 %864  ;;  %v5365_v39 = vpack.c.bf16 %v3764_v12, %v3763_v63 }
 0x231   :  { %907 = vrot.lane.b32.xlu0 %v893_v15, %s5764_s14  ;;  %v3434_v15 = vld [vmem:[%s10007_s3 + $0xa18] sm:$0xff] }
 0x232   :  { %903 = vrot.lane.b32.xlu1 %v891_v8, %s5764_s14  ;;  %5358 = vmatpush3.bf16.msra.mxu0 %v5357_v36  ;;  %v3435_v8 = vld [vmem:[%s10007_s3 + $0xa20] sm:$0xff] }
 0x233   :  { %v8785_v6 = vpop.permute.xlu0 %1125  ;;  %5360 = vmatprep.subr.bf16.mxu0 %v5359_v20  ;;  %v5367_v20 = vpack.c.bf16 %v3782_v4, %v3781_v30  ;;  %v5252_v12 = vpack.c.bf16 %v3435_v8, %v3434_v15  ;;  %v3418_v30 = vld [vmem:[%s10007_s3 + $0x998] sm:$0xff]  ;;  %v3419_v4 = vld [vmem:[%s10007_s3 + $0x9a0] sm:$0xff]  ;;  %v3436_v15 = vld [vmem:[%s10007_s3 + $0xa28] sm:$0xff] }
 0x234   :  { %v8796_v14 = vpop.permute.xlu1 %1127  ;;  %v3437_v8 = vld [vmem:[%s10007_s3 + $0xa30] sm:$0xff] }
 0x235   :  { %1164 = vrot.lane.b32.xlu0 %v1151_v56, %s5765_s16  ;;  %v5250_v56 = vpack.c.bf16 %v3417_v50, %v3416_v9  ;;  %v8858_v50 = vstv %s8783_s17 }
 0x236   :  { %1166 = vrot.lane.b32.xlu1 %v1152_v17, %s5765_s16  ;;  %5362 = vmatpush3.bf16.msra.mxu0 %v5361_v26  ;;  %v3783_v17 = vld [vmem:[%s10007_s3 + $0xd30] sm:$0xff]  ;;  %v3784_v26 = vld [vmem:[%s10007_s3 + $0xd38] sm:$0xff]  ;;  %10074 = vst [vmem:[#allocation26_spill] sm:$0xff] %v8858_v50 }
 0x237   :  { %v8822_v36 = vpop.permute.xlu0 %564  ;;  %5364 = vmatprep.subr.bf16.mxu0 %v5363_v43  ;;  %v8844_v43 = vld [vmem:[%s10006_s2 + $0x10] sm:$0xff] }
 0x238   :  { %v5639_v54 = vpop.eup %5638  ;;  %v8832_v13 = vpop.permute.xlu1 %1123  ;;  %v1411_v63 = vmul.f32 %v8844_v43, %v8788_v23  ;;  %v117_v32 = vmul.f32 %v8844_v43, %v8372_v62 }
 0x239   :  { %1162 = vrot.lane.b32.xlu0 %v1150_v55, %s5765_s16  ;;  %3542 = vmatprep.mubr.f32.mxu1 %v5639_v54  ;;  %v1409_v55 = vmul.f32 %v8319_v19, %v8788_v23  ;;  %v5369_v54 = vpack.c.bf16 %v3766_v53, %v3765_v29  ;;  %v5254_v23 = vpack.c.bf16 %v3419_v4, %v3418_v30  ;;  %v3785_v29 = vld [vmem:[%s10007_s3 + $0xd40] sm:$0xff]  ;;  %v8896_v30 = vld [vmem:[%s10006_s2 + $0x18] sm:$0xff] }
 0x23a   :  { %v5641_v9 = vpop.eup %5640  ;;  %1423 = vrot.lane.b32.xlu1 %v1410_v49, %s5766_s18  ;;  %5366 = vmatpush3.bf16.msra.mxu0 %v5365_v39  ;;  %v5371_v49 = vpack.c.bf16 %v3784_v26, %v3783_v17  ;;  %v3768_v39 = vld [vmem:[%s10007_s3 + $0xcb8] sm:$0xff]  ;;  %v1694_v53 = vmul.f32 %v8305_v42, %v8858_v50  ;;  %v5256_v17 = vpack.c.bf16 %v3437_v8, %v3436_v15  ;;  %v3421_v26 = vld [vmem:[%s10007_s3 + $0x9b0] sm:$0xff] }
 0x23b   :  { %3543 = vmatmul.mubr.f32.vlgmr.msra.gmra.mrb[12].mxu1 %v5641_v9  ;;  %v8868_v46 = vpop.permute.xlu0 %1384  ;;  %5368 = vmatprep.subr.bf16.mxu0 %v5367_v20  ;;  %v3786_v20 = vld [vmem:[%s10007_s3 + $0xd48] sm:$0xff]  ;;  %v3438_v4 = vld [vmem:[%s10007_s3 + $0xa38] sm:$0xff]  ;;  %v3439_v9 = vld [vmem:[%s10007_s3 + $0xa40] sm:$0xff]  ;;  %v5373_v15 = vpack.c.bf16 %v3768_v39, %v3767_v38  ;;  %v131_v8 = vmul.f32 %v8844_v43, %v8494_v22  ;;  %v118_v39 = vmul.f32 %v8896_v30, %v8372_v62 }
 0x23c   :  { %v8876_v33 = vpop.permute.xlu1 %1386  ;;  %5251 = vmatpush3.bf16.msra.mxu1 %v5250_v56  ;;  %v3420_v56 = vld [vmem:[%s10007_s3 + $0x9a8] sm:$0xff]  ;;  %v5260_v60 = vpack.c.bf16 %v3439_v9, %v3438_v4  ;;  %v3422_v62 = vld [vmem:[%s10007_s3 + $0x9b8] sm:$0xff] }
 0x23d   :  { %1425 = vrot.lane.b32.xlu0 %v1411_v63, %s5766_s18  ;;  %5253 = vmatprep.subr.bf16.mxu1 %v5252_v12  ;;  %v132_v63 = vmul.f32 %v8896_v30, %v8494_v22  ;;  %v1695_v12 = vmul.f32 %v8844_v43, %v8858_v50  ;;  %v3770_v38 = vld [vmem:[%s10007_s3 + $0xcc8] sm:$0xff]  ;;  %v5258_v44 = vpack.c.bf16 %v3421_v26, %v3420_v56  ;;  %v8947_v26 = vstv %s8860_s9 }
 0x23e   :  { %1421 = vrot.lane.b32.xlu1 %v1409_v55, %s5766_s18  ;;  %5370 = vmatpush3.bf16.msra.mxu0 %v5369_v54  ;;  %v5375_v54 = vpack.c.bf16 %v3786_v20, %v3785_v29  ;;  %v3788_v29 = vld [vmem:[%s10007_s3 + $0xd58] sm:$0xff]  ;;  %v1693_v20 = vmul.f32 %v8319_v19, %v8858_v50  ;;  %v1983_v56 = vmul.f32 %v8305_v42, %v8916_v48 }
 0x23f   :  { %v8913_v55 = vpop.permute.xlu0 %823  ;;  %5372 = vmatprep.subr.bf16.mxu0 %v5371_v49  ;;  %v3787_v49 = vld [vmem:[%s10007_s3 + $0xd50] sm:$0xff]  ;;  %10076 = vst [vmem:[#allocation28_spill] sm:$0xff] %v8947_v26  ;;  %v5377_v4 = vpack.c.bf16 %v3770_v38, %v3769_v51  ;;  %v138_v9 = vadd.f32 %v132_v63, %v8514_v27  ;;  %v137_v50 = vadd.f32 %v131_v8, %v8514_v27 }
 0x240   :  { %v8926_v22 = vpop.permute.xlu1 %1382  ;;  %5255 = vmatpush3.bf16.msra.mxu1 %v5254_v23  ;;  %v3423_v23 = vld [vmem:[%s10007_s3 + $0x9c0] sm:$0xff]  ;;  %v8969_v51 = vadd.f32 %v118_v39, %v8414_v57  ;;  %v1982_v8 = vmul.f32 %v8319_v19, %v8916_v48  ;;  %v357_v38 = vsel %vm181_vm0, %v8684_v16, %v8686_v24 }
 0x241   :  { %1709 = vrot.lane.b32.xlu0 %v1694_v53, %s5767_s1  ;;  %5257 = vmatprep.subr.bf16.mxu1 %v5256_v17  ;;  %v3440_v53 = vld [vmem:[%s10007_s3 + $0xa48] sm:$0xff]  ;;  %v3441_v17 = vld [vmem:[%s10007_s3 + $0xa50] sm:$0xff] }
 0x242   :  { %1711 = vrot.lane.b32.xlu1 %v1695_v12, %s5767_s1  ;;  %5374 = vmatpush3.bf16.msra.mxu0 %v5373_v15  ;;  %v8958_v12 = vadd.f32 %v117_v32, %v8414_v57  ;;  %v5379_v15 = vpack.c.bf16 %v3788_v29, %v3787_v49  ;;  %v1984_v32 = vmul.f32 %v8844_v43, %v8916_v48  ;;  %v3424_v49 = vld [vmem:[%s10007_s3 + $0x9c8] sm:$0xff]  ;;  %v3427_v48 = vld [vmem:[%s10007_s3 + $0x9e0] sm:$0xff] }
 0x243   :  { %v8960_v61 = vpop.permute.xlu0 %1665  ;;  %5376 = vmatprep.subr.bf16.mxu0 %v5375_v54  ;;  %v5262_v54 = vpack.c.bf16 %v3423_v23, %v3422_v62  ;;  %v2272_v57 = vmul.f32 %v8305_v42, %v8947_v26  ;;  %v5264_v39 = vpack.c.bf16 %v3441_v17, %v3440_v53  ;;  %v2273_v29 = vmul.f32 %v8844_v43, %v8947_v26  ;;  %v3442_v42 = vld [vmem:[%s10007_s3 + $0xa58] sm:$0xff]  ;;  %v9014_v43 = vld [vmem:[%s10006_s2 + $0x20] sm:$0xff] }
 0x244   :  { %v8971_v63 = vpop.permute.xlu1 %1667  ;;  %5259 = vmatpush3.bf16.msra.mxu1 %v5258_v44  ;;  %v3425_v44 = vld [vmem:[%s10007_s3 + $0x9d0] sm:$0xff]  ;;  %v5381_v62 = vpack.c.bf16 %v3772_v35, %v3771_v10  ;;  %v616_v23 = vsel %vm440_vm1, %v8699_v7, %v8710_v34  ;;  %v9018_v53 = vmul.f32 %v9014_v43, %v8671_v0  ;;  %v9022_v10 = vmul.f32 %v8896_v30, %v8695_v2  ;;  %v3426_v35 = vld [vmem:[%s10007_s3 + $0x9d8] sm:$0xff] }
 0x245   :  { %1707 = vrot.lane.b32.xlu0 %v1693_v20, %s5767_s1  ;;  %5261 = vmatprep.subr.bf16.mxu1 %v5260_v60  ;;  %v8994_v20 = vmul.f32 %v8319_v19, %v8947_v26  ;;  %v3443_v60 = vld [vmem:[%s10007_s3 + $0xa60] sm:$0xff]  ;;  %v9009_v19 = vmul.f32 %v8896_v30, %v8671_v0  ;;  %v368_v17 = vadd.f32 %v357_v38, %v138_v9  ;;  %v3444_v9 = vld [vmem:[%s10007_s3 + $0xa68] sm:$0xff] }
 0x246   :  { %1998 = vrot.lane.b32.xlu1 %v1983_v56, %s5768_s19  ;;  %5378 = vmatpush3.bf16.msra.mxu0 %v5377_v4  ;;  %v356_v4 = vsel %vm181_vm0, %v8697_v41, %v8684_v16  ;;  %v9034_v24 = vmul.f32 %v9014_v43, %v8695_v2  ;;  %v5266_v26 = vpack.c.bf16 %v3425_v44, %v3424_v49  ;;  %v3445_v16 = vld [vmem:[%s10007_s3 + $0xa70] sm:$0xff] }
 0x247   :  { %v9005_v56 = vpop.permute.xlu0 %1082  ;;  %5380 = vmatprep.subr.bf16.mxu0 %v5379_v15  ;;  %v875_v15 = vsel %vm699_vm2, %v8734_v47, %v8744_v28  ;;  %v5268_v38 = vpack.c.bf16 %v3443_v60, %v3442_v42  ;;  %v627_v49 = vadd.f32 %v616_v23, %v368_v17  ;;  %v615_v44 = vsel %vm440_vm1, %v8720_v58, %v8699_v7  ;;  %v3447_v17 = vld [vmem:[%s10007_s3 + $0xa80] sm:$0xff] }
 0x248   :  { %v9030_v34 = vpop.permute.xlu1 %1663  ;;  %5263 = vmatpush3.bf16.msra.mxu1 %v5262_v54  ;;  %v9051_v54 = vmul.f32 %v8896_v30, %v8712_v11  ;;  %v9059_v41 = vmul.f32 %v9014_v43, %v8712_v11  ;;  %v367_v42 = vadd.f32 %v356_v4, %v137_v50  ;;  %v1134_v7 = vsel %vm958_vm3, %v8785_v6, %v8796_v14  ;;  %v10077_v4 = vld [vmem:[#allocation11_spill] sm:$0xff] }
 0x249   :  { %2000 = vrot.lane.b32.xlu0 %v1984_v32, %s5768_s19  ;;  %5265 = vmatprep.subr.bf16.mxu1 %v5264_v39  ;;  %v9064_v32 = vld [vmem:[%s10007_s3 + $0x9e8] sm:$0xff]  ;;  %v3429_v39 = vld [vmem:[%s10007_s3 + $0x9f0] sm:$0xff]  ;;  %v5270_v60 = vpack.c.bf16 %v3427_v48, %v3426_v35  ;;  %v5272_v23 = vpack.c.bf16 %v3445_v16, %v3444_v9  ;;  %v886_v28 = vadd.f32 %v875_v15, %v627_v49 }
 0x24a   :  { %1996 = vrot.lane.b32.xlu1 %v1982_v8, %s5768_s19  ;;  %5382 = vmatpush3.bf16.msra.mxu0 %v5381_v62  ;;  %v3446_v62 = vld [vmem:[%s10007_s3 + $0xa78] sm:$0xff]  ;;  %v313_v50 = vsel %vm181_vm0, %v8136_v31, %v8761_v37  ;;  %v314_v48 = vsel %vm181_vm0, %v8761_v37, %v10077_v4  ;;  %v874_v35 = vsel %vm699_vm2, %v8769_v18, %v8734_v47 }
 0x24b   :  { %v1955_v8 = vpop.permute.xlu0 %1954  ;;  %5383 = vmatprep.subr.bf16.mxu0 %v10047_v59  ;;  %v626_v16 = vadd.f32 %v615_v44, %v367_v42  ;;  %v1393_v15 = vsel %vm1217_vm4, %v8868_v46, %v8876_v33  ;;  %v5274_v31 = vpack.c.bf16 %v3429_v39, %v9064_v32  ;;  %v1145_v49 = vadd.f32 %v1134_v7, %v886_v28  ;;  %v3741_v7 = vld [vmem:[%s10007_s3 + $0xbe0] sm:$0xff] }
 0x24c   :  { %v9088_v9 = vpop.permute.xlu1 %1956  ;;  %5267 = vmatpush3.bf16.msra.mxu1 %v5266_v26  ;;  %v572_v37 = vsel %vm440_vm1, %v8210_v52, %v8822_v36  ;;  %v1133_v47 = vsel %vm958_vm3, %v8832_v13, %v8785_v6  ;;  %v5276_v26 = vpack.c.bf16 %v3447_v17, %v3446_v62  ;;  %v324_v44 = vadd.f32 %v313_v50, %v8958_v12  ;;  %v3430_v52 = vld [vmem:[%s10007_s3 + $0x9f8] sm:$0xff]  ;;  %v3431_v6 = vld [vmem:[%s10007_s3 + $0xa00] sm:$0xff] }
 0x24d   :  { %2287 = vrot.lane.b32.xlu0 %v2272_v57, %s5769_s6  ;;  %5269 = vmatprep.subr.bf16.mxu1 %v5268_v38  ;;  %v325_v42 = vadd.f32 %v314_v48, %v8969_v51  ;;  %v885_v57 = vadd.f32 %v874_v35, %v626_v16  ;;  %v1676_v28 = vsel %vm1480_vm5, %v8960_v61, %v8971_v63 }
 0x24e   :  { %2289 = vrot.lane.b32.xlu1 %v2273_v29, %s5769_s6  ;;  %v573_v12 = vsel %vm440_vm1, %v8822_v36, %v8082_v45  ;;  %v1404_v29 = vadd.f32 %v1393_v15, %v1145_v49  ;;  %v831_v51 = vsel %vm699_vm2, %v8288_v40, %v8913_v55  ;;  %v1392_v32 = vsel %vm1217_vm4, %v8926_v22, %v8868_v46  ;;  %v3742_v45 = vld [vmem:[%s10007_s3 + $0xbe8] sm:$0xff] }
 0x24f   :  { %v1342_v38 = vpop.permute.xlu0 %1341  ;;  %v583_v36 = vadd.f32 %v572_v37, %v324_v44  ;;  %v1144_v62 = vadd.f32 %v1133_v47, %v885_v57  ;;  %v1965_v40 = vsel %vm1769_vm6, %v1955_v8, %v9088_v9  ;;  %v832_v46 = vsel %vm699_vm2, %v8913_v55, %v8144_v25 }
 0x250   :  { %v9122_v39 = vpop.permute.xlu1 %1952  ;;  %5271 = vmatpush3.bf16.msra.mxu1 %v5270_v60  ;;  %v1688_v60 = vadd.f32 %v1676_v28, %v1404_v29  ;;  %v1675_v17 = vsel %vm1480_vm5, %v9030_v34, %v8960_v61  ;;  %v5278_v50 = vpack.c.bf16 %v3431_v6, %v3430_v52  ;;  %v584_v4 = vadd.f32 %v573_v12, %v325_v42 }
 0x251   :  { %2285 = vrot.lane.b32.xlu0 %v8994_v20, %s5769_s6  ;;  %5273 = vmatprep.subr.bf16.mxu1 %v5272_v23  ;;  %v842_v48 = vadd.f32 %v831_v51, %v583_v36  ;;  %v1403_v35 = vadd.f32 %v1392_v32, %v1144_v62  ;;  %v5319_v15 = vpack.c.bf16 %v3742_v45, %v3741_v7  ;;  %v4443_v20 = vld [vmem:[%s10008_s4] ss:$0 sm:$0xff]  ;;  %v10081_v32 = vld [vmem:[#allocation9_spill] sm:$0xff] }
 0x252   :  { %391 = vrot.lane.b32.xlu1 %v9009_v19, %s5762_s10  ;;  %v1090_v25 = vsel %vm958_vm3, %v8404_v3, %v9005_v56  ;;  %v1091_v61 = vsel %vm958_vm3, %v9005_v56, %v8230_v1  ;;  %v1977_v55 = vadd.f32 %v1965_v40, %v1688_v60  ;;  %v1964_v19 = vsel %vm1769_vm6, %v9122_v39, %v1955_v8  ;;  %v10080_v51 = vld [vmem:[#allocation16_spill] sm:$0xff] }
 0x253   :  { %v2244_v16 = vpop.permute.xlu0 %2243  ;;  %v843_v37 = vadd.f32 %v832_v46, %v584_v4  ;;  %v1687_v47 = vadd.f32 %v1675_v17, %v1403_v35  ;;  %v1349_v1 = vsel %vm1217_vm4, %v8511_v21, %v1342_v38  ;;  %v1350_v3 = vsel %vm1217_vm4, %v1342_v38, %v8290_v5  ;;  %v10082_v40 = vld [vmem:[#allocation24_spill] sm:$0xff] }
 0x254   :  { %v9153_v23 = vpop.permute.xlu1 %2245  ;;  %v4624_v49 = vpop.f32.mrb[6].mxu1  ;;  %5275 = vmatpush3.bf16.msra.mxu1 %v5274_v31  ;;  %v10078_v31 = vld [vmem:[#allocation8_spill] sm:$0xff]  ;;  %v1101_v28 = vadd.f32 %v1090_v25, %v842_v48  ;;  %v1153_v46 = vmul.f32 %v8896_v30, %v10082_v40  ;;  %v10083_v48 = vld [vmem:[#allocation10_spill] sm:$0xff] }
 0x255   :  { %v2254_v44 = vsel %vm2058_vm7, %v2244_v16, %v9153_v23  ;;  %v4625_v42 = vpop.f32.mrb[7].mxu1  ;;  %393 = vrot.lane.b32.xlu0 %v9018_v53, %s5762_s10  ;;  %5277 = vmatprep.subr.bf16.mxu1 %v5276_v26  ;;  %v5525_v57 = vadd.f32 %v4443_v20, %v10078_v31  ;;  %v1102_v52 = vadd.f32 %v1091_v61, %v843_v37  ;;  %v10079_v53 = vld [vmem:[#allocation20_spill] sm:$0xff]  ;;  %v10085_v61 = vld [vmem:[#allocation19_spill] sm:$0xff]  ;;  %v9199_v37 = vld [vmem:[%s10006_s2 + $0x28] sm:$0xff] }
 0x256   :  { %v2266_v56 = vadd.f32 %v2254_v44, %v1977_v55  ;;  %v4626_v8 = vadd.f32 %v4625_v42, %v4624_v49  ;;  %650 = vrot.lane.b32.xlu1 %v9022_v10, %s5763_s12  ;;  %v1976_v6 = vadd.f32 %v1964_v19, %v1687_v47  ;;  %v1360_v7 = vadd.f32 %v1349_v1, %v1101_v28  ;;  %v10086_v19 = vld [vmem:[#allocation17_spill] sm:$0xff] }
 0x257   :  { %v1618_v12 = vpop.permute.xlu0 %1617  ;;  %v1361_v10 = vadd.f32 %v1350_v3, %v1102_v52 }
 0x258   :  { %v4475_v29 = vmul.f32 -1.442695, %v2266_v56  ;;  %v2933_v26 = vadd.f32 %v4626_v8, %v10079_v53  ;;  %v1627_v21 = vsel %vm1480_vm5, %v10080_v51, %v1618_v12  ;;  %v1628_v5 = vsel %vm1480_vm5, %v1618_v12, %v10081_v32  ;;  %v9171_v38 = vpop.permute.xlu1 %2241  ;;  %5279 = vmatpush3.bf16.msra.mxu1 %v5278_v50  ;;  %v10087_v8 = vld [vmem:[#allocation25_spill] sm:$0xff] }
 0x259   :  { %v2253_v45 = vsel %vm2058_vm7, %v9171_v38, %v2244_v16  ;;  %652 = vrot.lane.b32.xlu0 %v9034_v24, %s5763_s12  ;;  %5320 = vmatprep.subr.bf16.mxu1 %v5319_v15  ;;  %v1639_v60 = vadd.f32 %v1627_v21, %v1360_v7  ;;  %v1640_v17 = vadd.f32 %v1628_v5, %v1361_v10  ;;  %v10084_v16 = vld [vmem:[#allocation15_spill] sm:$0xff]  ;;  %v10089_v51 = vld [vmem:[#allocation13_spill] sm:$0xff] }
 0x25a   :  { %5642 = vpow2.f32 %v4475_v29  ;;  %v9177_v36 = vadd.f32 %v5525_v57, %v2933_v26  ;;  %v2265_v62 = vadd.f32 %v2253_v45, %v1976_v6  ;;  %909 = vrot.lane.b32.xlu1 %v9051_v54, %s5764_s14  ;;  %v1154_v54 = vmul.f32 %v9014_v43, %v10082_v40  ;;  %v10088_v29 = vld [vmem:[#allocation26_spill] sm:$0xff]  ;;  %v9218_v26 = vld [vmem:[%s10006_s2 + $0x8] sm:$0xff] }
 0x25b   :  { %v1907_v50 = vpop.permute.xlu0 %1906  ;;  %v1412_v31 = vmul.f32 %v8896_v30, %v10087_v8  ;;  %v1413_v57 = vmul.f32 %v9014_v43, %v10087_v8  ;;  %v637_v12 = vmul.f32 %v9199_v37, %v8695_v2  ;;  %v1696_v53 = vmul.f32 %v8896_v30, %v10088_v29  ;;  %v9225_v2 = vld [vmem:[%s10006_s2] sm:$0xff] }
 0x25c   :  { %v4474_v4 = vmul.f32 -1.442695, %v2265_v62  ;;  %v1916_v35 = vsel %vm1769_vm6, %v10083_v48, %v1907_v50  ;;  %v1917_v24 = vsel %vm1769_vm6, %v1907_v50, %v10084_v16  ;;  %v2196_v15 = vpop.permute.xlu1 %2195  ;;  %v130_v21 = vmul.f32 %v9218_v26, %v10089_v51  ;;  %v10090_v50 = vld [vmem:[#allocation12_spill] sm:$0xff] }
 0x25d   :  { %v1928_v20 = vadd.f32 %v1916_v35, %v1639_v60  ;;  %v1929_v25 = vadd.f32 %v1917_v24, %v1640_v17  ;;  %911 = vrot.lane.b32.xlu0 %v9059_v41, %s5764_s14  ;;  %v2205_v55 = vsel %vm2058_vm7, %v10085_v61, %v2196_v15  ;;  %v2206_v49 = vsel %vm2058_vm7, %v2196_v15, %v10086_v19  ;;  %v10091_v15 = vld [vmem:[#allocation27_spill] sm:$0xff] }
 0x25e   :  { %5644 = vpow2.f32 %v4474_v4  ;;  %1168 = vrot.lane.b32.xlu1 %v1153_v46, %s5765_s16  ;;  %v378_v41 = vmul.f32 %v9199_v37, %v8671_v0  ;;  %v129_v7 = vmul.f32 %v9225_v2, %v10089_v51  ;;  %v1697_v62 = vmul.f32 %v9014_v43, %v10088_v29 }
 0x25f   :  { %v2217_v47 = vadd.f32 %v2205_v55, %v1928_v20  ;;  %v2218_v44 = vadd.f32 %v2206_v49, %v1929_v25  ;;  %v345_v42 = vpop.permute.xlu0 %344  ;;  %v896_v46 = vmul.f32 %v9199_v37, %v8712_v11  ;;  %v136_v60 = vadd.f32 %v130_v21, %v8514_v27 }
 0x260   :  { %v343_v1 = vpop.permute.xlu1 %342  ;;  %v355_v4 = vsel %vm181_vm0, %v345_v42, %v10090_v50  ;;  %v135_v48 = vadd.f32 %v129_v7, %v8514_v27  ;;  %v1985_v20 = vmul.f32 %v8896_v30, %v10091_v15  ;;  %v1986_v61 = vmul.f32 %v9014_v43, %v10091_v15  ;;  %v3792_v7 = vld [vmem:[%s10007_s3 + $0xd78] sm:$0xff] }
 0x261   :  { %v4467_v3 = vmul.f32 -1.442695, %v2217_v47  ;;  %v4468_v56 = vmul.f32 -1.442695, %v2218_v44  ;;  %1170 = vrot.lane.b32.xlu0 %v1154_v54, %s5765_s16  ;;  %v354_v24 = vsel %vm181_vm0, %v343_v1, %v345_v42  ;;  %v366_v19 = vadd.f32 %v355_v4, %v136_v60  ;;  %v3790_v1 = vld [vmem:[%s10007_s3 + $0xd68] sm:$0xff] }
 0x262   :  { %395 = vrot.lane.b32.xlu1 %v378_v41, %s5762_s10  ;;  %v365_v47 = vadd.f32 %v354_v24, %v135_v48  ;;  %v1414_v60 = vmul.f32 %v9199_v37, %v10087_v8  ;;  %v3725_v48 = vld [vmem:[%s10007_s3 + $0xb60] sm:$0xff] }
 0x263   :  { %5646 = vpow2.f32 %v4467_v3  ;;  %v604_v28 = vpop.permute.xlu0 %603 }
 0x264   :  { %v5643_v52 = vpop.eup %5642  ;;  %5648 = vpow2.f32 %v4468_v56  ;;  %v602_v0 = vpop.permute.xlu1 %601  ;;  %v614_v54 = vsel %vm440_vm1, %v604_v28, %v8720_v58  ;;  %v3789_v58 = vld [vmem:[%s10007_s3 + $0xd60] sm:$0xff] }
 0x265   :  { %v3710_v6 = vadd.f32 1.0, %v5643_v52  ;;  %1427 = vrot.lane.b32.xlu0 %v1412_v31, %s5766_s18  ;;  %v613_v49 = vsel %vm440_vm1, %v602_v0, %v604_v28  ;;  %v625_v56 = vadd.f32 %v614_v54, %v366_v19  ;;  %v10092_v52 = vld [vmem:[#allocation28_spill] sm:$0xff]  ;;  %v5384_v21 = vpack.c.bf16 %v3790_v1, %v3789_v58  ;;  %v3794_v54 = vld [vmem:[%s10007_s3 + $0xd88] sm:$0xff] }
 0x266   :  { %1429 = vrot.lane.b32.xlu1 %v1413_v57, %s5766_s18  ;;  %v1155_v57 = vmul.f32 %v9199_v37, %v10082_v40  ;;  %v2274_v0 = vmul.f32 %v8896_v30, %v10092_v52 }
 0x267   :  { %5650 = vrcp.f32 %v3710_v6  ;;  %v863_v32 = vpop.permute.xlu0 %862 }
 0x268   :  { %v5645_v5 = vpop.eup %5644  ;;  %v861_v10 = vpop.permute.xlu1 %860  ;;  %v873_v44 = vsel %vm699_vm2, %v863_v32, %v8769_v18  ;;  %v624_v18 = vadd.f32 %v613_v49, %v365_v47 }
 0x269   :  { %v3709_v45 = vadd.f32 1.0, %v5645_v5  ;;  %654 = vrot.lane.b32.xlu0 %v637_v12, %s5763_s12  ;;  %v872_v31 = vsel %vm699_vm2, %v861_v10, %v863_v32  ;;  %v884_v6 = vadd.f32 %v873_v44, %v625_v56  ;;  %v3728_v56 = vld [vmem:[%s10007_s3 + $0xb78] sm:$0xff] }
 0x26a   :  { %1713 = vrot.lane.b32.xlu1 %v1696_v53, %s5767_s1  ;;  %v883_v32 = vadd.f32 %v872_v31, %v624_v18  ;;  %v3745_v31 = vld [vmem:[%s10007_s3 + $0xc00] sm:$0xff] }
 0x26b   :  { %5652 = vrcp.f32 %v3709_v45  ;;  %v1122_v17 = vpop.permute.xlu0 %1121 }
 0x26c   :  { %v1120_v35 = vpop.permute.xlu1 %1119  ;;  %v1132_v28 = vsel %vm958_vm3, %v1122_v17, %v8832_v13  ;;  %v3791_v13 = vld [vmem:[%s10007_s3 + $0xd70] sm:$0xff] }
 0x26d   :  { %v5647_v16 = vpop.eup %5646  ;;  %1715 = vrot.lane.b32.xlu0 %v1697_v62, %s5767_s1  ;;  %v1131_v12 = vsel %vm958_vm3, %v1120_v35, %v1122_v17  ;;  %v1143_v30 = vadd.f32 %v1132_v28, %v884_v6  ;;  %v2275_v62 = vmul.f32 %v9014_v43, %v10092_v52  ;;  %v3726_v43 = vld [vmem:[%s10007_s3 + $0xb68] sm:$0xff]  ;;  %v5387_v35 = vpack.c.bf16 %v3792_v7, %v3791_v13  ;;  %v3729_v7 = vld [vmem:[%s10007_s3 + $0xb80] sm:$0xff] }
 0x26e   :  { %v5649_v25 = vpop.eup %5648  ;;  %v3368_v11 = vadd.f32 1.0, %v5647_v16  ;;  %913 = vrot.lane.b32.xlu1 %v896_v46, %s5764_s14  ;;  %v1142_v46 = vadd.f32 %v1131_v12, %v883_v32  ;;  %v5321_v49 = vpack.c.bf16 %v3726_v43, %v3725_v48  ;;  %v3746_v6 = vld [vmem:[%s10007_s3 + $0xc08] sm:$0xff]  ;;  %v3795_v12 = vld [vmem:[%s10007_s3 + $0xd90] sm:$0xff]  ;;  %v3797_v43 = vld [vmem:[%s10007_s3 + $0xda0] sm:$0xff] }
 0x26f   :  { %v3369_v55 = vadd.f32 1.0, %v5649_v25  ;;  %v1381_v41 = vpop.permute.xlu0 %1380  ;;  %v3744_v25 = vld [vmem:[%s10007_s3 + $0xbf8] sm:$0xff] }
 0x270   :  { %5654 = vrcp.f32 %v3368_v11  ;;  %v1379_v42 = vpop.permute.xlu1 %1378  ;;  %v1391_v5 = vsel %vm1217_vm4, %v1381_v41, %v8926_v22  ;;  %v3793_v11 = vld [vmem:[%s10007_s3 + $0xd80] sm:$0xff] }
 0x271   :  { %v5651_v3 = vpop.eup %5650  ;;  %5656 = vrcp.f32 %v3369_v55  ;;  %2002 = vrot.lane.b32.xlu0 %v1985_v20, %s5768_s19  ;;  %v1390_v45 = vsel %vm1217_vm4, %v1379_v42, %v1381_v41  ;;  %v1402_v17 = vadd.f32 %v1391_v5, %v1143_v30  ;;  %v134_v20 = vmul.f32 %v9199_v37, %v10089_v51  ;;  %v10093_v41 = vld [vmem:[#allocation18_spill] sm:$0xff] }
 0x272   :  { %2004 = vrot.lane.b32.xlu1 %v1986_v61, %s5768_s19  ;;  %3953 = vmatprep.mubr.f32.mxu0 %v5651_v3  ;;  %v1401_v16 = vadd.f32 %v1390_v45, %v1142_v46  ;;  %v1698_v51 = vmul.f32 %v9199_v37, %v10088_v29  ;;  %v1699_v47 = vmul.f32 %v10093_v41, %v10088_v29  ;;  %v3727_v3 = vld [vmem:[%s10007_s3 + $0xb70] sm:$0xff]  ;;  %v10097_v41 = vld [vmem:[#allocation23_spill] sm:$0xff] }
 0x273   :  { %v1662_v53 = vpop.permute.xlu0 %1661  ;;  %v5325_v5 = vpack.c.bf16 %v3728_v56, %v3727_v3  ;;  %v3747_v46 = vld [vmem:[%s10007_s3 + $0xc10] sm:$0xff] }
 0x274   :  { %v1660_v40 = vpop.permute.xlu1 %1659  ;;  %v1674_v22 = vsel %vm1480_vm5, %v1662_v53, %v9030_v34  ;;  %v3743_v34 = vld [vmem:[%s10007_s3 + $0xbf0] sm:$0xff] }
 0x275   :  { %v5653_v10 = vpop.eup %5652  ;;  %1172 = vrot.lane.b32.xlu0 %v1155_v57, %s5765_s16  ;;  %v1673_v50 = vsel %vm1480_vm5, %v1660_v40, %v1662_v53  ;;  %v1686_v61 = vadd.f32 %v1674_v22, %v1402_v17  ;;  %v5323_v1 = vpack.c.bf16 %v3744_v25, %v3743_v34  ;;  %v5390_v57 = vpack.c.bf16 %v3794_v54, %v3793_v11  ;;  %v3796_v53 = vld [vmem:[%s10007_s3 + $0xd98] sm:$0xff]  ;;  %v5727_v40 = vld [vmem:[%s10006_s2 + $0x30] sm:$0xff]  ;;  %v10094_v17 = vld [vmem:[#allocation21_spill] sm:$0xff] }
 0x276   :  { %2291 = vrot.lane.b32.xlu1 %v2274_v0, %s5769_s6  ;;  %3954 = vmatmul.mubr.f32.vlgmr.msra.gmra.mrb[2].mxu0 %v5653_v10  ;;  %v1685_v19 = vadd.f32 %v1673_v50, %v1401_v16  ;;  %v140_v0 = vadd.f32 %v134_v20, %v8514_v27  ;;  %v1987_v27 = vmul.f32 %v9199_v37, %v10091_v15  ;;  %v3730_v10 = vld [vmem:[%s10007_s3 + $0xb88] sm:$0xff]  ;;  %v10096_v20 = vld [vmem:[#allocation22_spill] sm:$0xff] }
 0x277   :  { %v1951_v4 = vpop.permute.xlu0 %1950  ;;  %5385 = vmatpush1.bf16.msra.mxu0 %v5384_v21  ;;  %v1988_v13 = vmul.f32 %v5727_v40, %v10091_v15  ;;  %v3748_v15 = vld [vmem:[%s10007_s3 + $0xc18] sm:$0xff]  ;;  %v5393_v22 = vpack.c.bf16 %v3796_v53, %v3795_v12  ;;  %v3798_v34 = vld [vmem:[%s10007_s3 + $0xda8] sm:$0xff]  ;;  %v2277_v11 = vmul.f32 %v5727_v40, %v10092_v52 }
 0x278   :  { %v1963_v8 = vsel %vm1769_vm6, %v1951_v4, %v9122_v39  ;;  %v1949_v24 = vpop.permute.xlu1 %1948  ;;  %5386 = vmatprep.subr.bf16.mxu0 %v10047_v59  ;;  %v5331_v54 = vpack.c.bf16 %v3748_v15, %v3747_v46 }
 0x279   :  { %v1962_v39 = vsel %vm1769_vm6, %v1949_v24, %v1951_v4  ;;  %2293 = vrot.lane.b32.xlu0 %v2275_v62, %s5769_s6  ;;  %v1975_v42 = vadd.f32 %v1963_v8, %v1686_v61  ;;  %v5327_v62 = vpack.c.bf16 %v3746_v6, %v3745_v31  ;;  %v5329_v8 = vpack.c.bf16 %v3730_v10, %v3729_v7  ;;  %v3731_v61 = vld [vmem:[%s10007_s3 + $0xb90] sm:$0xff]  ;;  %v3752_v6 = vld [vmem:[%s10007_s3 + $0xc38] sm:$0xff] }
 0x27a   :  { %v5655_v55 = vpop.eup %5654  ;;  %1431 = vrot.lane.b32.xlu1 %v1414_v60, %s5766_s18  ;;  %v1974_v18 = vadd.f32 %v1962_v39, %v1685_v19  ;;  %v2276_v24 = vmul.f32 %v9199_v37, %v10092_v52  ;;  %v3732_v37 = vld [vmem:[%s10007_s3 + $0xb98] sm:$0xff]  ;;  %v3749_v19 = vld [vmem:[%s10007_s3 + $0xc20] sm:$0xff]  ;;  %v3750_v52 = vld [vmem:[%s10007_s3 + $0xc28] sm:$0xff] }
 0x27b   :  { %v5657_v44 = vpop.eup %5656  ;;  %v2240_v58 = vpop.permute.xlu0 %2239  ;;  %5388 = vmatpush1.bf16.msra.mxu0 %v5387_v35  ;;  %v10095_v35 = vld [vmem:[#allocation14_spill] sm:$0xff]  ;;  %v5333_v56 = vpack.c.bf16 %v3732_v37, %v3731_v61  ;;  %v5335_v31 = vpack.c.bf16 %v3750_v52, %v3749_v19  ;;  %v3736_v7 = vld [vmem:[%s10007_s3 + $0xbb8] sm:$0xff]  ;;  %v3806_v37 = vld [vmem:[%s10007_s3 + $0xde8] sm:$0xff] }
 0x27c   :  { %v2252_v29 = vsel %vm2058_vm7, %v2240_v58, %v9171_v38  ;;  %v2238_v28 = vpop.permute.xlu1 %2237  ;;  %3612 = vmatprep.mubr.f32.mxu1 %v5657_v44  ;;  %5389 = vmatprep.subr.bf16.mxu0 %v10047_v59 }
 0x27d   :  { %v2264_v21 = vadd.f32 %v2252_v29, %v1975_v42  ;;  %v2251_v38 = vsel %vm2058_vm7, %v2238_v28, %v2240_v58  ;;  %3613 = vmatmul.mubr.f32.vlgmr.msra.gmra.mrb[14].mxu1 %v5655_v55  ;;  %1717 = vrot.lane.b32.xlu0 %v1698_v51, %s5767_s1  ;;  %v3799_v42 = vld [vmem:[%s10007_s3 + $0xdb0] sm:$0xff]  ;;  %v3800_v58 = vld [vmem:[%s10007_s3 + $0xdb8] sm:$0xff] }
 0x27e   :  { %v2263_v32 = vadd.f32 %v2251_v38, %v1974_v18  ;;  %5322 = vmatpush3.bf16.msra.mxu1 %v5321_v49  ;;  %1719 = vrot.lane.b32.xlu1 %v1699_v47, %s5767_s1  ;;  %v5396_v49 = vpack.c.bf16 %v3798_v34, %v3797_v43  ;;  %v5399_v12 = vpack.c.bf16 %v3800_v58, %v3799_v42  ;;  %v3801_v38 = vld [vmem:[%s10007_s3 + $0xdc0] sm:$0xff]  ;;  %v3739_v58 = vld [vmem:[%s10007_s3 + $0xbd0] sm:$0xff] }
 0x27f   :  { %v4473_v30 = vmul.f32 -1.442695, %v2264_v21  ;;  %v353_v45 = vpop.permute.xlu0 %352  ;;  %5324 = vmatprep.subr.bf16.mxu1 %v5323_v1  ;;  %5391 = vmatpush1.bf16.msra.mxu0 %v5390_v57  ;;  %v3733_v57 = vld [vmem:[%s10007_s3 + $0xba0] sm:$0xff] }
 0x280   :  { %v4472_v60 = vmul.f32 -1.442695, %v2263_v32  ;;  %v358_v50 = vsel %vm181_vm0, %v10094_v17, %v353_v45  ;;  %v370_v4 = vadd.f32 %v353_v45, %v140_v0  ;;  %v612_v48 = vpop.permute.xlu1 %611  ;;  %5392 = vmatprep.subr.bf16.mxu0 %v10047_v59  ;;  %v3734_v0 = vld [vmem:[%s10007_s3 + $0xba8] sm:$0xff] }
 0x281   :  { %5658 = vpow2.f32 %v4473_v30  ;;  %v369_v16 = vadd.f32 %v358_v50, %v10095_v35  ;;  %2006 = vrot.lane.b32.xlu0 %v1987_v27, %s5768_s19  ;;  %v617_v25 = vsel %vm440_vm1, %v10096_v20, %v612_v48  ;;  %v3802_v27 = vld [vmem:[%s10007_s3 + $0xdc8] sm:$0xff]  ;;  %v5337_v40 = vpack.c.bf16 %v3734_v0, %v3733_v57  ;;  %v3803_v50 = vld [vmem:[%s10007_s3 + $0xdd0] sm:$0xff] }
 0x282   :  { %5660 = vpow2.f32 %v4472_v60  ;;  %5326 = vmatpush3.bf16.msra.mxu1 %v5325_v5  ;;  %2008 = vrot.lane.b32.xlu1 %v1988_v13, %s5768_s19  ;;  %v629_v51 = vadd.f32 %v612_v48, %v370_v4  ;;  %v5402_v46 = vpack.c.bf16 %v3802_v27, %v3801_v38  ;;  %v3754_v17 = vld [vmem:[%s10007_s3 + $0xc48] sm:$0xff]  ;;  %v3804_v4 = vld [vmem:[%s10007_s3 + $0xdd8] sm:$0xff] }
 0x283   :  { %v628_v39 = vadd.f32 %v617_v25, %v369_v16  ;;  %v871_v55 = vpop.permute.xlu0 %870  ;;  %5328 = vmatprep.subr.bf16.mxu1 %v5327_v62  ;;  %5394 = vmatpush1.bf16.msra.mxu0 %v5393_v22  ;;  %v3737_v25 = vld [vmem:[%s10007_s3 + $0xbc0] sm:$0xff]  ;;  %v4066_v27 = vld [vmem:[%s10007_s3 + $0xe38] sm:$0xff] }
 0x284   :  { %v876_v47 = vsel %vm699_vm2, %v10097_v41, %v871_v55  ;;  %v1130_v44 = vpop.permute.xlu1 %1129  ;;  %5395 = vmatprep.subr.bf16.mxu0 %v10047_v59  ;;  %v888_v18 = vadd.f32 %v871_v55, %v629_v51  ;;  %v3756_v51 = vld [vmem:[%s10007_s3 + $0xc58] sm:$0xff]  ;;  %v3805_v55 = vld [vmem:[%s10007_s3 + $0xde0] sm:$0xff] }
 0x285   :  { %v887_v1 = vadd.f32 %v876_v47, %v628_v39  ;;  %2295 = vrot.lane.b32.xlu0 %v2276_v24, %s5769_s6  ;;  %v1135_v3 = vsel %vm958_vm3, %v8796_v14, %v1130_v44  ;;  %v3751_v14 = vld [vmem:[%s10007_s3 + $0xc30] sm:$0xff] }
 0x286   :  { %5330 = vmatpush3.bf16.msra.mxu1 %v5329_v8  ;;  %2297 = vrot.lane.b32.xlu1 %v2277_v11, %s5769_s6  ;;  %v5339_v13 = vpack.c.bf16 %v3752_v6, %v3751_v14  ;;  %v1147_v30 = vadd.f32 %v1130_v44, %v888_v18  ;;  %v3738_v11 = vld [vmem:[%s10007_s3 + $0xbc8] sm:$0xff]  ;;  %v3808_v18 = vld [vmem:[%s10007_s3 + $0xdf8] sm:$0xff] }
 0x287   :  { %v1146_v29 = vadd.f32 %v1135_v3, %v887_v1  ;;  %v1389_v28 = vpop.permute.xlu0 %1388  ;;  %5332 = vmatprep.subr.bf16.mxu1 %v5331_v54  ;;  %5397 = vmatpush1.bf16.msra.mxu0 %v5396_v49  ;;  %v5405_v54 = vpack.c.bf16 %v3804_v4, %v3803_v50  ;;  %v5345_v41 = vpack.c.bf16 %v3738_v11, %v3737_v25  ;;  %v3740_v1 = vld [vmem:[%s10007_s3 + $0xbd8] sm:$0xff]  ;;  %v4071_v11 = vld [vmem:[%s10007_s3 + $0xe60] sm:$0xff] }
 0x288   :  { %v1394_v53 = vsel %vm1217_vm4, %v8876_v33, %v1389_v28  ;;  %v1670_v21 = vpop.permute.xlu1 %1669  ;;  %5398 = vmatprep.subr.bf16.mxu0 %v10047_v59  ;;  %v3735_v33 = vld [vmem:[%s10007_s3 + $0xbb0] sm:$0xff]  ;;  %v1406_v8 = vadd.f32 %v1389_v28, %v1147_v30  ;;  %v5408_v3 = vpack.c.bf16 %v3806_v37, %v3805_v55  ;;  %v4083_v28 = vld [vmem:[%s10007_s3 + $0xec0] sm:$0xff]  ;;  %v5349_v14 = vpack.c.bf16 %v3740_v1, %v3739_v58  ;;  %v4070_v25 = vld [vmem:[%s10007_s3 + $0xe58] sm:$0xff] }
 0x289   :  { %v1405_v32 = vadd.f32 %v1394_v53, %v1146_v29  ;;  %v1677_v5 = vsel %vm1480_vm5, %v8971_v63, %v1670_v21  ;;  %v3753_v63 = vld [vmem:[%s10007_s3 + $0xc40] sm:$0xff]  ;;  %v5341_v43 = vpack.c.bf16 %v3736_v7, %v3735_v33  ;;  %v4082_v29 = vld [vmem:[%s10007_s3 + $0xeb8] sm:$0xff]  ;;  %v4084_v33 = vld [vmem:[%s10007_s3 + $0xec8] sm:$0xff]  ;;  %v5432_v55 = vpack.c.bf16 %v4071_v11, %v4070_v25 }
 0x28a   :  { %5334 = vmatpush3.bf16.msra.mxu1 %v5333_v56  ;;  %v5343_v20 = vpack.c.bf16 %v3754_v17, %v3753_v63  ;;  %v5422_v38 = vpack.c.bf16 %v4083_v28, %v4082_v29  ;;  %v4085_v7 = vld [vmem:[%s10007_s3 + $0xed0] sm:$0xff]  ;;  %v4090_v1 = vld [vmem:[%s10007_s3 + $0xef8] sm:$0xff]  ;;  %v4075_v29 = vld [vmem:[%s10007_s3 + $0xe80] sm:$0xff] }
 0x28b   :  { %v5659_v10 = vpop.eup %5658  ;;  %v1689_v45 = vadd.f32 %v1677_v5, %v1405_v32  ;;  %v1672_v62 = vpop.permute.xlu0 %1671  ;;  %5336 = vmatprep.subr.bf16.mxu1 %v5335_v31  ;;  %5400 = vmatpush1.bf16.msra.mxu0 %v5399_v12  ;;  %v4067_v32 = vld [vmem:[%s10007_s3 + $0xe40] sm:$0xff]  ;;  %v4069_v17 = vld [vmem:[%s10007_s3 + $0xe50] sm:$0xff] }
 0x28c   :  { %v5661_v15 = vpop.eup %5660  ;;  %v3708_v22 = vadd.f32 1.0, %v5659_v10  ;;  %v1959_v60 = vpop.permute.xlu1 %1958  ;;  %5401 = vmatprep.subr.bf16.mxu0 %v10047_v59  ;;  %v1678_v35 = vsel %vm1480_vm5, %v1670_v21, %v1672_v62  ;;  %v3809_v21 = vld [vmem:[%s10007_s3 + $0xe00] sm:$0xff]  ;;  %v4133_v25 = vld [vmem:[%s10007_s3 + $0x1050] sm:$0xff] }
 0x28d   :  { %v1966_v48 = vsel %vm1769_vm6, %v9088_v9, %v1959_v60  ;;  %v3707_v34 = vadd.f32 1.0, %v5661_v15  ;;  %v3755_v9 = vld [vmem:[%s10007_s3 + $0xc50] sm:$0xff]  ;;  %v1690_v19 = vadd.f32 %v1678_v35, %v1406_v8 }
 0x28e   :  { %5662 = vrcp.f32 %v3708_v22  ;;  %v1978_v16 = vadd.f32 %v1966_v48, %v1689_v45  ;;  %5338 = vmatpush3.bf16.msra.mxu1 %v5337_v40  ;;  %v5347_v42 = vpack.c.bf16 %v3756_v51, %v3755_v9  ;;  %v5424_v45 = vpack.c.bf16 %v4067_v32, %v4066_v27  ;;  %v3811_v15 = vld [vmem:[%s10007_s3 + $0xe10] sm:$0xff]  ;;  %v3812_v48 = vld [vmem:[%s10007_s3 + $0xe18] sm:$0xff] }
 0x28f   :  { %v1961_v24 = vpop.permute.xlu0 %1960  ;;  %5340 = vmatprep.subr.bf16.mxu1 %v5339_v13  ;;  %5403 = vmatpush1.bf16.msra.mxu0 %v5402_v46  ;;  %5664 = vrcp.f32 %v3707_v34  ;;  %v3810_v13 = vld [vmem:[%s10007_s3 + $0xe08] sm:$0xff]  ;;  %v5426_v22 = vpack.c.bf16 %v4085_v7, %v4084_v33  ;;  %v4087_v34 = vld [vmem:[%s10007_s3 + $0xee0] sm:$0xff]  ;;  %v5417_v8 = vpack.c.bf16 %v3812_v48, %v3811_v15  ;;  %v4089_v51 = vld [vmem:[%s10007_s3 + $0xef0] sm:$0xff]  ;;  %v9630_v15 = vstv %s9579_s21 }
 0x290   :  { %v1967_v61 = vsel %vm1769_vm6, %v1959_v60, %v1961_v24  ;;  %v2248_v39 = vpop.permute.xlu1 %2247  ;;  %5404 = vmatprep.subr.bf16.mxu0 %v10047_v59  ;;  %v5414_v46 = vpack.c.bf16 %v3810_v13, %v3809_v21  ;;  %v4068_v60 = vld [vmem:[%s10007_s3 + $0xe48] sm:$0xff]  ;;  %v3813_v24 = vld [vmem:[%s10007_s3 + $0xe20] sm:$0xff]  ;;  %v9602_v21 = vstv %s9560_s25  ;;  %v4077_v13 = vld [vmem:[%s10007_s3 + $0xe90] sm:$0xff] }
 0x291   :  { %v2255_v52 = vsel %vm2058_vm7, %v9153_v23, %v2248_v39  ;;  %v1979_v47 = vadd.f32 %v1967_v61, %v1690_v19  ;;  %v3807_v23 = vld [vmem:[%s10007_s3 + $0xdf0] sm:$0xff]  ;;  %v5428_v35 = vpack.c.bf16 %v4069_v17, %v4068_v60  ;;  %v3814_v61 = vld [vmem:[%s10007_s3 + $0xe28] sm:$0xff]  ;;  %v4094_v33 = vld [vmem:[%s10007_s3 + $0xf18] sm:$0xff]  ;;  %v144_v7 = vmul.f32 %v9218_v26, %v9602_v21 }
 0x292   :  { %v2267_v49 = vadd.f32 %v2255_v52, %v1978_v16  ;;  %5342 = vmatpush3.bf16.msra.mxu1 %v5341_v43  ;;  %v5411_v53 = vpack.c.bf16 %v3808_v18, %v3807_v23  ;;  %v4086_v43 = vld [vmem:[%s10007_s3 + $0xed8] sm:$0xff]  ;;  %v143_v26 = vmul.f32 %v9225_v2, %v9602_v21  ;;  %v4079_v48 = vld [vmem:[%s10007_s3 + $0xea0] sm:$0xff] }
 0x293   :  { %v2250_v44 = vpop.permute.xlu0 %2249  ;;  %5344 = vmatprep.subr.bf16.mxu1 %v5343_v20  ;;  %5406 = vmatpush1.bf16.msra.mxu0 %v5405_v54  ;;  %v5430_v20 = vpack.c.bf16 %v4087_v34, %v4086_v43  ;;  %v4074_v18 = vld [vmem:[%s10007_s3 + $0xe78] sm:$0xff]  ;;  %v4096_v43 = vld [vmem:[%s10007_s3 + $0xf28] sm:$0xff] }
 0x294   :  { %v4476_v56 = vmul.f32 -1.442695, %v2267_v49  ;;  %v2256_v31 = vsel %vm2058_vm7, %v2248_v39, %v2250_v44  ;;  %v9477_v57 = vpop.permute.xlu1 %387  ;;  %5407 = vmatprep.subr.bf16.mxu0 %v10047_v59  ;;  %v4088_v39 = vld [vmem:[%s10007_s3 + $0xee8] sm:$0xff]  ;;  %v5420_v49 = vpack.c.bf16 %v3814_v61, %v3813_v24  ;;  %v4073_v44 = vld [vmem:[%s10007_s3 + $0xe70] sm:$0xff]  ;;  %v149_v61 = vadd.f32 %v143_v26, %v9630_v15 }
 0x295   :  { %v2268_v0 = vadd.f32 %v2256_v31, %v1979_v47  ;;  %v4072_v47 = vld [vmem:[%s10007_s3 + $0xe68] sm:$0xff]  ;;  %v4097_v24 = vld [vmem:[%s10007_s3 + $0xf30] sm:$0xff] }
 0x296   :  { %5666 = vpow2.f32 %v4476_v56  ;;  %5346 = vmatpush3.bf16.msra.mxu1 %v5345_v41  ;;  %v5434_v41 = vpack.c.bf16 %v4089_v51, %v4088_v39  ;;  %v5436_v23 = vpack.c.bf16 %v4073_v44, %v4072_v47  ;;  %v4080_v51 = vld [vmem:[%s10007_s3 + $0xea8] sm:$0xff]  ;;  %v4134_v47 = vld [vmem:[%s10007_s3 + $0x1058] sm:$0xff]  ;;  %v4135_v44 = vld [vmem:[%s10007_s3 + $0x1060] sm:$0xff] }
 0x297   :  { %v4477_v6 = vmul.f32 -1.442695, %v2268_v0  ;;  %v9489_v12 = vpop.permute.xlu0 %389  ;;  %5348 = vmatprep.subr.bf16.mxu1 %v5347_v42  ;;  %5409 = vmatpush1.bf16.msra.mxu0 %v5408_v3  ;;  %v4091_v3 = vld [vmem:[%s10007_s3 + $0xf00] sm:$0xff]  ;;  %v10098_v0 = vmov 0.0  }
 0x298   :  { %v5663_v5 = vpop.eup %5662  ;;  %v9500_v40 = vpop.permute.xlu1 %385  ;;  %5410 = vmatprep.subr.bf16.mxu0 %v10047_v59  ;;  %v5438_v31 = vpack.c.bf16 %v4091_v3, %v4090_v1 }
 0x299   :  { %5668 = vpow2.f32 %v4477_v6  ;;  %v4659_v10 = vpop.f32.mrb[8].mxu1  ;;  %3883 = vmatprep.mubr.f32.mxu1 %v5663_v5  ;;  %v5665_v50 = vpop.eup %5664  ;;  %v4092_v6 = vld [vmem:[%s10007_s3 + $0xf08] sm:$0xff]  ;;  %v397_v1 = vsel %vm181_vm0, %v9500_v40, %v9477_v57 }
 0x29a   :  { %5350 = vmatpush3.bf16.msra.mxu1 %v5349_v14  ;;  %v4660_v30 = vpop.f32.mrb[9].mxu1  ;;  %v3815_v14 = vld [vmem:[%s10007_s3 + $0xe30] sm:$0xff]  ;;  %v4076_v5 = vld [vmem:[%s10007_s3 + $0xe88] sm:$0xff] }
 0x29b   :  { %v9512_v62 = vadd.f32 %v4660_v30, %v4659_v10  ;;  %v9514_v63 = vpop.permute.xlu0 %646  ;;  %5412 = vmatpush1.bf16.msra.mxu0 %v5411_v53  ;;  %5423 = vmatprep.subr.bf16.mxu1 %v5422_v38  ;;  %v4093_v53 = vld [vmem:[%s10007_s3 + $0xf10] sm:$0xff]  ;;  %v5440_v38 = vpack.c.bf16 %v4075_v29, %v4074_v18  ;;  %v4095_v30 = vld [vmem:[%s10007_s3 + $0xf20] sm:$0xff] }
 0x29c   :  { %v9525_v4 = vpop.permute.xlu1 %648  ;;  %5413 = vmatprep.subr.bf16.mxu0 %v10047_v59  ;;  %v5442_v32 = vpack.c.bf16 %v4093_v53, %v4092_v6  ;;  %v5446_v17 = vpack.c.bf16 %v4095_v30, %v4094_v33  ;;  %v408_v6 = vadd.f32 %v397_v1, %v149_v61 }
 0x29d   :  { %3884 = vmatmul.mubr.f32.vlgmr.msra.gmra.mrb[16].mxu1 %v5665_v50  ;;  %v4078_v50 = vld [vmem:[%s10007_s3 + $0xe98] sm:$0xff] }
 0x29e   :  { %5425 = vmatpush3.bf16.msra.mxu1 %v5424_v45  ;;  %v4130_v45 = vld [vmem:[%s10007_s3 + $0x1038] sm:$0xff]  ;;  %v5448_v39 = vpack.c.bf16 %v4079_v48, %v4078_v50 }
 0x29f   :  { %v9537_v16 = vpop.permute.xlu0 %644  ;;  %5415 = vmatpush1.bf16.msra.mxu0 %v5414_v46  ;;  %5427 = vmatprep.subr.bf16.mxu1 %v5426_v22  ;;  %v4131_v46 = vld [vmem:[%s10007_s3 + $0x1040] sm:$0xff]  ;;  %v5444_v22 = vpack.c.bf16 %v4077_v13, %v4076_v5 }
 0x2a0   :  { %v5667_v9 = vpop.eup %5666  ;;  %v9548_v54 = vpop.permute.xlu1 %905  ;;  %5416 = vmatprep.subr.bf16.mxu0 %v10047_v59  ;;  %v5487_v34 = vpack.c.bf16 %v4131_v46, %v4130_v45 }
 0x2a1   :  { %v3711_v19 = vadd.f32 1.0, %v5667_v9  ;;  %v398_v9 = vsel %vm181_vm0, %v9477_v57, %v9489_v12  ;;  %v656_v57 = vsel %vm440_vm1, %v9537_v16, %v9514_v63  ;;  %v4137_v16 = vld [vmem:[%s10007_s3 + $0x1070] sm:$0xff] }
 0x2a2   :  { %5429 = vmatpush3.bf16.msra.mxu1 %v5428_v35  ;;  %v150_v35 = vadd.f32 %v144_v7, %v9630_v15  ;;  %v667_v7 = vadd.f32 %v656_v57, %v408_v6  ;;  %v4142_v57 = vld [vmem:[%s10007_s3 + $0x1098] sm:$0xff] }
 0x2a3   :  { %v5669_v37 = vpop.eup %5668  ;;  %v9562_v52 = vpop.permute.xlu0 %907  ;;  %5418 = vmatpush1.bf16.msra.mxu0 %v5417_v8  ;;  %5431 = vmatprep.subr.bf16.mxu1 %v5430_v20  ;;  %v4132_v20 = vld [vmem:[%s10007_s3 + $0x1048] sm:$0xff] }
 0x2a4   :  { %v3712_v42 = vadd.f32 1.0, %v5669_v37  ;;  %v9570_v58 = vpop.permute.xlu1 %903  ;;  %5419 = vmatprep.subr.bf16.mxu0 %v10047_v59  ;;  %v916_v18 = vsel %vm699_vm2, %v9548_v54, %v9562_v52 }
 0x2a5   :  { %v915_v13 = vsel %vm699_vm2, %v9570_v58, %v9548_v54 }
 0x2a6   :  { %5670 = vrcp.f32 %v3712_v42  ;;  %5433 = vmatpush3.bf16.msra.mxu1 %v5432_v55  ;;  %v657_v55 = vsel %vm440_vm1, %v9514_v63, %v9525_v4  ;;  %v409_v42 = vadd.f32 %v398_v9, %v150_v35  ;;  %v4136_v63 = vld [vmem:[%s10007_s3 + $0x1068] sm:$0xff]  ;;  %v926_v46 = vadd.f32 %v915_v13, %v667_v7 }
 0x2a7   :  { %5672 = vrcp.f32 %v3711_v19  ;;  %v9581_v56 = vpop.permute.xlu0 %1164  ;;  %5421 = vmatpush1.bf16.msra.mxu0 %v5420_v49  ;;  %5435 = vmatprep.subr.bf16.mxu1 %v5434_v41  ;;  %v5450_v19 = vpack.c.bf16 %v4097_v24, %v4096_v43  ;;  %v4081_v49 = vld [vmem:[%s10007_s3 + $0xeb0] sm:$0xff]  ;;  %v5490_v41 = vpack.c.bf16 %v4133_v25, %v4132_v20  ;;  %v5496_v50 = vpack.c.bf16 %v4137_v16, %v4136_v63 }
 0x2a8   :  { %v9589_v28 = vpop.permute.xlu1 %1166  ;;  %4011 = vmatprep.subr.mxu0 %v10098_v0  ;;  %v668_v29 = vadd.f32 %v657_v55, %v409_v42  ;;  %v5452_v40 = vpack.c.bf16 %v4081_v49, %v4080_v51  ;;  %v4145_v63 = vld [vmem:[%s10007_s3 + $0x10b0] sm:$0xff] }
 0x2a9   :  { %v1175_v53 = vsel %vm958_vm3, %v9581_v56, %v9589_v28 }
 0x2aa   :  { %5437 = vmatpush3.bf16.msra.mxu1 %v5436_v23  ;;  %v4114_v23 = vld [vmem:[%s10007_s3 + $0xfb8] sm:$0xff]  ;;  %v927_v5 = vadd.f32 %v916_v18, %v668_v29 }
 0x2ab   :  { %v9604_v27 = vpop.permute.xlu0 %1162  ;;  %4012 = vmatpush1.msra.mxu0 %v3815_v14  ;;  %5439 = vmatprep.subr.bf16.mxu1 %v5438_v31  ;;  %v4115_v31 = vld [vmem:[%s10007_s3 + $0xfc0] sm:$0xff]  ;;  %v5493_v14 = vpack.c.bf16 %v4135_v44, %v4134_v47 }
 0x2ac   :  { %v9617_v10 = vpop.permute.xlu1 %1423  ;;  %5486 = vmatprep.subr.bf16.mxu0 %v10047_v59  ;;  %v1186_v45 = vadd.f32 %v1175_v53, %v927_v5  ;;  %v1174_v54 = vsel %vm958_vm3, %v9604_v27, %v9581_v56  ;;  %v4138_v56 = vld [vmem:[%s10007_s3 + $0x1078] sm:$0xff]  ;;  %v4139_v27 = vld [vmem:[%s10007_s3 + $0x1080] sm:$0xff] }
 0x2ad   :  { %v1185_v35 = vadd.f32 %v1174_v54, %v926_v46  ;;  %v5499_v9 = vpack.c.bf16 %v4139_v27, %v4138_v56  ;;  %v4146_v54 = vld [vmem:[%s10007_s3 + $0x10b8] sm:$0xff] }
 0x2ae   :  { %5441 = vmatpush3.bf16.msra.mxu1 %v5440_v38 }
 0x2af   :  { %v9634_v60 = vpop.permute.xlu0 %1425  ;;  %5443 = vmatprep.subr.bf16.mxu1 %v5442_v32  ;;  %v5454_v32 = vpack.c.bf16 %v4115_v31, %v4114_v23 }
 0x2b0   :  { %v5671_v2 = vpop.eup %5670  ;;  %v1422_v8 = vpop.permute.xlu1 %1421  ;;  %v1434_v30 = vsel %vm1217_vm4, %v9617_v10, %v9634_v60 }
 0x2b1   :  { %v5673_v11 = vpop.eup %5672  ;;  %4478 = vmatprep.mubr.msk.f32.mxu0 %vm2451_vm8, %v5671_v2  ;;  %v1445_v48 = vadd.f32 %v1434_v30, %v1186_v45  ;;  %v1433_v43 = vsel %vm1217_vm4, %v1422_v8, %v9617_v10 }
 0x2b2   :  { %4024 = vmatmul.mubr.f32.vlgmr.msra.gmra.mrb[0].mxu0 %v5673_v11  ;;  %5445 = vmatpush3.bf16.msra.mxu1 %v5444_v22  ;;  %v1444_v8 = vadd.f32 %v1433_v43, %v1185_v35 }
 0x2b3   :  { %v1710_v37 = vpop.permute.xlu0 %1709  ;;  %5447 = vmatprep.subr.bf16.mxu1 %v5446_v17  ;;  %5488 = vmatpush1.bf16.msra.mxu0 %v5487_v34 }
 0x2b4   :  { %v9678_v3 = vpop.permute.xlu1 %1711  ;;  %5489 = vmatprep.subr.bf16.mxu0 %v10047_v59 }
 0x2b5   :  { %v1722_v26 = vsel %vm1480_vm5, %v1710_v37, %v9678_v3 }
 0x2b6   :  { %5449 = vmatpush3.bf16.msra.mxu1 %v5448_v39  ;;  %v1734_v20 = vadd.f32 %v1722_v26, %v1445_v48  ;;  %v4149_v48 = vld [vmem:[%s10007_s3 + $0x10d0] sm:$0xff] }
 0x2b7   :  { %v1708_v38 = vpop.permute.xlu0 %1707  ;;  %5451 = vmatprep.subr.bf16.mxu1 %v5450_v19  ;;  %5491 = vmatpush1.bf16.msra.mxu0 %v5490_v41  ;;  %v5728_v19 = vld [vmem:[%s10006_s2 + $0x10] sm:$0xff] }
 0x2b8   :  { %v1999_v33 = vpop.permute.xlu1 %1998  ;;  %5492 = vmatprep.subr.bf16.mxu0 %v10047_v59  ;;  %v1721_v25 = vsel %vm1480_vm5, %v1708_v38, %v1710_v37  ;;  %v145_v37 = vmul.f32 %v5728_v19, %v9602_v21 }
 0x2b9   :  { %v1733_v49 = vadd.f32 %v1721_v25, %v1444_v8  ;;  %v5729_v25 = vld [vmem:[%s10006_s2 + $0x18] sm:$0xff] }
 0x2ba   :  { %v4694_v58 = vpop.f32.mrb[10].mxu1  ;;  %5453 = vmatpush3.bf16.msra.mxu1 %v5452_v40  ;;  %v151_v18 = vadd.f32 %v145_v37, %v9630_v15  ;;  %v4143_v40 = vld [vmem:[%s10007_s3 + $0x10a0] sm:$0xff] }
 0x2bb   :  { %v4695_v22 = vpop.f32.mrb[11].mxu1  ;;  %v9714_v17 = vpop.permute.xlu0 %2000  ;;  %5494 = vmatpush1.bf16.msra.mxu0 %v5493_v14  ;;  %5455 = vmatprep.subr.bf16.mxu1 %v5454_v32  ;;  %v5505_v32 = vpack.c.bf16 %v4143_v40, %v4142_v57 }
 0x2bc   :  { %v4696_v34 = vadd.f32 %v4695_v22, %v4694_v58  ;;  %v1997_v2 = vpop.permute.xlu1 %1996  ;;  %5495 = vmatprep.subr.bf16.mxu0 %v10047_v59  ;;  %v2011_v24 = vsel %vm1769_vm6, %v1999_v33, %v9714_v17  ;;  %v4147_v58 = vld [vmem:[%s10007_s3 + $0x10c0] sm:$0xff] }
 0x2bd   :  { %v2023_v39 = vadd.f32 %v2011_v24, %v1734_v20  ;;  %v2010_v51 = vsel %vm1769_vm6, %v1997_v2, %v1999_v33  ;;  %v4144_v33 = vld [vmem:[%s10007_s3 + $0x10a8] sm:$0xff]  ;;  %v4150_v24 = vld [vmem:[%s10007_s3 + $0x10d8] sm:$0xff]  ;;  %v4151_v20 = vld [vmem:[%s10007_s3 + $0x10e0] sm:$0xff] }
 0x2be   :  { %v3274_v10 = vadd.f32 %v4696_v34, %v9512_v62  ;;  %v4140_v62 = vld [vmem:[%s10007_s3 + $0x1088] sm:$0xff]  ;;  %v2022_v44 = vadd.f32 %v2010_v51, %v1733_v49  ;;  %v5508_v30 = vpack.c.bf16 %v4145_v63, %v4144_v33  ;;  %v4153_v51 = vld [vmem:[%s10007_s3 + $0x10f0] sm:$0xff] }
 0x2bf   :  { %v2288_v11 = vpop.permute.xlu0 %2287  ;;  %5497 = vmatpush1.bf16.msra.mxu0 %v5496_v50  ;;  %v4148_v50 = vld [vmem:[%s10007_s3 + $0x10c8] sm:$0xff] }
 0x2c0   :  { %v9730_v61 = vadd.f32 %v9177_v36, %v3274_v10  ;;  %v9733_v55 = vpop.permute.xlu1 %2289  ;;  %5498 = vmatprep.subr.bf16.mxu0 %v10047_v59  ;;  %v4141_v36 = vld [vmem:[%s10007_s3 + $0x1090] sm:$0xff]  ;;  %v5514_v56 = vpack.c.bf16 %v4149_v48, %v4148_v50  ;;  %v146_v10 = vmul.f32 %v5729_v25, %v9602_v21  ;;  %v4116_v49 = vld [vmem:[%s10007_s3 + $0xfc8] sm:$0xff] }
 0x2c1   :  { %v2300_v41 = vsel %vm2058_vm7, %v2288_v11, %v9733_v55  ;;  %v5502_v1 = vpack.c.bf16 %v4141_v36, %v4140_v62  ;;  %v4098_v62 = vld [vmem:[%s10007_s3 + $0xf38] sm:$0xff]  ;;  %v4099_v36 = vld [vmem:[%s10007_s3 + $0xf40] sm:$0xff]  ;;  %v4120_v25 = vld [vmem:[%s10007_s3 + $0xfe8] sm:$0xff] }
 0x2c2   :  { %v2312_v47 = vadd.f32 %v2300_v41, %v2023_v39  ;;  %v4152_v39 = vld [vmem:[%s10007_s3 + $0x10e8] sm:$0xff]  ;;  %v152_v19 = vadd.f32 %v146_v10, %v9630_v15  ;;  %v5456_v57 = vpack.c.bf16 %v4099_v36, %v4098_v62  ;;  %v4121_v10 = vld [vmem:[%s10007_s3 + $0xff0] sm:$0xff] }
 0x2c3   :  { %v2286_v42 = vpop.permute.xlu0 %2285  ;;  %5500 = vmatpush1.bf16.msra.mxu0 %v5499_v9  ;;  %v5520_v41 = vpack.c.bf16 %v4153_v51, %v4152_v39 }
 0x2c4   :  { %v4480_v23 = vmul.f32 -1.442695, %v2312_v47  ;;  %v2299_v31 = vsel %vm2058_vm7, %v2286_v42, %v2288_v11  ;;  %v9750_v29 = vpop.permute.xlu1 %391  ;;  %5501 = vmatprep.subr.bf16.mxu0 %v10047_v59  ;;  %v5517_v11 = vpack.c.bf16 %v4151_v20, %v4150_v24  ;;  %v4117_v42 = vld [vmem:[%s10007_s3 + $0xfd0] sm:$0xff] }
 0x2c5   :  { %v2311_v14 = vadd.f32 %v2299_v31, %v2022_v44  ;;  %v399_v6 = vsel %vm181_vm0, %v9489_v12, %v9750_v29 }
 0x2c6   :  { %5674 = vpow2.f32 %v4480_v23  ;;  %v410_v5 = vadd.f32 %v399_v6, %v151_v18  ;;  %v4155_v23 = vld [vmem:[%s10007_s3 + $0x1100] sm:$0xff] }
 0x2c7   :  { %v4479_v53 = vmul.f32 -1.442695, %v2311_v14  ;;  %v9762_v38 = vpop.permute.xlu0 %393  ;;  %5503 = vmatpush1.bf16.msra.mxu0 %v5502_v1  ;;  %v4154_v1 = vld [vmem:[%s10007_s3 + $0x10f8] sm:$0xff] }
 0x2c8   :  { %v651_v13 = vpop.permute.xlu1 %650  ;;  %5504 = vmatprep.subr.bf16.mxu0 %v10047_v59  ;;  %v400_v47 = vsel %vm181_vm0, %v9750_v29, %v9762_v38 }
 0x2c9   :  { %5676 = vpow2.f32 %v4479_v53  ;;  %v658_v12 = vsel %vm440_vm1, %v9525_v4, %v651_v13  ;;  %v5511_v4 = vpack.c.bf16 %v4147_v58, %v4146_v54  ;;  %v411_v40 = vadd.f32 %v400_v47, %v152_v19 }
 0x2ca   :  { %v9773_v16 = vadd.f32 %v658_v12, %v410_v5  ;;  %v5458_v53 = vpack.c.bf16 %v4117_v42, %v4116_v49  ;;  %v5523_v5 = vpack.c.bf16 %v4155_v23, %v4154_v1  ;;  %v4118_v12 = vld [vmem:[%s10007_s3 + $0xfd8] sm:$0xff] }
 0x2cb   :  { %v9775_v7 = vpop.permute.xlu0 %652  ;;  %5506 = vmatpush1.bf16.msra.mxu0 %v5505_v32  ;;  %v4100_v32 = vld [vmem:[%s10007_s3 + $0xf48] sm:$0xff] }
 0x2cc   :  { %v910_v45 = vpop.permute.xlu1 %909  ;;  %5507 = vmatprep.subr.bf16.mxu0 %v10047_v59  ;;  %v659_v29 = vsel %vm440_vm1, %v651_v13, %v9775_v7 }
 0x2cd   :  { %v917_v18 = vsel %vm699_vm2, %v9562_v52, %v910_v45  ;;  %v4101_v52 = vld [vmem:[%s10007_s3 + $0xf50] sm:$0xff]  ;;  %v670_v54 = vadd.f32 %v659_v29, %v411_v40 }
 0x2ce   :  { %v928_v33 = vadd.f32 %v917_v18, %v9773_v16  ;;  %v5460_v50 = vpack.c.bf16 %v4101_v52, %v4100_v32  ;;  %v4123_v18 = vld [vmem:[%s10007_s3 + $0x1000] sm:$0xff] }
 0x2cf   :  { %v9784_v46 = vpop.permute.xlu0 %911  ;;  %5509 = vmatpush1.bf16.msra.mxu0 %v5508_v30  ;;  %v4119_v30 = vld [vmem:[%s10007_s3 + $0xfe0] sm:$0xff] }
 0x2d0   :  { %v5675_v26 = vpop.eup %5674  ;;  %v9786_v22 = vpop.permute.xlu1 %1168  ;;  %5510 = vmatprep.subr.bf16.mxu0 %v10047_v59  ;;  %v918_v63 = vsel %vm699_vm2, %v910_v45, %v9784_v46 }
 0x2d1   :  { %v4049_v43 = vadd.f32 1.0, %v5675_v26  ;;  %v1176_v14 = vsel %vm958_vm3, %v9589_v28, %v9786_v22  ;;  %v929_v48 = vadd.f32 %v918_v63, %v670_v54  ;;  %v4125_v54 = vld [vmem:[%s10007_s3 + $0x1010] sm:$0xff] }
 0x2d2   :  { %v1187_v16 = vadd.f32 %v1176_v14, %v928_v33 }
 0x2d3   :  { %v5677_v34 = vpop.eup %5676  ;;  %5678 = vrcp.f32 %v4049_v43  ;;  %v9795_v2 = vpop.permute.xlu0 %1170  ;;  %5512 = vmatpush1.bf16.msra.mxu0 %v5511_v4  ;;  %v5730_v4 = vld [vmem:[%s10006_s2 + $0x20] sm:$0xff] }
 0x2d4   :  { %v4048_v27 = vadd.f32 1.0, %v5677_v34  ;;  %v9797_v35 = vpop.permute.xlu1 %395  ;;  %5513 = vmatprep.subr.bf16.mxu0 %v10047_v59  ;;  %v1177_v45 = vsel %vm958_vm3, %v9786_v22, %v9795_v2  ;;  %v147_v26 = vmul.f32 %v5730_v4, %v9602_v21  ;;  %v4102_v34 = vld [vmem:[%s10007_s3 + $0xf58] sm:$0xff]  ;;  %v4103_v22 = vld [vmem:[%s10007_s3 + $0xf60] sm:$0xff] }
 0x2d5   :  { %v5464_v19 = vpack.c.bf16 %v4103_v22, %v4102_v34  ;;  %v4126_v34 = vld [vmem:[%s10007_s3 + $0x1018] sm:$0xff]  ;;  %v4127_v22 = vld [vmem:[%s10007_s3 + $0x1020] sm:$0xff] }
 0x2d6   :  { %5680 = vrcp.f32 %v4048_v27  ;;  %v153_v62 = vadd.f32 %v147_v26, %v9630_v15 }
 0x2d7   :  { %v1428_v8 = vpop.permute.xlu0 %1427  ;;  %5515 = vmatpush1.bf16.msra.mxu0 %v5514_v56  ;;  %v5731_v56 = vld [vmem:[%s10006_s2 + $0x28] sm:$0xff] }
 0x2d8   :  { %v9810_v9 = vpop.permute.xlu1 %1429  ;;  %5516 = vmatprep.subr.bf16.mxu0 %v10047_v59  ;;  %v1435_v58 = vsel %vm1217_vm4, %v9634_v60, %v1428_v8  ;;  %v5462_v60 = vpack.c.bf16 %v4119_v30, %v4118_v12  ;;  %v148_v27 = vmul.f32 %v5731_v56, %v9602_v21  ;;  %v4156_v21 = vld [vmem:[%s10007_s3 + $0x1108] sm:$0xff] }
 0x2d9   :  { %v1446_v24 = vadd.f32 %v1435_v58, %v1187_v16  ;;  %v4124_v30 = vld [vmem:[%s10007_s3 + $0x1008] sm:$0xff] }
 0x2da   :  { %v154_v47 = vadd.f32 %v148_v27, %v9630_v15 }
 0x2db   :  { %v9820_v37 = vpop.permute.xlu0 %654  ;;  %5518 = vmatpush1.bf16.msra.mxu0 %v5517_v11  ;;  %v1188_v11 = vadd.f32 %v1177_v45, %v929_v48  ;;  %v5474_v48 = vpack.c.bf16 %v4125_v54, %v4124_v30 }
 0x2dc   :  { %v1714_v44 = vpop.permute.xlu1 %1713  ;;  %5519 = vmatprep.subr.bf16.mxu0 %v10047_v59 }
 0x2dd   :  { %v5679_v31 = vpop.eup %5678 }
 0x2de   :  { %4224 = vmatprep.mubr.f32.mxu1 %v5679_v31  ;;  %v4122_v31 = vld [vmem:[%s10007_s3 + $0xff8] sm:$0xff] }
 0x2df   :  { %v9851_v6 = vpop.permute.xlu0 %1715  ;;  %5521 = vmatpush1.bf16.msra.mxu0 %v5520_v41  ;;  %v4104_v41 = vld [vmem:[%s10007_s3 + $0xf68] sm:$0xff]  ;;  %v5470_v52 = vpack.c.bf16 %v4123_v18, %v4122_v31 }
 0x2e0   :  { %v5681_v13 = vpop.eup %5680  ;;  %v9862_v28 = vpop.permute.xlu1 %913  ;;  %5522 = vmatprep.subr.bf16.mxu0 %v10047_v59  ;;  %v1723_v59 = vsel %vm1480_vm5, %v9678_v3, %v1714_v44  ;;  %v1436_v3 = vsel %vm1217_vm4, %v1428_v8, %v9810_v9  ;;  %v1724_v51 = vsel %vm1480_vm5, %v1714_v44, %v9851_v6  ;;  %v401_v44 = vsel %vm181_vm0, %v9762_v38, %v9797_v35 }
 0x2e1   :  { %4225 = vmatmul.mubr.f32.vlgmr.msra.gmra.mrb[18].mxu1 %v5681_v13  ;;  %v1735_v39 = vadd.f32 %v1723_v59, %v1446_v24  ;;  %v1447_v36 = vadd.f32 %v1436_v3, %v1188_v11  ;;  %v660_v38 = vsel %vm440_vm1, %v9775_v7, %v9820_v37  ;;  %v412_v14 = vadd.f32 %v401_v44, %v153_v62  ;;  %v4108_v59 = vld [vmem:[%s10007_s3 + $0xf88] sm:$0xff]  ;;  %v4111_v11 = vld [vmem:[%s10007_s3 + $0xfa0] sm:$0xff]  ;;  %v4113_v44 = vld [vmem:[%s10007_s3 + $0xfb0] sm:$0xff] }
 0x2e2   :  { %5457 = vmatpush3.bf16.msra.mxu1 %v5456_v57  ;;  %v413_v13 = vadd.f32 %v9797_v35, %v154_v47  ;;  %v919_v7 = vsel %vm699_vm2, %v9784_v46, %v9862_v28 }
 0x2e3   :  { %v2003_v43 = vpop.permute.xlu0 %2002  ;;  %5459 = vmatprep.subr.bf16.mxu1 %v5458_v53  ;;  %5524 = vmatpush1.bf16.msra.mxu0 %v5523_v5  ;;  %v1736_v29 = vadd.f32 %v1724_v51, %v1447_v36  ;;  %v4106_v5 = vld [vmem:[%s10007_s3 + $0xf78] sm:$0xff]  ;;  %v671_v58 = vadd.f32 %v660_v38, %v412_v14  ;;  %v4128_v51 = vld [vmem:[%s10007_s3 + $0x1028] sm:$0xff] }
 0x2e4   :  { %v9894_v20 = vpop.permute.xlu1 %2004  ;;  %4352 = vmatprep.subr.mxu0 %v10098_v0  ;;  %v2012_v8 = vsel %vm1769_vm6, %v9714_v17, %v2003_v43  ;;  %v5466_v0 = vpack.c.bf16 %v4121_v10, %v4120_v25  ;;  %v4105_v17 = vld [vmem:[%s10007_s3 + $0xf70] sm:$0xff]  ;;  %v672_v35 = vadd.f32 %v9820_v37, %v413_v13  ;;  %v5478_v10 = vpack.c.bf16 %v4127_v22, %v4126_v34 }
 0x2e5   :  { %v2024_v42 = vadd.f32 %v2012_v8, %v1735_v39  ;;  %v2013_v1 = vsel %vm1769_vm6, %v2003_v43, %v9894_v20  ;;  %v5468_v40 = vpack.c.bf16 %v4105_v17, %v4104_v41  ;;  %v930_v4 = vadd.f32 %v919_v7, %v671_v58  ;;  %v4109_v43 = vld [vmem:[%s10007_s3 + $0xf90] sm:$0xff] }
 0x2e6   :  { %5461 = vmatpush3.bf16.msra.mxu1 %v5460_v50  ;;  %v2025_v53 = vadd.f32 %v2013_v1, %v1736_v29  ;;  %v931_v37 = vadd.f32 %v9862_v28, %v672_v35  ;;  %v5476_v28 = vpack.c.bf16 %v4109_v43, %v4108_v59 }
 0x2e7   :  { %v1173_v49 = vpop.permute.xlu0 %1172  ;;  %5463 = vmatprep.subr.bf16.mxu1 %v5462_v60  ;;  %4353 = vmatpush1.msra.mxu0 %v4156_v21  ;;  %v4110_v21 = vld [vmem:[%s10007_s3 + $0xf98] sm:$0xff] }
 0x2e8   :  { %v2292_v23 = vpop.permute.xlu1 %2291  ;;  %v1178_v46 = vsel %vm958_vm3, %v9795_v2, %v1173_v49  ;;  %v1190_v27 = vadd.f32 %v1173_v49, %v931_v37 }
 0x2e9   :  { %v2301_v15 = vsel %vm2058_vm7, %v9733_v55, %v2292_v23  ;;  %v4107_v55 = vld [vmem:[%s10007_s3 + $0xf80] sm:$0xff]  ;;  %v1189_v56 = vadd.f32 %v1178_v46, %v930_v4 }
 0x2ea   :  { %v2313_v57 = vadd.f32 %v2301_v15, %v2024_v42  ;;  %5465 = vmatpush3.bf16.msra.mxu1 %v5464_v19  ;;  %v5472_v45 = vpack.c.bf16 %v4107_v55, %v4106_v5  ;;  %v4129_v19 = vld [vmem:[%s10007_s3 + $0x1030] sm:$0xff] }
 0x2eb   :  { %v9934_v32 = vpop.permute.xlu0 %2293  ;;  %5467 = vmatprep.subr.bf16.mxu1 %v5466_v0  ;;  %v5480_v0 = vpack.c.bf16 %v4111_v11, %v4110_v21  ;;  %v5482_v47 = vpack.c.bf16 %v4129_v19, %v4128_v51 }
 0x2ec   :  { %v4481_v33 = vmul.f32 -1.442695, %v2313_v57  ;;  %v2302_v63 = vsel %vm2058_vm7, %v2292_v23, %v9934_v32  ;;  %v1432_v12 = vpop.permute.xlu1 %1431 }
 0x2ed   :  { %v2314_v16 = vadd.f32 %v2302_v63, %v2025_v53  ;;  %v1437_v2 = vsel %vm1217_vm4, %v9810_v9, %v1432_v12  ;;  %v1449_v8 = vadd.f32 %v1432_v12, %v1190_v27 }
 0x2ee   :  { %5682 = vpow2.f32 %v4481_v33  ;;  %5469 = vmatpush3.bf16.msra.mxu1 %v5468_v40  ;;  %v1448_v3 = vadd.f32 %v1437_v2, %v1189_v56 }
 0x2ef   :  { %v4482_v26 = vmul.f32 -1.442695, %v2314_v16  ;;  %v1718_v50 = vpop.permute.xlu0 %1717  ;;  %5471 = vmatprep.subr.bf16.mxu1 %v5470_v52 }
 0x2f0   :  { %v1720_v60 = vpop.permute.xlu1 %1719  ;;  %v1725_v24 = vsel %vm1480_vm5, %v9851_v6, %v1718_v50 }
 0x2f1   :  { %5684 = vpow2.f32 %v4482_v26  ;;  %v1726_v9 = vsel %vm1480_vm5, %v1718_v50, %v1720_v60  ;;  %v1737_v62 = vadd.f32 %v1725_v24, %v1448_v3 }
 0x2f2   :  { %5473 = vmatpush3.bf16.msra.mxu1 %v5472_v45  ;;  %v1738_v49 = vadd.f32 %v1726_v9, %v1449_v8 }
 0x2f3   :  { %v2007_v25 = vpop.permute.xlu0 %2006  ;;  %5475 = vmatprep.subr.bf16.mxu1 %v5474_v48 }
 0x2f4   :  { %v2014_v6 = vsel %vm1769_vm6, %v9894_v20, %v2007_v25  ;;  %v2009_v39 = vpop.permute.xlu1 %2008  ;;  %v4112_v20 = vld [vmem:[%s10007_s3 + $0xfa8] sm:$0xff] }
 0x2f5   :  { %v2015_v36 = vsel %vm1769_vm6, %v2007_v25, %v2009_v39  ;;  %v2026_v41 = vadd.f32 %v2014_v6, %v1737_v62  ;;  %v5484_v57 = vpack.c.bf16 %v4113_v44, %v4112_v20 }
 0x2f6   :  { %5477 = vmatpush3.bf16.msra.mxu1 %v5476_v28  ;;  %v2027_v1 = vadd.f32 %v2015_v36, %v1738_v49 }
 0x2f7   :  { %v2296_v17 = vpop.permute.xlu0 %2295  ;;  %5479 = vmatprep.subr.bf16.mxu1 %v5478_v10 }
 0x2f8   :  { %v5683_v42 = vpop.eup %5682  ;;  %v2303_v23 = vsel %vm2058_vm7, %v9934_v32, %v2296_v17  ;;  %v2298_v31 = vpop.permute.xlu1 %2297 }
 0x2f9   :  { %v4050_v18 = vadd.f32 1.0, %v5683_v42  ;;  %v2315_v29 = vadd.f32 %v2303_v23, %v2026_v41  ;;  %v2304_v15 = vsel %vm2058_vm7, %v2296_v17, %v2298_v31 }
 0x2fa   :  { %v2316_v38 = vadd.f32 %v2304_v15, %v2027_v1  ;;  %5481 = vmatpush3.bf16.msra.mxu1 %v5480_v0 }
 0x2fb   :  { %v5685_v40 = vpop.eup %5684  ;;  %v4483_v14 = vmul.f32 -1.442695, %v2315_v29  ;;  %5483 = vmatprep.subr.bf16.mxu1 %v5482_v47  ;;  %5686 = vrcp.f32 %v4050_v18 }
 0x2fc   :  { %v4051_v53 = vadd.f32 1.0, %v5685_v40  ;;  %v4484_v52 = vmul.f32 -1.442695, %v2316_v38 }
 0x2fd   :  { %5688 = vpow2.f32 %v4483_v14 }
 0x2fe   :  { %5690 = vrcp.f32 %v4051_v53  ;;  %5485 = vmatpush3.bf16.msra.mxu1 %v5484_v57 }
 0x2ff   :  { %5692 = vpow2.f32 %v4484_v52 }
 0x305   :  { %v5687_v5 = vpop.eup %5686 }
 0x307   :  { %v5689_v32 = vpop.eup %5688 }
 0x308   :  { %v5691_v55 = vpop.eup %5690  ;;  %v4052_v13 = vadd.f32 1.0, %v5689_v32 }
 0x309   :  { %v5693_v7 = vpop.eup %5692  ;;  %4294 = vmatprep.mubr.f32.mxu1 %v5691_v55 }
 0x30a   :  { %v4053_v33 = vadd.f32 1.0, %v5693_v7  ;;  %4295 = vmatmul.mubr.f32.vlgmr.msra.gmra.mrb[20].mxu1 %v5687_v5  ;;  %5694 = vrcp.f32 %v4052_v13 }
 0x30c   :  { %5696 = vrcp.f32 %v4053_v33 }
 0x30e   :  { %v4729_v63 = vpop.f32.mrb[12].mxu1 }
 0x30f   :  { %v4730_v12 = vpop.f32.mrb[13].mxu1 }
 0x310   :  { %v4731_v30 = vadd.f32 %v4730_v12, %v4729_v63 }
 0x314   :  { %v5695_v54 = vpop.eup %5694 }
 0x316   :  { %v5697_v58 = vpop.eup %5696 }
 0x317   :  { %4485 = vmatprep.mubr.msk.f32.mxu0 %vm2451_vm8, %v5697_v58 }
 0x318   :  { %4365 = vmatmul.mubr.f32.vlgmr.msra.gmra.mrb[0].mxu0 %v5695_v54 }
 0x349   :  { %v4834_v16 = vpop.f32.mrb[2].mxu0 }
 0x34a   :  { %v4835_v35 = vpop.f32.mrb[3].mxu0 }
 0x34b   :  { %v4836_v46 = vadd.f32 %v4835_v35, %v4834_v16 }
 0x350   :  { %v4764_v45 = vpop.f32.mrb[14].mxu1 }
 0x351   :  { %v4765_v4 = vpop.f32.mrb[15].mxu1 }
 0x352   :  { %v4766_v26 = vadd.f32 %v4765_v4, %v4764_v45 }
 0x354   :  { %v3615_v50 = vadd.f32 %v4766_v26, %v4731_v30 }
 0x356   :  { %v5528_v48 = vadd.f32 %v9730_v61, %v3615_v50 }
 0x370   :  { %v4799_v59 = vpop.f32.mrb[16].mxu1 }
 0x371   :  { %v4800_v43 = vpop.f32.mrb[17].mxu1 }
 0x372   :  { %v4801_v37 = vadd.f32 %v4800_v43, %v4799_v59 }
 0x374   :  { %v3956_v2 = vadd.f32 %v4836_v46, %v4801_v37 }
 0x376   :  { %v5529_v60 = vadd.f32 %v5528_v48, %v3956_v2 }
 0x3b4   :  { %v4869_v34 = vpop.f32.mrb[18].mxu1 }
 0x3b5   :  { %v4870_v22 = vpop.f32.mrb[19].mxu1 }
 0x3b6   :  { %v4871_v56 = vadd.f32 %v4870_v22, %v4869_v34 }
 0x3dd   :  { %v4904_v27 = vpop.f32.mrb[20].mxu1 }
 0x3de   :  { %v4905_v24 = vpop.f32.mrb[21].mxu1 }
 0x3df   :  { %v4906_v28 = vadd.f32 %v4905_v24, %v4904_v27 }
 0x3e1   :  { %v4297_v3 = vadd.f32 %v4906_v28, %v4871_v56 }
 0x3e3   :  { %v5530_v9 = vadd.f32 %v5529_v60, %v4297_v3 }
 0x3eb   :  { %v4366_v25 = vpop.f32.mrb[0].mxu0 }
 0x3ec   :  { %v5531_v10 = vadd.f32 %v5530_v9, %v4366_v25  ;;  %v4368_v21 = vpop.f32.mrb[1].mxu0 }
 0x3ee   :  { %v4486_v11 = vmul.f32 -1.442695, %v5531_v10 }
 0x3f0   :  { %5698 = vpow2.f32 %v4486_v11 }
 0x3fa   :  { %v5699_v8 = vpop.eup %5698 }
 0x3fb   :  { %v4374_v61 = vadd.f32 1.0, %v5699_v8 }
 0x3fd   :  { %5700 = vrcp.f32 %v4374_v61 }
 0x407   :  { %v5701_v6 = vpop.eup %5700 }
 0x408   :  { %4378 = vst.msk [vmem:[%s10009_s5] sm:$0xff] %vm4377_vm9, %v5701_v6 }
 0x409   :  { %4383 = vsyncpa [#allocation3], 1 }
 0x40a   :  { %4384 = vsyncpa [#allocation5], 1 }

</bundles_post_ra>
